<compile_context>
chip_gen: v6e
topology: v6e:2x2x1
jax: 0.10.0
libtpu: 0.0.40
codegen_flags: <defaults>
</compile_context>

<pallas_src>
import math
import jax
import jax.numpy as jnp
from jax.experimental import pallas as pl
from jax.experimental.pallas import tpu as pltpu  # noqa: F401 (kept for TPU-specific params)

# ----- small synthetic ALBERT config -----
B, S = 2, 8               # batch, sequence length
EMB = 16                  # embedding_size
H = 32                    # hidden_size
NH = 4                    # num_attention_heads
DH = H // NH              # attention_head_size
INTER = 64                # intermediate_size
FC1 = 16                  # fc_size1
NUM_LABELS = 2
NUM_HIDDEN_LAYERS = 3
NUM_HIDDEN_GROUPS = 1
INNER_GROUP_NUM = 1
LN_EPS = 1e-12


def _gelu_new(x):
    # ACT2FN["gelu_new"] (tanh approximation used by ALBERT)
    return 0.5 * x * (1.0 + jnp.tanh(
        math.sqrt(2.0 / math.pi) * (x + 0.044715 * x * x * x)))


def _layernorm(x, g, b, eps=LN_EPS):
    mu = jnp.mean(x, axis=-1, keepdims=True)
    var = jnp.mean((x - mu) ** 2, axis=-1, keepdims=True)
    return (x - mu) * jax.lax.rsqrt(var + eps) * g + b


# ------------- fused kernel: embedding map + N shared AlbertLayers + ExitLayer -------------
def _fused_albert_kernel(x_ref, emb_w_ref, emb_b_ref,
                         wqkv_ref, bqkv_ref, wo_ref, bo_ref, g1_ref, b1_ref,
                         wf_ref, bf_ref, wfo_ref, bfo_ref, g2_ref, b2_ref,
                         wp_ref, bp_ref, wc_ref, bc_ref,
                         xout_ref, logits_ref):
    # ---- embedding_hidden_mapping_in ----
    x = (jnp.dot(x_ref[...], emb_w_ref[...], preferred_element_type=jnp.float32)
         + emb_b_ref[...])                                          # (B*S, H)

    # ---- shared ALBERT layer weights: loaded once, reused by every layer iteration ----
    wqkv = wqkv_ref[...]; bqkv = bqkv_ref[...]                      # (H, 3H), (1, 3H)
    wo = wo_ref[...];     bo = bo_ref[...]
    g1 = g1_ref[...];     b1 = b1_ref[...]
    wf = wf_ref[...];     bf = bf_ref[...]
    wfo = wfo_ref[...];   bfo = bfo_ref[...]
    g2 = g2_ref[...];     b2 = b2_ref[...]

    def albert_layer(_, xin):
        # fused Q|K|V projection (1/sqrt(DH) already folded into the Q columns)
        qkv = jnp.dot(xin, wqkv, preferred_element_type=jnp.float32) + bqkv   # (B*S, 3H)
        proj = jnp.zeros((B * S, H), jnp.float32)
        # static per-head loop (NH=4); every step is batched over B via 3-D einsums.
        for h in range(NH):
            lo = h * DH
            qh = qkv[:, lo:lo + DH].reshape(B, S, DH)
            kh = qkv[:, H + lo:H + lo + DH].reshape(B, S, DH)
            vh = qkv[:, 2 * H + lo:2 * H + lo + DH].reshape(B, S, DH)
            s = jnp.einsum('bqd,bkd->bqk', qh, kh,
                           preferred_element_type=jnp.float32)      # (B, S, S)
            s = s - jnp.max(s, axis=-1, keepdims=True)
            p = jnp.exp(s)
            p = p * pl.reciprocal(jnp.sum(p, axis=-1, keepdims=True), approx=True)
            ctx = jnp.einsum('bqk,bkd->bqd', p, vh,
                             preferred_element_type=jnp.float32).reshape(B * S, DH)
            # == einsum('bfnd,ndh->bfh', ctx, dense.weight.t().view(nh, dh, H))
            proj = proj + jnp.dot(ctx, wo[lo:lo + DH, :],
                                  preferred_element_type=jnp.float32)
        proj = proj + bo
        attn_out = _layernorm(xin + proj, g1, b1)

        f = jnp.dot(attn_out, wf, preferred_element_type=jnp.float32) + bf
        f = _gelu_new(f)
        f = jnp.dot(f, wfo, preferred_element_type=jnp.float32) + bfo
        return _layernorm(f + attn_out, g2, b2)

    x = jax.lax.fori_loop(0, NUM_HIDDEN_LAYERS, albert_layer, x, unroll=True)

    # ---- ExitLayer (only the last layer's logits are returned by the module) ----
    cls = x.reshape(B, S, H)[:, 0, :]                               # pooler_input == 'cls'
    pooled = jnp.tanh(jnp.dot(cls, wp_ref[...],
                              preferred_element_type=jnp.float32) + bp_ref[...])
    logits = (jnp.dot(pooled, wc_ref[...], preferred_element_type=jnp.float32)
              + bc_ref[...])

    xout_ref[...] = x.astype(xout_ref.dtype)
    logits_ref[...] = logits.astype(logits_ref.dtype)


# ---------------- wrapper ----------------
def albert_transformer_forward(hidden_states, fused):
    b, s, e = hidden_states.shape
    x2d = hidden_states.reshape(b * s, e)
    x_out, logits = pl.pallas_call(
        _fused_albert_kernel,
        out_shape=(jax.ShapeDtypeStruct((b * s, H), jnp.float32),
                   jax.ShapeDtypeStruct((b, NUM_LABELS), jnp.float32)),
    )(x2d, fused['emb_w'], fused['emb_b'],
      fused['wqkv'], fused['bqkv'], fused['wo'], fused['bo'],
      fused['g1'], fused['b1'],
      fused['wf'], fused['bf'], fused['wfo'], fused['bfo'],
      fused['g2'], fused['b2'],
      fused['wp'], fused['bp'], fused['wc'], fused['bc'])
    # mirrors: outputs = (hidden_states,) + (cnt - 1, exit_logits)
    return x_out.reshape(b, s, H), NUM_HIDDEN_LAYERS - 1, logits


# ---------------- parameter init (deterministic, synthetic) ----------------
def _w(key, shape):
    return jax.random.normal(key, shape, jnp.float32) * 0.02


def init_params(key):
    ks = jax.random.split(key, 12)
    layer = {
        'wq': _w(ks[0], (H, H)),      'bq': jnp.zeros((1, H), jnp.float32),
        'wk': _w(ks[1], (H, H)),      'bk': jnp.zeros((1, H), jnp.float32),
        'wv': _w(ks[2], (H, H)),      'bv': jnp.zeros((1, H), jnp.float32),
        'wo': _w(ks[3], (H, H)),      'bo': jnp.zeros((1, H), jnp.float32),
        'g1': jnp.ones((1, H), jnp.float32), 'b1': jnp.zeros((1, H), jnp.float32),
        'wf': _w(ks[4], (H, INTER)),  'bf': jnp.zeros((1, INTER), jnp.float32),
        'wfo': _w(ks[5], (INTER, H)), 'bfo': jnp.zeros((1, H), jnp.float32),
        'g2': jnp.ones((1, H), jnp.float32), 'b2': jnp.zeros((1, H), jnp.float32),
    }
    return {
        'emb_w': _w(ks[6], (EMB, H)),
        'emb_b': jnp.zeros((1, H), jnp.float32),
        'groups': [[layer]],          # ALBERT weight sharing: one group / one inner layer
        'exit': {
            'wp': _w(ks[7], (H, FC1)),          'bp': jnp.zeros((1, FC1), jnp.float32),
            'wc': _w(ks[8], (FC1, NUM_LABELS)), 'bc': jnp.zeros((1, NUM_LABELS), jnp.float32),
        },
    }


def prepare_fused_params(params):
    """One-time weight prep: concat Q|K|V and fold the 1/sqrt(DH) scale into Q."""
    lp = params['groups'][0][0]
    ep = params['exit']
    scale = 1.0 / math.sqrt(DH)
    return {
        'emb_w': params['emb_w'], 'emb_b': params['emb_b'],
        'wqkv': jnp.concatenate([lp['wq'] * scale, lp['wk'], lp['wv']], axis=1),
        'bqkv': jnp.concatenate([lp['bq'] * scale, lp['bk'], lp['bv']], axis=1),
        'wo': lp['wo'], 'bo': lp['bo'], 'g1': lp['g1'], 'b1': lp['b1'],
        'wf': lp['wf'], 'bf': lp['bf'], 'wfo': lp['wfo'], 'bfo': lp['bfo'],
        'g2': lp['g2'], 'b2': lp['b2'],
        'wp': ep['wp'], 'bp': ep['bp'], 'wc': ep['wc'], 'bc': ep['bc'],
    }


# ---------------- pure-JAX reference (mirrors the PyTorch module) ----------------
def reference_forward(hidden_states, params):
    lp = params['groups'][0][0]
    ep = params['exit']
    b, s, _ = hidden_states.shape
    with jax.default_matmul_precision("highest"):
        x = hidden_states.reshape(b * s, EMB) @ params['emb_w'] + params['emb_b']
        x = x.reshape(b, s, H)
        logits = None
        cnt = 0
        while cnt < NUM_HIDDEN_LAYERS:
            q = (x @ lp['wq'] + lp['bq']).reshape(b, s, NH, DH).transpose(0, 2, 1, 3)
            k = (x @ lp['wk'] + lp['bk']).reshape(b, s, NH, DH).transpose(0, 2, 1, 3)
            v = (x @ lp['wv'] + lp['bv']).reshape(b, s, NH, DH).transpose(0, 2, 1, 3)
            scores = jnp.einsum('bhqd,bhkd->bhqk', q, k) / math.sqrt(DH)
            probs = jax.nn.softmax(scores, axis=-1)
            ctx = jnp.einsum('bhqk,bhkd->bhqd', probs, v)
            ctx = ctx.transpose(0, 2, 1, 3).reshape(b, s, H)
            proj = ctx @ lp['wo'] + lp['bo']
            attn = _layernorm(x + proj, lp['g1'], lp['b1'])
            f = _gelu_new(attn @ lp['wf'] + lp['bf'])
            f = f @ lp['wfo'] + lp['bfo']
            x = _layernorm(f + attn, lp['g2'], lp['b2'])
            pooled = jnp.tanh(x[:, 0, :] @ ep['wp'] + ep['bp'])
            logits = pooled @ ep['wc'] + ep['bc']
            cnt += 1
    return x, cnt - 1, logits


if __name__ == "__main__":
    key = jax.random.PRNGKey(0)
    params = init_params(key)
    fused = prepare_fused_params(params)
    key, sub = jax.random.split(key)
    hidden_states = jax.random.normal(sub, (B, S, EMB), jnp.float32)

    out_hidden, last_layer_idx, exit_logits = albert_transformer_forward(hidden_states, fused)
    jax.block_until_ready((out_hidden, exit_logits))

    assert out_hidden.shape == (B, S, H)
    assert exit_logits.shape == (B, NUM_LABELS)
    assert last_layer_idx == NUM_HIDDEN_LAYERS - 1

    ref_x, ref_idx, ref_logits = reference_forward(hidden_states, params)
    assert ref_idx == last_layer_idx
    # approx softmax reciprocal -> allow ~1e-3-level relative differences (loose bound).
    assert jnp.allclose(out_hidden, ref_x, atol=2e-2, rtol=2e-2)
    assert jnp.allclose(exit_logits, ref_logits, atol=2e-2, rtol=2e-2)

    print("KERNEL_OK")
</pallas_src>

<mosaic_0001>
module attributes {stable_mosaic.version = 11 : i64} {
  func.func @_fused_albert_kernel(%arg0: memref<16x16xf32, #tpu.memory_space<vmem>>, %arg1: memref<16x32xf32, #tpu.memory_space<vmem>>, %arg2: memref<1x32xf32, #tpu.memory_space<vmem>>, %arg3: memref<32x96xf32, #tpu.memory_space<vmem>>, %arg4: memref<1x96xf32, #tpu.memory_space<vmem>>, %arg5: memref<32x32xf32, #tpu.memory_space<vmem>>, %arg6: memref<1x32xf32, #tpu.memory_space<vmem>>, %arg7: memref<1x32xf32, #tpu.memory_space<vmem>>, %arg8: memref<1x32xf32, #tpu.memory_space<vmem>>, %arg9: memref<32x64xf32, #tpu.memory_space<vmem>>, %arg10: memref<1x64xf32, #tpu.memory_space<vmem>>, %arg11: memref<64x32xf32, #tpu.memory_space<vmem>>, %arg12: memref<1x32xf32, #tpu.memory_space<vmem>>, %arg13: memref<1x32xf32, #tpu.memory_space<vmem>>, %arg14: memref<1x32xf32, #tpu.memory_space<vmem>>, %arg15: memref<32x16xf32, #tpu.memory_space<vmem>>, %arg16: memref<1x16xf32, #tpu.memory_space<vmem>>, %arg17: memref<16x2xf32, #tpu.memory_space<vmem>>, %arg18: memref<1x2xf32, #tpu.memory_space<vmem>>, %arg19: memref<16x32xf32, #tpu.memory_space<vmem>>, %arg20: memref<2x2xf32, #tpu.memory_space<vmem>>) attributes {dimension_semantics = [], scalar_prefetch = 0 : i64, scratch_operands = 0 : i64, tpu.core_type = #tpu.core_type<tc>} {
    %c0 = arith.constant 0 : index
    %c0_0 = arith.constant 0 : index
    %0 = vector.load %arg0[%c0, %c0_0] : memref<16x16xf32, #tpu.memory_space<vmem>>, vector<16x16xf32>
    %c0_1 = arith.constant 0 : index
    %c0_2 = arith.constant 0 : index
    %1 = vector.load %arg1[%c0_1, %c0_2] : memref<16x32xf32, #tpu.memory_space<vmem>>, vector<16x32xf32>
    %cst = arith.constant dense<0.000000e+00> : vector<16x32xf32>
    %2 = tpu.matmul %0, %1, %cst {dimension_numbers = #tpu.dot_dimension_numbers<[1], [0], [0], [1], [0, 0, 1, 1], [], []>} : vector<16x16xf32>, vector<16x32xf32>, vector<16x32xf32> -> vector<16x32xf32>
    %c0_3 = arith.constant 0 : index
    %c0_4 = arith.constant 0 : index
    %3 = vector.load %arg2[%c0_3, %c0_4] : memref<1x32xf32, #tpu.memory_space<vmem>>, vector<1x32xf32>
    %4 = vector.broadcast %3 : vector<1x32xf32> to vector<16x32xf32>
    %5 = arith.addf %2, %4 : vector<16x32xf32>
    %c0_5 = arith.constant 0 : index
    %c0_6 = arith.constant 0 : index
    %6 = vector.load %arg3[%c0_5, %c0_6] : memref<32x96xf32, #tpu.memory_space<vmem>>, vector<32x96xf32>
    %c0_7 = arith.constant 0 : index
    %c0_8 = arith.constant 0 : index
    %7 = vector.load %arg4[%c0_7, %c0_8] : memref<1x96xf32, #tpu.memory_space<vmem>>, vector<1x96xf32>
    %c0_9 = arith.constant 0 : index
    %c0_10 = arith.constant 0 : index
    %8 = vector.load %arg5[%c0_9, %c0_10] : memref<32x32xf32, #tpu.memory_space<vmem>>, vector<32x32xf32>
    %c0_11 = arith.constant 0 : index
    %c0_12 = arith.constant 0 : index
    %9 = vector.load %arg6[%c0_11, %c0_12] : memref<1x32xf32, #tpu.memory_space<vmem>>, vector<1x32xf32>
    %c0_13 = arith.constant 0 : index
    %c0_14 = arith.constant 0 : index
    %10 = vector.load %arg7[%c0_13, %c0_14] : memref<1x32xf32, #tpu.memory_space<vmem>>, vector<1x32xf32>
    %c0_15 = arith.constant 0 : index
    %c0_16 = arith.constant 0 : index
    %11 = vector.load %arg8[%c0_15, %c0_16] : memref<1x32xf32, #tpu.memory_space<vmem>>, vector<1x32xf32>
    %c0_17 = arith.constant 0 : index
    %c0_18 = arith.constant 0 : index
    %12 = vector.load %arg9[%c0_17, %c0_18] : memref<32x64xf32, #tpu.memory_space<vmem>>, vector<32x64xf32>
    %c0_19 = arith.constant 0 : index
    %c0_20 = arith.constant 0 : index
    %13 = vector.load %arg10[%c0_19, %c0_20] : memref<1x64xf32, #tpu.memory_space<vmem>>, vector<1x64xf32>
    %c0_21 = arith.constant 0 : index
    %c0_22 = arith.constant 0 : index
    %14 = vector.load %arg11[%c0_21, %c0_22] : memref<64x32xf32, #tpu.memory_space<vmem>>, vector<64x32xf32>
    %c0_23 = arith.constant 0 : index
    %c0_24 = arith.constant 0 : index
    %15 = vector.load %arg12[%c0_23, %c0_24] : memref<1x32xf32, #tpu.memory_space<vmem>>, vector<1x32xf32>
    %c0_25 = arith.constant 0 : index
    %c0_26 = arith.constant 0 : index
    %16 = vector.load %arg13[%c0_25, %c0_26] : memref<1x32xf32, #tpu.memory_space<vmem>>, vector<1x32xf32>
    %c0_27 = arith.constant 0 : index
    %c0_28 = arith.constant 0 : index
    %17 = vector.load %arg14[%c0_27, %c0_28] : memref<1x32xf32, #tpu.memory_space<vmem>>, vector<1x32xf32>
    %c0_i32 = arith.constant 0 : i32
    %cst_29 = arith.constant dense<0.000000e+00> : vector<16x96xf32>
    %18 = tpu.matmul %5, %6, %cst_29 {dimension_numbers = #tpu.dot_dimension_numbers<[1], [0], [0], [1], [0, 0, 1, 1], [], []>} : vector<16x32xf32>, vector<32x96xf32>, vector<16x96xf32> -> vector<16x96xf32>
    %19 = vector.broadcast %7 : vector<1x96xf32> to vector<16x96xf32>
    %20 = arith.addf %18, %19 : vector<16x96xf32>
    %cst_30 = arith.constant 0.000000e+00 : f32
    %21 = vector.broadcast %cst_30 : f32 to vector<16x32xf32>
    %22 = vector.extract_strided_slice %20 {offsets = [0, 0], sizes = [16, 8], strides = [1, 1]} : vector<16x96xf32> to vector<16x8xf32>
    %23 = vector.shape_cast %22 : vector<16x8xf32> to vector<2x8x8xf32>
    %24 = vector.extract_strided_slice %20 {offsets = [0, 32], sizes = [16, 8], strides = [1, 1]} : vector<16x96xf32> to vector<16x8xf32>
    %25 = vector.shape_cast %24 : vector<16x8xf32> to vector<2x8x8xf32>
    %26 = vector.extract_strided_slice %20 {offsets = [0, 64], sizes = [16, 8], strides = [1, 1]} : vector<16x96xf32> to vector<16x8xf32>
    %27 = vector.shape_cast %26 : vector<16x8xf32> to vector<2x8x8xf32>
    "tpu.trace_start"() <{level = 10 : i32, message = "bqd,bkd->bqk"}> : () -> ()
    %cst_31 = arith.constant dense<0.000000e+00> : vector<2x8x8xf32>
    %28 = tpu.matmul %23, %25, %cst_31 {dimension_numbers = #tpu.dot_dimension_numbers<[2], [2], [1], [1], [0, 0, 0, 1, 1, 1], [0], [0]>} : vector<2x8x8xf32>, vector<2x8x8xf32>, vector<2x8x8xf32> -> vector<2x8x8xf32>
    "tpu.trace_stop"() : () -> ()
    %cst_32 = arith.constant dense<0xFF800000> : vector<2x8xf32>
    %29 = vector.multi_reduction <maximumf>, %28, %cst_32 [2] : vector<2x8x8xf32> to vector<2x8xf32>
    %30 = vector.shape_cast %29 : vector<2x8xf32> to vector<2x8x1xf32>
    %31 = vector.broadcast %30 : vector<2x8x1xf32> to vector<2x8x8xf32>
    %32 = arith.subf %28, %31 : vector<2x8x8xf32>
    %33 = math.exp %32 : vector<2x8x8xf32>
    %cst_33 = arith.constant dense<0.000000e+00> : vector<2x8xf32>
    %34 = vector.multi_reduction <add>, %33, %cst_33 [2] : vector<2x8x8xf32> to vector<2x8xf32>
    %35 = vector.shape_cast %34 : vector<2x8xf32> to vector<2x8x1xf32>
    %36 = tpu.reciprocal %35 {approx = true} : vector<2x8x1xf32> -> vector<2x8x1xf32>
    %37 = vector.broadcast %36 : vector<2x8x1xf32> to vector<2x8x8xf32>
    %38 = arith.mulf %33, %37 : vector<2x8x8xf32>
    "tpu.trace_start"() <{level = 10 : i32, message = "bqk,bkd->bqd"}> : () -> ()
    %cst_34 = arith.constant dense<0.000000e+00> : vector<2x8x8xf32>
    %39 = tpu.matmul %38, %27, %cst_34 {dimension_numbers = #tpu.dot_dimension_numbers<[2], [1], [1], [2], [0, 0, 0, 1, 1, 2], [0], [0]>} : vector<2x8x8xf32>, vector<2x8x8xf32>, vector<2x8x8xf32> -> vector<2x8x8xf32>
    "tpu.trace_stop"() : () -> ()
    %40 = vector.shape_cast %39 : vector<2x8x8xf32> to vector<16x8xf32>
    %41 = vector.extract_strided_slice %8 {offsets = [0, 0], sizes = [8, 32], strides = [1, 1]} : vector<32x32xf32> to vector<8x32xf32>
    %cst_35 = arith.constant dense<0.000000e+00> : vector<16x32xf32>
    %42 = tpu.matmul %40, %41, %cst_35 {dimension_numbers = #tpu.dot_dimension_numbers<[1], [0], [0], [1], [0, 0, 1, 1], [], []>} : vector<16x8xf32>, vector<8x32xf32>, vector<16x32xf32> -> vector<16x32xf32>
    %43 = arith.addf %21, %42 : vector<16x32xf32>
    %44 = vector.extract_strided_slice %20 {offsets = [0, 8], sizes = [16, 8], strides = [1, 1]} : vector<16x96xf32> to vector<16x8xf32>
    %45 = vector.shape_cast %44 : vector<16x8xf32> to vector<2x8x8xf32>
    %46 = vector.extract_strided_slice %20 {offsets = [0, 40], sizes = [16, 8], strides = [1, 1]} : vector<16x96xf32> to vector<16x8xf32>
    %47 = vector.shape_cast %46 : vector<16x8xf32> to vector<2x8x8xf32>
    %48 = vector.extract_strided_slice %20 {offsets = [0, 72], sizes = [16, 8], strides = [1, 1]} : vector<16x96xf32> to vector<16x8xf32>
    %49 = vector.shape_cast %48 : vector<16x8xf32> to vector<2x8x8xf32>
    "tpu.trace_start"() <{level = 10 : i32, message = "bqd,bkd->bqk"}> : () -> ()
    %cst_36 = arith.constant dense<0.000000e+00> : vector<2x8x8xf32>
    %50 = tpu.matmul %45, %47, %cst_36 {dimension_numbers = #tpu.dot_dimension_numbers<[2], [2], [1], [1], [0, 0, 0, 1, 1, 1], [0], [0]>} : vector<2x8x8xf32>, vector<2x8x8xf32>, vector<2x8x8xf32> -> vector<2x8x8xf32>
    "tpu.trace_stop"() : () -> ()
    %cst_37 = arith.constant dense<0xFF800000> : vector<2x8xf32>
    %51 = vector.multi_reduction <maximumf>, %50, %cst_37 [2] : vector<2x8x8xf32> to vector<2x8xf32>
    %52 = vector.shape_cast %51 : vector<2x8xf32> to vector<2x8x1xf32>
    %53 = vector.broadcast %52 : vector<2x8x1xf32> to vector<2x8x8xf32>
    %54 = arith.subf %50, %53 : vector<2x8x8xf32>
    %55 = math.exp %54 : vector<2x8x8xf32>
    %cst_38 = arith.constant dense<0.000000e+00> : vector<2x8xf32>
    %56 = vector.multi_reduction <add>, %55, %cst_38 [2] : vector<2x8x8xf32> to vector<2x8xf32>
    %57 = vector.shape_cast %56 : vector<2x8xf32> to vector<2x8x1xf32>
    %58 = tpu.reciprocal %57 {approx = true} : vector<2x8x1xf32> -> vector<2x8x1xf32>
    %59 = vector.broadcast %58 : vector<2x8x1xf32> to vector<2x8x8xf32>
    %60 = arith.mulf %55, %59 : vector<2x8x8xf32>
    "tpu.trace_start"() <{level = 10 : i32, message = "bqk,bkd->bqd"}> : () -> ()
    %cst_39 = arith.constant dense<0.000000e+00> : vector<2x8x8xf32>
    %61 = tpu.matmul %60, %49, %cst_39 {dimension_numbers = #tpu.dot_dimension_numbers<[2], [1], [1], [2], [0, 0, 0, 1, 1, 2], [0], [0]>} : vector<2x8x8xf32>, vector<2x8x8xf32>, vector<2x8x8xf32> -> vector<2x8x8xf32>
    "tpu.trace_stop"() : () -> ()
    %62 = vector.shape_cast %61 : vector<2x8x8xf32> to vector<16x8xf32>
    %63 = vector.extract_strided_slice %8 {offsets = [8, 0], sizes = [8, 32], strides = [1, 1]} : vector<32x32xf32> to vector<8x32xf32>
    %cst_40 = arith.constant dense<0.000000e+00> : vector<16x32xf32>
    %64 = tpu.matmul %62, %63, %cst_40 {dimension_numbers = #tpu.dot_dimension_numbers<[1], [0], [0], [1], [0, 0, 1, 1], [], []>} : vector<16x8xf32>, vector<8x32xf32>, vector<16x32xf32> -> vector<16x32xf32>
    %65 = arith.addf %43, %64 : vector<16x32xf32>
    %66 = vector.extract_strided_slice %20 {offsets = [0, 16], sizes = [16, 8], strides = [1, 1]} : vector<16x96xf32> to vector<16x8xf32>
    %67 = vector.shape_cast %66 : vector<16x8xf32> to vector<2x8x8xf32>
    %68 = vector.extract_strided_slice %20 {offsets = [0, 48], sizes = [16, 8], strides = [1, 1]} : vector<16x96xf32> to vector<16x8xf32>
    %69 = vector.shape_cast %68 : vector<16x8xf32> to vector<2x8x8xf32>
    %70 = vector.extract_strided_slice %20 {offsets = [0, 80], sizes = [16, 8], strides = [1, 1]} : vector<16x96xf32> to vector<16x8xf32>
    %71 = vector.shape_cast %70 : vector<16x8xf32> to vector<2x8x8xf32>
    "tpu.trace_start"() <{level = 10 : i32, message = "bqd,bkd->bqk"}> : () -> ()
    %cst_41 = arith.constant dense<0.000000e+00> : vector<2x8x8xf32>
    %72 = tpu.matmul %67, %69, %cst_41 {dimension_numbers = #tpu.dot_dimension_numbers<[2], [2], [1], [1], [0, 0, 0, 1, 1, 1], [0], [0]>} : vector<2x8x8xf32>, vector<2x8x8xf32>, vector<2x8x8xf32> -> vector<2x8x8xf32>
    "tpu.trace_stop"() : () -> ()
    %cst_42 = arith.constant dense<0xFF800000> : vector<2x8xf32>
    %73 = vector.multi_reduction <maximumf>, %72, %cst_42 [2] : vector<2x8x8xf32> to vector<2x8xf32>
    %74 = vector.shape_cast %73 : vector<2x8xf32> to vector<2x8x1xf32>
    %75 = vector.broadcast %74 : vector<2x8x1xf32> to vector<2x8x8xf32>
    %76 = arith.subf %72, %75 : vector<2x8x8xf32>
    %77 = math.exp %76 : vector<2x8x8xf32>
    %cst_43 = arith.constant dense<0.000000e+00> : vector<2x8xf32>
    %78 = vector.multi_reduction <add>, %77, %cst_43 [2] : vector<2x8x8xf32> to vector<2x8xf32>
    %79 = vector.shape_cast %78 : vector<2x8xf32> to vector<2x8x1xf32>
    %80 = tpu.reciprocal %79 {approx = true} : vector<2x8x1xf32> -> vector<2x8x1xf32>
    %81 = vector.broadcast %80 : vector<2x8x1xf32> to vector<2x8x8xf32>
    %82 = arith.mulf %77, %81 : vector<2x8x8xf32>
    "tpu.trace_start"() <{level = 10 : i32, message = "bqk,bkd->bqd"}> : () -> ()
    %cst_44 = arith.constant dense<0.000000e+00> : vector<2x8x8xf32>
    %83 = tpu.matmul %82, %71, %cst_44 {dimension_numbers = #tpu.dot_dimension_numbers<[2], [1], [1], [2], [0, 0, 0, 1, 1, 2], [0], [0]>} : vector<2x8x8xf32>, vector<2x8x8xf32>, vector<2x8x8xf32> -> vector<2x8x8xf32>
    "tpu.trace_stop"() : () -> ()
    %84 = vector.shape_cast %83 : vector<2x8x8xf32> to vector<16x8xf32>
    %85 = vector.extract_strided_slice %8 {offsets = [16, 0], sizes = [8, 32], strides = [1, 1]} : vector<32x32xf32> to vector<8x32xf32>
    %cst_45 = arith.constant dense<0.000000e+00> : vector<16x32xf32>
    %86 = tpu.matmul %84, %85, %cst_45 {dimension_numbers = #tpu.dot_dimension_numbers<[1], [0], [0], [1], [0, 0, 1, 1], [], []>} : vector<16x8xf32>, vector<8x32xf32>, vector<16x32xf32> -> vector<16x32xf32>
    %87 = arith.addf %65, %86 : vector<16x32xf32>
    %88 = vector.extract_strided_slice %20 {offsets = [0, 24], sizes = [16, 8], strides = [1, 1]} : vector<16x96xf32> to vector<16x8xf32>
    %89 = vector.shape_cast %88 : vector<16x8xf32> to vector<2x8x8xf32>
    %90 = vector.extract_strided_slice %20 {offsets = [0, 56], sizes = [16, 8], strides = [1, 1]} : vector<16x96xf32> to vector<16x8xf32>
    %91 = vector.shape_cast %90 : vector<16x8xf32> to vector<2x8x8xf32>
    %92 = vector.extract_strided_slice %20 {offsets = [0, 88], sizes = [16, 8], strides = [1, 1]} : vector<16x96xf32> to vector<16x8xf32>
    %93 = vector.shape_cast %92 : vector<16x8xf32> to vector<2x8x8xf32>
    "tpu.trace_start"() <{level = 10 : i32, message = "bqd,bkd->bqk"}> : () -> ()
    %cst_46 = arith.constant dense<0.000000e+00> : vector<2x8x8xf32>
    %94 = tpu.matmul %89, %91, %cst_46 {dimension_numbers = #tpu.dot_dimension_numbers<[2], [2], [1], [1], [0, 0, 0, 1, 1, 1], [0], [0]>} : vector<2x8x8xf32>, vector<2x8x8xf32>, vector<2x8x8xf32> -> vector<2x8x8xf32>
    "tpu.trace_stop"() : () -> ()
    %cst_47 = arith.constant dense<0xFF800000> : vector<2x8xf32>
    %95 = vector.multi_reduction <maximumf>, %94, %cst_47 [2] : vector<2x8x8xf32> to vector<2x8xf32>
    %96 = vector.shape_cast %95 : vector<2x8xf32> to vector<2x8x1xf32>
    %97 = vector.broadcast %96 : vector<2x8x1xf32> to vector<2x8x8xf32>
    %98 = arith.subf %94, %97 : vector<2x8x8xf32>
    %99 = math.exp %98 : vector<2x8x8xf32>
    %cst_48 = arith.constant dense<0.000000e+00> : vector<2x8xf32>
    %100 = vector.multi_reduction <add>, %99, %cst_48 [2] : vector<2x8x8xf32> to vector<2x8xf32>
    %101 = vector.shape_cast %100 : vector<2x8xf32> to vector<2x8x1xf32>
    %102 = tpu.reciprocal %101 {approx = true} : vector<2x8x1xf32> -> vector<2x8x1xf32>
    %103 = vector.broadcast %102 : vector<2x8x1xf32> to vector<2x8x8xf32>
    %104 = arith.mulf %99, %103 : vector<2x8x8xf32>
    "tpu.trace_start"() <{level = 10 : i32, message = "bqk,bkd->bqd"}> : () -> ()
    %cst_49 = arith.constant dense<0.000000e+00> : vector<2x8x8xf32>
    %105 = tpu.matmul %104, %93, %cst_49 {dimension_numbers = #tpu.dot_dimension_numbers<[2], [1], [1], [2], [0, 0, 0, 1, 1, 2], [0], [0]>} : vector<2x8x8xf32>, vector<2x8x8xf32>, vector<2x8x8xf32> -> vector<2x8x8xf32>
    "tpu.trace_stop"() : () -> ()
    %106 = vector.shape_cast %105 : vector<2x8x8xf32> to vector<16x8xf32>
    %107 = vector.extract_strided_slice %8 {offsets = [24, 0], sizes = [8, 32], strides = [1, 1]} : vector<32x32xf32> to vector<8x32xf32>
    %cst_50 = arith.constant dense<0.000000e+00> : vector<16x32xf32>
    %108 = tpu.matmul %106, %107, %cst_50 {dimension_numbers = #tpu.dot_dimension_numbers<[1], [0], [0], [1], [0, 0, 1, 1], [], []>} : vector<16x8xf32>, vector<8x32xf32>, vector<16x32xf32> -> vector<16x32xf32>
    %109 = arith.addf %87, %108 : vector<16x32xf32>
    %110 = vector.broadcast %9 : vector<1x32xf32> to vector<16x32xf32>
    %111 = arith.addf %109, %110 : vector<16x32xf32>
    %112 = arith.addf %5, %111 : vector<16x32xf32>
    %cst_51 = arith.constant dense<0.000000e+00> : vector<16xf32>
    %113 = vector.multi_reduction <add>, %112, %cst_51 [1] : vector<16x32xf32> to vector<16xf32>
    %114 = vector.shape_cast %113 : vector<16xf32> to vector<16x1xf32>
    %cst_52 = arith.constant 3.200000e+01 : f32
    %115 = vector.broadcast %cst_52 : f32 to vector<16x1xf32>
    %116 = arith.divf %114, %115 : vector<16x1xf32>
    %117 = vector.broadcast %116 : vector<16x1xf32> to vector<16x32xf32>
    %118 = arith.subf %112, %117 : vector<16x32xf32>
    %119 = arith.mulf %118, %118 : vector<16x32xf32>
    %cst_53 = arith.constant dense<0.000000e+00> : vector<16xf32>
    %120 = vector.multi_reduction <add>, %119, %cst_53 [1] : vector<16x32xf32> to vector<16xf32>
    %121 = vector.shape_cast %120 : vector<16xf32> to vector<16x1xf32>
    %cst_54 = arith.constant 3.200000e+01 : f32
    %122 = vector.broadcast %cst_54 : f32 to vector<16x1xf32>
    %123 = arith.divf %121, %122 : vector<16x1xf32>
    %124 = vector.broadcast %116 : vector<16x1xf32> to vector<16x32xf32>
    %125 = arith.subf %112, %124 : vector<16x32xf32>
    %cst_55 = arith.constant 9.99999996E-13 : f32
    %126 = vector.broadcast %cst_55 : f32 to vector<16x1xf32>
    %127 = arith.addf %123, %126 : vector<16x1xf32>
    %128 = math.rsqrt %127 : vector<16x1xf32>
    %129 = vector.broadcast %128 : vector<16x1xf32> to vector<16x32xf32>
    %130 = arith.mulf %125, %129 : vector<16x32xf32>
    %131 = vector.broadcast %10 : vector<1x32xf32> to vector<16x32xf32>
    %132 = arith.mulf %130, %131 : vector<16x32xf32>
    %133 = vector.broadcast %11 : vector<1x32xf32> to vector<16x32xf32>
    %134 = arith.addf %132, %133 : vector<16x32xf32>
    %cst_56 = arith.constant dense<0.000000e+00> : vector<16x64xf32>
    %135 = tpu.matmul %134, %12, %cst_56 {dimension_numbers = #tpu.dot_dimension_numbers<[1], [0], [0], [1], [0, 0, 1, 1], [], []>} : vector<16x32xf32>, vector<32x64xf32>, vector<16x64xf32> -> vector<16x64xf32>
    %136 = vector.broadcast %13 : vector<1x64xf32> to vector<16x64xf32>
    %137 = arith.addf %135, %136 : vector<16x64xf32>
    %cst_57 = arith.constant 5.000000e-01 : f32
    %138 = vector.broadcast %cst_57 : f32 to vector<16x64xf32>
    %139 = arith.mulf %138, %137 : vector<16x64xf32>
    %cst_58 = arith.constant 4.471500e-02 : f32
    %140 = vector.broadcast %cst_58 : f32 to vector<16x64xf32>
    %141 = arith.mulf %140, %137 : vector<16x64xf32>
    %142 = arith.mulf %141, %137 : vector<16x64xf32>
    %143 = arith.mulf %142, %137 : vector<16x64xf32>
    %144 = arith.addf %137, %143 : vector<16x64xf32>
    %cst_59 = arith.constant 0.797884583 : f32
    %145 = vector.broadcast %cst_59 : f32 to vector<16x64xf32>
    %146 = arith.mulf %145, %144 : vector<16x64xf32>
    %147 = math.tanh %146 : vector<16x64xf32>
    %cst_60 = arith.constant 1.000000e+00 : f32
    %148 = vector.broadcast %cst_60 : f32 to vector<16x64xf32>
    %149 = arith.addf %148, %147 : vector<16x64xf32>
    %150 = arith.mulf %139, %149 : vector<16x64xf32>
    %cst_61 = arith.constant dense<0.000000e+00> : vector<16x32xf32>
    %151 = tpu.matmul %150, %14, %cst_61 {dimension_numbers = #tpu.dot_dimension_numbers<[1], [0], [0], [1], [0, 0, 1, 1], [], []>} : vector<16x64xf32>, vector<64x32xf32>, vector<16x32xf32> -> vector<16x32xf32>
    %152 = vector.broadcast %15 : vector<1x32xf32> to vector<16x32xf32>
    %153 = arith.addf %151, %152 : vector<16x32xf32>
    %154 = arith.addf %153, %134 : vector<16x32xf32>
    %cst_62 = arith.constant dense<0.000000e+00> : vector<16xf32>
    %155 = vector.multi_reduction <add>, %154, %cst_62 [1] : vector<16x32xf32> to vector<16xf32>
    %156 = vector.shape_cast %155 : vector<16xf32> to vector<16x1xf32>
    %cst_63 = arith.constant 3.200000e+01 : f32
    %157 = vector.broadcast %cst_63 : f32 to vector<16x1xf32>
    %158 = arith.divf %156, %157 : vector<16x1xf32>
    %159 = vector.broadcast %158 : vector<16x1xf32> to vector<16x32xf32>
    %160 = arith.subf %154, %159 : vector<16x32xf32>
    %161 = arith.mulf %160, %160 : vector<16x32xf32>
    %cst_64 = arith.constant dense<0.000000e+00> : vector<16xf32>
    %162 = vector.multi_reduction <add>, %161, %cst_64 [1] : vector<16x32xf32> to vector<16xf32>
    %163 = vector.shape_cast %162 : vector<16xf32> to vector<16x1xf32>
    %cst_65 = arith.constant 3.200000e+01 : f32
    %164 = vector.broadcast %cst_65 : f32 to vector<16x1xf32>
    %165 = arith.divf %163, %164 : vector<16x1xf32>
    %166 = vector.broadcast %158 : vector<16x1xf32> to vector<16x32xf32>
    %167 = arith.subf %154, %166 : vector<16x32xf32>
    %cst_66 = arith.constant 9.99999996E-13 : f32
    %168 = vector.broadcast %cst_66 : f32 to vector<16x1xf32>
    %169 = arith.addf %165, %168 : vector<16x1xf32>
    %170 = math.rsqrt %169 : vector<16x1xf32>
    %171 = vector.broadcast %170 : vector<16x1xf32> to vector<16x32xf32>
    %172 = arith.mulf %167, %171 : vector<16x32xf32>
    %173 = vector.broadcast %16 : vector<1x32xf32> to vector<16x32xf32>
    %174 = arith.mulf %172, %173 : vector<16x32xf32>
    %175 = vector.broadcast %17 : vector<1x32xf32> to vector<16x32xf32>
    %176 = arith.addf %174, %175 : vector<16x32xf32>
    %c1_i32 = arith.constant 1 : i32
    %cst_67 = arith.constant dense<0.000000e+00> : vector<16x96xf32>
    %177 = tpu.matmul %176, %6, %cst_67 {dimension_numbers = #tpu.dot_dimension_numbers<[1], [0], [0], [1], [0, 0, 1, 1], [], []>} : vector<16x32xf32>, vector<32x96xf32>, vector<16x96xf32> -> vector<16x96xf32>
    %178 = vector.broadcast %7 : vector<1x96xf32> to vector<16x96xf32>
    %179 = arith.addf %177, %178 : vector<16x96xf32>
    %cst_68 = arith.constant 0.000000e+00 : f32
    %180 = vector.broadcast %cst_68 : f32 to vector<16x32xf32>
    %181 = vector.extract_strided_slice %179 {offsets = [0, 0], sizes = [16, 8], strides = [1, 1]} : vector<16x96xf32> to vector<16x8xf32>
    %182 = vector.shape_cast %181 : vector<16x8xf32> to vector<2x8x8xf32>
    %183 = vector.extract_strided_slice %179 {offsets = [0, 32], sizes = [16, 8], strides = [1, 1]} : vector<16x96xf32> to vector<16x8xf32>
    %184 = vector.shape_cast %183 : vector<16x8xf32> to vector<2x8x8xf32>
    %185 = vector.extract_strided_slice %179 {offsets = [0, 64], sizes = [16, 8], strides = [1, 1]} : vector<16x96xf32> to vector<16x8xf32>
    %186 = vector.shape_cast %185 : vector<16x8xf32> to vector<2x8x8xf32>
    "tpu.trace_start"() <{level = 10 : i32, message = "bqd,bkd->bqk"}> : () -> ()
    %cst_69 = arith.constant dense<0.000000e+00> : vector<2x8x8xf32>
    %187 = tpu.matmul %182, %184, %cst_69 {dimension_numbers = #tpu.dot_dimension_numbers<[2], [2], [1], [1], [0, 0, 0, 1, 1, 1], [0], [0]>} : vector<2x8x8xf32>, vector<2x8x8xf32>, vector<2x8x8xf32> -> vector<2x8x8xf32>
    "tpu.trace_stop"() : () -> ()
    %cst_70 = arith.constant dense<0xFF800000> : vector<2x8xf32>
    %188 = vector.multi_reduction <maximumf>, %187, %cst_70 [2] : vector<2x8x8xf32> to vector<2x8xf32>
    %189 = vector.shape_cast %188 : vector<2x8xf32> to vector<2x8x1xf32>
    %190 = vector.broadcast %189 : vector<2x8x1xf32> to vector<2x8x8xf32>
    %191 = arith.subf %187, %190 : vector<2x8x8xf32>
    %192 = math.exp %191 : vector<2x8x8xf32>
    %cst_71 = arith.constant dense<0.000000e+00> : vector<2x8xf32>
    %193 = vector.multi_reduction <add>, %192, %cst_71 [2] : vector<2x8x8xf32> to vector<2x8xf32>
    %194 = vector.shape_cast %193 : vector<2x8xf32> to vector<2x8x1xf32>
    %195 = tpu.reciprocal %194 {approx = true} : vector<2x8x1xf32> -> vector<2x8x1xf32>
    %196 = vector.broadcast %195 : vector<2x8x1xf32> to vector<2x8x8xf32>
    %197 = arith.mulf %192, %196 : vector<2x8x8xf32>
    "tpu.trace_start"() <{level = 10 : i32, message = "bqk,bkd->bqd"}> : () -> ()
    %cst_72 = arith.constant dense<0.000000e+00> : vector<2x8x8xf32>
    %198 = tpu.matmul %197, %186, %cst_72 {dimension_numbers = #tpu.dot_dimension_numbers<[2], [1], [1], [2], [0, 0, 0, 1, 1, 2], [0], [0]>} : vector<2x8x8xf32>, vector<2x8x8xf32>, vector<2x8x8xf32> -> vector<2x8x8xf32>
    "tpu.trace_stop"() : () -> ()
    %199 = vector.shape_cast %198 : vector<2x8x8xf32> to vector<16x8xf32>
    %200 = vector.extract_strided_slice %8 {offsets = [0, 0], sizes = [8, 32], strides = [1, 1]} : vector<32x32xf32> to vector<8x32xf32>
    %cst_73 = arith.constant dense<0.000000e+00> : vector<16x32xf32>
    %201 = tpu.matmul %199, %200, %cst_73 {dimension_numbers = #tpu.dot_dimension_numbers<[1], [0], [0], [1], [0, 0, 1, 1], [], []>} : vector<16x8xf32>, vector<8x32xf32>, vector<16x32xf32> -> vector<16x32xf32>
    %202 = arith.addf %180, %201 : vector<16x32xf32>
    %203 = vector.extract_strided_slice %179 {offsets = [0, 8], sizes = [16, 8], strides = [1, 1]} : vector<16x96xf32> to vector<16x8xf32>
    %204 = vector.shape_cast %203 : vector<16x8xf32> to vector<2x8x8xf32>
    %205 = vector.extract_strided_slice %179 {offsets = [0, 40], sizes = [16, 8], strides = [1, 1]} : vector<16x96xf32> to vector<16x8xf32>
    %206 = vector.shape_cast %205 : vector<16x8xf32> to vector<2x8x8xf32>
    %207 = vector.extract_strided_slice %179 {offsets = [0, 72], sizes = [16, 8], strides = [1, 1]} : vector<16x96xf32> to vector<16x8xf32>
    %208 = vector.shape_cast %207 : vector<16x8xf32> to vector<2x8x8xf32>
    "tpu.trace_start"() <{level = 10 : i32, message = "bqd,bkd->bqk"}> : () -> ()
    %cst_74 = arith.constant dense<0.000000e+00> : vector<2x8x8xf32>
    %209 = tpu.matmul %204, %206, %cst_74 {dimension_numbers = #tpu.dot_dimension_numbers<[2], [2], [1], [1], [0, 0, 0, 1, 1, 1], [0], [0]>} : vector<2x8x8xf32>, vector<2x8x8xf32>, vector<2x8x8xf32> -> vector<2x8x8xf32>
    "tpu.trace_stop"() : () -> ()
    %cst_75 = arith.constant dense<0xFF800000> : vector<2x8xf32>
    %210 = vector.multi_reduction <maximumf>, %209, %cst_75 [2] : vector<2x8x8xf32> to vector<2x8xf32>
    %211 = vector.shape_cast %210 : vector<2x8xf32> to vector<2x8x1xf32>
    %212 = vector.broadcast %211 : vector<2x8x1xf32> to vector<2x8x8xf32>
    %213 = arith.subf %209, %212 : vector<2x8x8xf32>
    %214 = math.exp %213 : vector<2x8x8xf32>
    %cst_76 = arith.constant dense<0.000000e+00> : vector<2x8xf32>
    %215 = vector.multi_reduction <add>, %214, %cst_76 [2] : vector<2x8x8xf32> to vector<2x8xf32>
    %216 = vector.shape_cast %215 : vector<2x8xf32> to vector<2x8x1xf32>
    %217 = tpu.reciprocal %216 {approx = true} : vector<2x8x1xf32> -> vector<2x8x1xf32>
    %218 = vector.broadcast %217 : vector<2x8x1xf32> to vector<2x8x8xf32>
    %219 = arith.mulf %214, %218 : vector<2x8x8xf32>
    "tpu.trace_start"() <{level = 10 : i32, message = "bqk,bkd->bqd"}> : () -> ()
    %cst_77 = arith.constant dense<0.000000e+00> : vector<2x8x8xf32>
    %220 = tpu.matmul %219, %208, %cst_77 {dimension_numbers = #tpu.dot_dimension_numbers<[2], [1], [1], [2], [0, 0, 0, 1, 1, 2], [0], [0]>} : vector<2x8x8xf32>, vector<2x8x8xf32>, vector<2x8x8xf32> -> vector<2x8x8xf32>
    "tpu.trace_stop"() : () -> ()
    %221 = vector.shape_cast %220 : vector<2x8x8xf32> to vector<16x8xf32>
    %222 = vector.extract_strided_slice %8 {offsets = [8, 0], sizes = [8, 32], strides = [1, 1]} : vector<32x32xf32> to vector<8x32xf32>
    %cst_78 = arith.constant dense<0.000000e+00> : vector<16x32xf32>
    %223 = tpu.matmul %221, %222, %cst_78 {dimension_numbers = #tpu.dot_dimension_numbers<[1], [0], [0], [1], [0, 0, 1, 1], [], []>} : vector<16x8xf32>, vector<8x32xf32>, vector<16x32xf32> -> vector<16x32xf32>
    %224 = arith.addf %202, %223 : vector<16x32xf32>
    %225 = vector.extract_strided_slice %179 {offsets = [0, 16], sizes = [16, 8], strides = [1, 1]} : vector<16x96xf32> to vector<16x8xf32>
    %226 = vector.shape_cast %225 : vector<16x8xf32> to vector<2x8x8xf32>
    %227 = vector.extract_strided_slice %179 {offsets = [0, 48], sizes = [16, 8], strides = [1, 1]} : vector<16x96xf32> to vector<16x8xf32>
    %228 = vector.shape_cast %227 : vector<16x8xf32> to vector<2x8x8xf32>
    %229 = vector.extract_strided_slice %179 {offsets = [0, 80], sizes = [16, 8], strides = [1, 1]} : vector<16x96xf32> to vector<16x8xf32>
    %230 = vector.shape_cast %229 : vector<16x8xf32> to vector<2x8x8xf32>
    "tpu.trace_start"() <{level = 10 : i32, message = "bqd,bkd->bqk"}> : () -> ()
    %cst_79 = arith.constant dense<0.000000e+00> : vector<2x8x8xf32>
    %231 = tpu.matmul %226, %228, %cst_79 {dimension_numbers = #tpu.dot_dimension_numbers<[2], [2], [1], [1], [0, 0, 0, 1, 1, 1], [0], [0]>} : vector<2x8x8xf32>, vector<2x8x8xf32>, vector<2x8x8xf32> -> vector<2x8x8xf32>
    "tpu.trace_stop"() : () -> ()
    %cst_80 = arith.constant dense<0xFF800000> : vector<2x8xf32>
    %232 = vector.multi_reduction <maximumf>, %231, %cst_80 [2] : vector<2x8x8xf32> to vector<2x8xf32>
    %233 = vector.shape_cast %232 : vector<2x8xf32> to vector<2x8x1xf32>
    %234 = vector.broadcast %233 : vector<2x8x1xf32> to vector<2x8x8xf32>
    %235 = arith.subf %231, %234 : vector<2x8x8xf32>
    %236 = math.exp %235 : vector<2x8x8xf32>
    %cst_81 = arith.constant dense<0.000000e+00> : vector<2x8xf32>
    %237 = vector.multi_reduction <add>, %236, %cst_81 [2] : vector<2x8x8xf32> to vector<2x8xf32>
    %238 = vector.shape_cast %237 : vector<2x8xf32> to vector<2x8x1xf32>
    %239 = tpu.reciprocal %238 {approx = true} : vector<2x8x1xf32> -> vector<2x8x1xf32>
    %240 = vector.broadcast %239 : vector<2x8x1xf32> to vector<2x8x8xf32>
    %241 = arith.mulf %236, %240 : vector<2x8x8xf32>
    "tpu.trace_start"() <{level = 10 : i32, message = "bqk,bkd->bqd"}> : () -> ()
    %cst_82 = arith.constant dense<0.000000e+00> : vector<2x8x8xf32>
    %242 = tpu.matmul %241, %230, %cst_82 {dimension_numbers = #tpu.dot_dimension_numbers<[2], [1], [1], [2], [0, 0, 0, 1, 1, 2], [0], [0]>} : vector<2x8x8xf32>, vector<2x8x8xf32>, vector<2x8x8xf32> -> vector<2x8x8xf32>
    "tpu.trace_stop"() : () -> ()
    %243 = vector.shape_cast %242 : vector<2x8x8xf32> to vector<16x8xf32>
    %244 = vector.extract_strided_slice %8 {offsets = [16, 0], sizes = [8, 32], strides = [1, 1]} : vector<32x32xf32> to vector<8x32xf32>
    %cst_83 = arith.constant dense<0.000000e+00> : vector<16x32xf32>
    %245 = tpu.matmul %243, %244, %cst_83 {dimension_numbers = #tpu.dot_dimension_numbers<[1], [0], [0], [1], [0, 0, 1, 1], [], []>} : vector<16x8xf32>, vector<8x32xf32>, vector<16x32xf32> -> vector<16x32xf32>
    %246 = arith.addf %224, %245 : vector<16x32xf32>
    %247 = vector.extract_strided_slice %179 {offsets = [0, 24], sizes = [16, 8], strides = [1, 1]} : vector<16x96xf32> to vector<16x8xf32>
    %248 = vector.shape_cast %247 : vector<16x8xf32> to vector<2x8x8xf32>
    %249 = vector.extract_strided_slice %179 {offsets = [0, 56], sizes = [16, 8], strides = [1, 1]} : vector<16x96xf32> to vector<16x8xf32>
    %250 = vector.shape_cast %249 : vector<16x8xf32> to vector<2x8x8xf32>
    %251 = vector.extract_strided_slice %179 {offsets = [0, 88], sizes = [16, 8], strides = [1, 1]} : vector<16x96xf32> to vector<16x8xf32>
    %252 = vector.shape_cast %251 : vector<16x8xf32> to vector<2x8x8xf32>
    "tpu.trace_start"() <{level = 10 : i32, message = "bqd,bkd->bqk"}> : () -> ()
    %cst_84 = arith.constant dense<0.000000e+00> : vector<2x8x8xf32>
    %253 = tpu.matmul %248, %250, %cst_84 {dimension_numbers = #tpu.dot_dimension_numbers<[2], [2], [1], [1], [0, 0, 0, 1, 1, 1], [0], [0]>} : vector<2x8x8xf32>, vector<2x8x8xf32>, vector<2x8x8xf32> -> vector<2x8x8xf32>
    "tpu.trace_stop"() : () -> ()
    %cst_85 = arith.constant dense<0xFF800000> : vector<2x8xf32>
    %254 = vector.multi_reduction <maximumf>, %253, %cst_85 [2] : vector<2x8x8xf32> to vector<2x8xf32>
    %255 = vector.shape_cast %254 : vector<2x8xf32> to vector<2x8x1xf32>
    %256 = vector.broadcast %255 : vector<2x8x1xf32> to vector<2x8x8xf32>
    %257 = arith.subf %253, %256 : vector<2x8x8xf32>
    %258 = math.exp %257 : vector<2x8x8xf32>
    %cst_86 = arith.constant dense<0.000000e+00> : vector<2x8xf32>
    %259 = vector.multi_reduction <add>, %258, %cst_86 [2] : vector<2x8x8xf32> to vector<2x8xf32>
    %260 = vector.shape_cast %259 : vector<2x8xf32> to vector<2x8x1xf32>
    %261 = tpu.reciprocal %260 {approx = true} : vector<2x8x1xf32> -> vector<2x8x1xf32>
    %262 = vector.broadcast %261 : vector<2x8x1xf32> to vector<2x8x8xf32>
    %263 = arith.mulf %258, %262 : vector<2x8x8xf32>
    "tpu.trace_start"() <{level = 10 : i32, message = "bqk,bkd->bqd"}> : () -> ()
    %cst_87 = arith.constant dense<0.000000e+00> : vector<2x8x8xf32>
    %264 = tpu.matmul %263, %252, %cst_87 {dimension_numbers = #tpu.dot_dimension_numbers<[2], [1], [1], [2], [0, 0, 0, 1, 1, 2], [0], [0]>} : vector<2x8x8xf32>, vector<2x8x8xf32>, vector<2x8x8xf32> -> vector<2x8x8xf32>
    "tpu.trace_stop"() : () -> ()
    %265 = vector.shape_cast %264 : vector<2x8x8xf32> to vector<16x8xf32>
    %266 = vector.extract_strided_slice %8 {offsets = [24, 0], sizes = [8, 32], strides = [1, 1]} : vector<32x32xf32> to vector<8x32xf32>
    %cst_88 = arith.constant dense<0.000000e+00> : vector<16x32xf32>
    %267 = tpu.matmul %265, %266, %cst_88 {dimension_numbers = #tpu.dot_dimension_numbers<[1], [0], [0], [1], [0, 0, 1, 1], [], []>} : vector<16x8xf32>, vector<8x32xf32>, vector<16x32xf32> -> vector<16x32xf32>
    %268 = arith.addf %246, %267 : vector<16x32xf32>
    %269 = vector.broadcast %9 : vector<1x32xf32> to vector<16x32xf32>
    %270 = arith.addf %268, %269 : vector<16x32xf32>
    %271 = arith.addf %176, %270 : vector<16x32xf32>
    %cst_89 = arith.constant dense<0.000000e+00> : vector<16xf32>
    %272 = vector.multi_reduction <add>, %271, %cst_89 [1] : vector<16x32xf32> to vector<16xf32>
    %273 = vector.shape_cast %272 : vector<16xf32> to vector<16x1xf32>
    %cst_90 = arith.constant 3.200000e+01 : f32
    %274 = vector.broadcast %cst_90 : f32 to vector<16x1xf32>
    %275 = arith.divf %273, %274 : vector<16x1xf32>
    %276 = vector.broadcast %275 : vector<16x1xf32> to vector<16x32xf32>
    %277 = arith.subf %271, %276 : vector<16x32xf32>
    %278 = arith.mulf %277, %277 : vector<16x32xf32>
    %cst_91 = arith.constant dense<0.000000e+00> : vector<16xf32>
    %279 = vector.multi_reduction <add>, %278, %cst_91 [1] : vector<16x32xf32> to vector<16xf32>
    %280 = vector.shape_cast %279 : vector<16xf32> to vector<16x1xf32>
    %cst_92 = arith.constant 3.200000e+01 : f32
    %281 = vector.broadcast %cst_92 : f32 to vector<16x1xf32>
    %282 = arith.divf %280, %281 : vector<16x1xf32>
    %283 = vector.broadcast %275 : vector<16x1xf32> to vector<16x32xf32>
    %284 = arith.subf %271, %283 : vector<16x32xf32>
    %cst_93 = arith.constant 9.99999996E-13 : f32
    %285 = vector.broadcast %cst_93 : f32 to vector<16x1xf32>
    %286 = arith.addf %282, %285 : vector<16x1xf32>
    %287 = math.rsqrt %286 : vector<16x1xf32>
    %288 = vector.broadcast %287 : vector<16x1xf32> to vector<16x32xf32>
    %289 = arith.mulf %284, %288 : vector<16x32xf32>
    %290 = vector.broadcast %10 : vector<1x32xf32> to vector<16x32xf32>
    %291 = arith.mulf %289, %290 : vector<16x32xf32>
    %292 = vector.broadcast %11 : vector<1x32xf32> to vector<16x32xf32>
    %293 = arith.addf %291, %292 : vector<16x32xf32>
    %cst_94 = arith.constant dense<0.000000e+00> : vector<16x64xf32>
    %294 = tpu.matmul %293, %12, %cst_94 {dimension_numbers = #tpu.dot_dimension_numbers<[1], [0], [0], [1], [0, 0, 1, 1], [], []>} : vector<16x32xf32>, vector<32x64xf32>, vector<16x64xf32> -> vector<16x64xf32>
    %295 = vector.broadcast %13 : vector<1x64xf32> to vector<16x64xf32>
    %296 = arith.addf %294, %295 : vector<16x64xf32>
    %cst_95 = arith.constant 5.000000e-01 : f32
    %297 = vector.broadcast %cst_95 : f32 to vector<16x64xf32>
    %298 = arith.mulf %297, %296 : vector<16x64xf32>
    %cst_96 = arith.constant 4.471500e-02 : f32
    %299 = vector.broadcast %cst_96 : f32 to vector<16x64xf32>
    %300 = arith.mulf %299, %296 : vector<16x64xf32>
    %301 = arith.mulf %300, %296 : vector<16x64xf32>
    %302 = arith.mulf %301, %296 : vector<16x64xf32>
    %303 = arith.addf %296, %302 : vector<16x64xf32>
    %cst_97 = arith.constant 0.797884583 : f32
    %304 = vector.broadcast %cst_97 : f32 to vector<16x64xf32>
    %305 = arith.mulf %304, %303 : vector<16x64xf32>
    %306 = math.tanh %305 : vector<16x64xf32>
    %cst_98 = arith.constant 1.000000e+00 : f32
    %307 = vector.broadcast %cst_98 : f32 to vector<16x64xf32>
    %308 = arith.addf %307, %306 : vector<16x64xf32>
    %309 = arith.mulf %298, %308 : vector<16x64xf32>
    %cst_99 = arith.constant dense<0.000000e+00> : vector<16x32xf32>
    %310 = tpu.matmul %309, %14, %cst_99 {dimension_numbers = #tpu.dot_dimension_numbers<[1], [0], [0], [1], [0, 0, 1, 1], [], []>} : vector<16x64xf32>, vector<64x32xf32>, vector<16x32xf32> -> vector<16x32xf32>
    %311 = vector.broadcast %15 : vector<1x32xf32> to vector<16x32xf32>
    %312 = arith.addf %310, %311 : vector<16x32xf32>
    %313 = arith.addf %312, %293 : vector<16x32xf32>
    %cst_100 = arith.constant dense<0.000000e+00> : vector<16xf32>
    %314 = vector.multi_reduction <add>, %313, %cst_100 [1] : vector<16x32xf32> to vector<16xf32>
    %315 = vector.shape_cast %314 : vector<16xf32> to vector<16x1xf32>
    %cst_101 = arith.constant 3.200000e+01 : f32
    %316 = vector.broadcast %cst_101 : f32 to vector<16x1xf32>
    %317 = arith.divf %315, %316 : vector<16x1xf32>
    %318 = vector.broadcast %317 : vector<16x1xf32> to vector<16x32xf32>
    %319 = arith.subf %313, %318 : vector<16x32xf32>
    %320 = arith.mulf %319, %319 : vector<16x32xf32>
    %cst_102 = arith.constant dense<0.000000e+00> : vector<16xf32>
    %321 = vector.multi_reduction <add>, %320, %cst_102 [1] : vector<16x32xf32> to vector<16xf32>
    %322 = vector.shape_cast %321 : vector<16xf32> to vector<16x1xf32>
    %cst_103 = arith.constant 3.200000e+01 : f32
    %323 = vector.broadcast %cst_103 : f32 to vector<16x1xf32>
    %324 = arith.divf %322, %323 : vector<16x1xf32>
    %325 = vector.broadcast %317 : vector<16x1xf32> to vector<16x32xf32>
    %326 = arith.subf %313, %325 : vector<16x32xf32>
    %cst_104 = arith.constant 9.99999996E-13 : f32
    %327 = vector.broadcast %cst_104 : f32 to vector<16x1xf32>
    %328 = arith.addf %324, %327 : vector<16x1xf32>
    %329 = math.rsqrt %328 : vector<16x1xf32>
    %330 = vector.broadcast %329 : vector<16x1xf32> to vector<16x32xf32>
    %331 = arith.mulf %326, %330 : vector<16x32xf32>
    %332 = vector.broadcast %16 : vector<1x32xf32> to vector<16x32xf32>
    %333 = arith.mulf %331, %332 : vector<16x32xf32>
    %334 = vector.broadcast %17 : vector<1x32xf32> to vector<16x32xf32>
    %335 = arith.addf %333, %334 : vector<16x32xf32>
    %c2_i32 = arith.constant 2 : i32
    %cst_105 = arith.constant dense<0.000000e+00> : vector<16x96xf32>
    %336 = tpu.matmul %335, %6, %cst_105 {dimension_numbers = #tpu.dot_dimension_numbers<[1], [0], [0], [1], [0, 0, 1, 1], [], []>} : vector<16x32xf32>, vector<32x96xf32>, vector<16x96xf32> -> vector<16x96xf32>
    %337 = vector.broadcast %7 : vector<1x96xf32> to vector<16x96xf32>
    %338 = arith.addf %336, %337 : vector<16x96xf32>
    %cst_106 = arith.constant 0.000000e+00 : f32
    %339 = vector.broadcast %cst_106 : f32 to vector<16x32xf32>
    %340 = vector.extract_strided_slice %338 {offsets = [0, 0], sizes = [16, 8], strides = [1, 1]} : vector<16x96xf32> to vector<16x8xf32>
    %341 = vector.shape_cast %340 : vector<16x8xf32> to vector<2x8x8xf32>
    %342 = vector.extract_strided_slice %338 {offsets = [0, 32], sizes = [16, 8], strides = [1, 1]} : vector<16x96xf32> to vector<16x8xf32>
    %343 = vector.shape_cast %342 : vector<16x8xf32> to vector<2x8x8xf32>
    %344 = vector.extract_strided_slice %338 {offsets = [0, 64], sizes = [16, 8], strides = [1, 1]} : vector<16x96xf32> to vector<16x8xf32>
    %345 = vector.shape_cast %344 : vector<16x8xf32> to vector<2x8x8xf32>
    "tpu.trace_start"() <{level = 10 : i32, message = "bqd,bkd->bqk"}> : () -> ()
    %cst_107 = arith.constant dense<0.000000e+00> : vector<2x8x8xf32>
    %346 = tpu.matmul %341, %343, %cst_107 {dimension_numbers = #tpu.dot_dimension_numbers<[2], [2], [1], [1], [0, 0, 0, 1, 1, 1], [0], [0]>} : vector<2x8x8xf32>, vector<2x8x8xf32>, vector<2x8x8xf32> -> vector<2x8x8xf32>
    "tpu.trace_stop"() : () -> ()
    %cst_108 = arith.constant dense<0xFF800000> : vector<2x8xf32>
    %347 = vector.multi_reduction <maximumf>, %346, %cst_108 [2] : vector<2x8x8xf32> to vector<2x8xf32>
    %348 = vector.shape_cast %347 : vector<2x8xf32> to vector<2x8x1xf32>
    %349 = vector.broadcast %348 : vector<2x8x1xf32> to vector<2x8x8xf32>
    %350 = arith.subf %346, %349 : vector<2x8x8xf32>
    %351 = math.exp %350 : vector<2x8x8xf32>
    %cst_109 = arith.constant dense<0.000000e+00> : vector<2x8xf32>
    %352 = vector.multi_reduction <add>, %351, %cst_109 [2] : vector<2x8x8xf32> to vector<2x8xf32>
    %353 = vector.shape_cast %352 : vector<2x8xf32> to vector<2x8x1xf32>
    %354 = tpu.reciprocal %353 {approx = true} : vector<2x8x1xf32> -> vector<2x8x1xf32>
    %355 = vector.broadcast %354 : vector<2x8x1xf32> to vector<2x8x8xf32>
    %356 = arith.mulf %351, %355 : vector<2x8x8xf32>
    "tpu.trace_start"() <{level = 10 : i32, message = "bqk,bkd->bqd"}> : () -> ()
    %cst_110 = arith.constant dense<0.000000e+00> : vector<2x8x8xf32>
    %357 = tpu.matmul %356, %345, %cst_110 {dimension_numbers = #tpu.dot_dimension_numbers<[2], [1], [1], [2], [0, 0, 0, 1, 1, 2], [0], [0]>} : vector<2x8x8xf32>, vector<2x8x8xf32>, vector<2x8x8xf32> -> vector<2x8x8xf32>
    "tpu.trace_stop"() : () -> ()
    %358 = vector.shape_cast %357 : vector<2x8x8xf32> to vector<16x8xf32>
    %359 = vector.extract_strided_slice %8 {offsets = [0, 0], sizes = [8, 32], strides = [1, 1]} : vector<32x32xf32> to vector<8x32xf32>
    %cst_111 = arith.constant dense<0.000000e+00> : vector<16x32xf32>
    %360 = tpu.matmul %358, %359, %cst_111 {dimension_numbers = #tpu.dot_dimension_numbers<[1], [0], [0], [1], [0, 0, 1, 1], [], []>} : vector<16x8xf32>, vector<8x32xf32>, vector<16x32xf32> -> vector<16x32xf32>
    %361 = arith.addf %339, %360 : vector<16x32xf32>
    %362 = vector.extract_strided_slice %338 {offsets = [0, 8], sizes = [16, 8], strides = [1, 1]} : vector<16x96xf32> to vector<16x8xf32>
    %363 = vector.shape_cast %362 : vector<16x8xf32> to vector<2x8x8xf32>
    %364 = vector.extract_strided_slice %338 {offsets = [0, 40], sizes = [16, 8], strides = [1, 1]} : vector<16x96xf32> to vector<16x8xf32>
    %365 = vector.shape_cast %364 : vector<16x8xf32> to vector<2x8x8xf32>
    %366 = vector.extract_strided_slice %338 {offsets = [0, 72], sizes = [16, 8], strides = [1, 1]} : vector<16x96xf32> to vector<16x8xf32>
    %367 = vector.shape_cast %366 : vector<16x8xf32> to vector<2x8x8xf32>
    "tpu.trace_start"() <{level = 10 : i32, message = "bqd,bkd->bqk"}> : () -> ()
    %cst_112 = arith.constant dense<0.000000e+00> : vector<2x8x8xf32>
    %368 = tpu.matmul %363, %365, %cst_112 {dimension_numbers = #tpu.dot_dimension_numbers<[2], [2], [1], [1], [0, 0, 0, 1, 1, 1], [0], [0]>} : vector<2x8x8xf32>, vector<2x8x8xf32>, vector<2x8x8xf32> -> vector<2x8x8xf32>
    "tpu.trace_stop"() : () -> ()
    %cst_113 = arith.constant dense<0xFF800000> : vector<2x8xf32>
    %369 = vector.multi_reduction <maximumf>, %368, %cst_113 [2] : vector<2x8x8xf32> to vector<2x8xf32>
    %370 = vector.shape_cast %369 : vector<2x8xf32> to vector<2x8x1xf32>
    %371 = vector.broadcast %370 : vector<2x8x1xf32> to vector<2x8x8xf32>
    %372 = arith.subf %368, %371 : vector<2x8x8xf32>
    %373 = math.exp %372 : vector<2x8x8xf32>
    %cst_114 = arith.constant dense<0.000000e+00> : vector<2x8xf32>
    %374 = vector.multi_reduction <add>, %373, %cst_114 [2] : vector<2x8x8xf32> to vector<2x8xf32>
    %375 = vector.shape_cast %374 : vector<2x8xf32> to vector<2x8x1xf32>
    %376 = tpu.reciprocal %375 {approx = true} : vector<2x8x1xf32> -> vector<2x8x1xf32>
    %377 = vector.broadcast %376 : vector<2x8x1xf32> to vector<2x8x8xf32>
    %378 = arith.mulf %373, %377 : vector<2x8x8xf32>
    "tpu.trace_start"() <{level = 10 : i32, message = "bqk,bkd->bqd"}> : () -> ()
    %cst_115 = arith.constant dense<0.000000e+00> : vector<2x8x8xf32>
    %379 = tpu.matmul %378, %367, %cst_115 {dimension_numbers = #tpu.dot_dimension_numbers<[2], [1], [1], [2], [0, 0, 0, 1, 1, 2], [0], [0]>} : vector<2x8x8xf32>, vector<2x8x8xf32>, vector<2x8x8xf32> -> vector<2x8x8xf32>
    "tpu.trace_stop"() : () -> ()
    %380 = vector.shape_cast %379 : vector<2x8x8xf32> to vector<16x8xf32>
    %381 = vector.extract_strided_slice %8 {offsets = [8, 0], sizes = [8, 32], strides = [1, 1]} : vector<32x32xf32> to vector<8x32xf32>
    %cst_116 = arith.constant dense<0.000000e+00> : vector<16x32xf32>
    %382 = tpu.matmul %380, %381, %cst_116 {dimension_numbers = #tpu.dot_dimension_numbers<[1], [0], [0], [1], [0, 0, 1, 1], [], []>} : vector<16x8xf32>, vector<8x32xf32>, vector<16x32xf32> -> vector<16x32xf32>
    %383 = arith.addf %361, %382 : vector<16x32xf32>
    %384 = vector.extract_strided_slice %338 {offsets = [0, 16], sizes = [16, 8], strides = [1, 1]} : vector<16x96xf32> to vector<16x8xf32>
    %385 = vector.shape_cast %384 : vector<16x8xf32> to vector<2x8x8xf32>
    %386 = vector.extract_strided_slice %338 {offsets = [0, 48], sizes = [16, 8], strides = [1, 1]} : vector<16x96xf32> to vector<16x8xf32>
    %387 = vector.shape_cast %386 : vector<16x8xf32> to vector<2x8x8xf32>
    %388 = vector.extract_strided_slice %338 {offsets = [0, 80], sizes = [16, 8], strides = [1, 1]} : vector<16x96xf32> to vector<16x8xf32>
    %389 = vector.shape_cast %388 : vector<16x8xf32> to vector<2x8x8xf32>
    "tpu.trace_start"() <{level = 10 : i32, message = "bqd,bkd->bqk"}> : () -> ()
    %cst_117 = arith.constant dense<0.000000e+00> : vector<2x8x8xf32>
    %390 = tpu.matmul %385, %387, %cst_117 {dimension_numbers = #tpu.dot_dimension_numbers<[2], [2], [1], [1], [0, 0, 0, 1, 1, 1], [0], [0]>} : vector<2x8x8xf32>, vector<2x8x8xf32>, vector<2x8x8xf32> -> vector<2x8x8xf32>
    "tpu.trace_stop"() : () -> ()
    %cst_118 = arith.constant dense<0xFF800000> : vector<2x8xf32>
    %391 = vector.multi_reduction <maximumf>, %390, %cst_118 [2] : vector<2x8x8xf32> to vector<2x8xf32>
    %392 = vector.shape_cast %391 : vector<2x8xf32> to vector<2x8x1xf32>
    %393 = vector.broadcast %392 : vector<2x8x1xf32> to vector<2x8x8xf32>
    %394 = arith.subf %390, %393 : vector<2x8x8xf32>
    %395 = math.exp %394 : vector<2x8x8xf32>
    %cst_119 = arith.constant dense<0.000000e+00> : vector<2x8xf32>
    %396 = vector.multi_reduction <add>, %395, %cst_119 [2] : vector<2x8x8xf32> to vector<2x8xf32>
    %397 = vector.shape_cast %396 : vector<2x8xf32> to vector<2x8x1xf32>
    %398 = tpu.reciprocal %397 {approx = true} : vector<2x8x1xf32> -> vector<2x8x1xf32>
    %399 = vector.broadcast %398 : vector<2x8x1xf32> to vector<2x8x8xf32>
    %400 = arith.mulf %395, %399 : vector<2x8x8xf32>
    "tpu.trace_start"() <{level = 10 : i32, message = "bqk,bkd->bqd"}> : () -> ()
    %cst_120 = arith.constant dense<0.000000e+00> : vector<2x8x8xf32>
    %401 = tpu.matmul %400, %389, %cst_120 {dimension_numbers = #tpu.dot_dimension_numbers<[2], [1], [1], [2], [0, 0, 0, 1, 1, 2], [0], [0]>} : vector<2x8x8xf32>, vector<2x8x8xf32>, vector<2x8x8xf32> -> vector<2x8x8xf32>
    "tpu.trace_stop"() : () -> ()
    %402 = vector.shape_cast %401 : vector<2x8x8xf32> to vector<16x8xf32>
    %403 = vector.extract_strided_slice %8 {offsets = [16, 0], sizes = [8, 32], strides = [1, 1]} : vector<32x32xf32> to vector<8x32xf32>
    %cst_121 = arith.constant dense<0.000000e+00> : vector<16x32xf32>
    %404 = tpu.matmul %402, %403, %cst_121 {dimension_numbers = #tpu.dot_dimension_numbers<[1], [0], [0], [1], [0, 0, 1, 1], [], []>} : vector<16x8xf32>, vector<8x32xf32>, vector<16x32xf32> -> vector<16x32xf32>
    %405 = arith.addf %383, %404 : vector<16x32xf32>
    %406 = vector.extract_strided_slice %338 {offsets = [0, 24], sizes = [16, 8], strides = [1, 1]} : vector<16x96xf32> to vector<16x8xf32>
    %407 = vector.shape_cast %406 : vector<16x8xf32> to vector<2x8x8xf32>
    %408 = vector.extract_strided_slice %338 {offsets = [0, 56], sizes = [16, 8], strides = [1, 1]} : vector<16x96xf32> to vector<16x8xf32>
    %409 = vector.shape_cast %408 : vector<16x8xf32> to vector<2x8x8xf32>
    %410 = vector.extract_strided_slice %338 {offsets = [0, 88], sizes = [16, 8], strides = [1, 1]} : vector<16x96xf32> to vector<16x8xf32>
    %411 = vector.shape_cast %410 : vector<16x8xf32> to vector<2x8x8xf32>
    "tpu.trace_start"() <{level = 10 : i32, message = "bqd,bkd->bqk"}> : () -> ()
    %cst_122 = arith.constant dense<0.000000e+00> : vector<2x8x8xf32>
    %412 = tpu.matmul %407, %409, %cst_122 {dimension_numbers = #tpu.dot_dimension_numbers<[2], [2], [1], [1], [0, 0, 0, 1, 1, 1], [0], [0]>} : vector<2x8x8xf32>, vector<2x8x8xf32>, vector<2x8x8xf32> -> vector<2x8x8xf32>
    "tpu.trace_stop"() : () -> ()
    %cst_123 = arith.constant dense<0xFF800000> : vector<2x8xf32>
    %413 = vector.multi_reduction <maximumf>, %412, %cst_123 [2] : vector<2x8x8xf32> to vector<2x8xf32>
    %414 = vector.shape_cast %413 : vector<2x8xf32> to vector<2x8x1xf32>
    %415 = vector.broadcast %414 : vector<2x8x1xf32> to vector<2x8x8xf32>
    %416 = arith.subf %412, %415 : vector<2x8x8xf32>
    %417 = math.exp %416 : vector<2x8x8xf32>
    %cst_124 = arith.constant dense<0.000000e+00> : vector<2x8xf32>
    %418 = vector.multi_reduction <add>, %417, %cst_124 [2] : vector<2x8x8xf32> to vector<2x8xf32>
    %419 = vector.shape_cast %418 : vector<2x8xf32> to vector<2x8x1xf32>
    %420 = tpu.reciprocal %419 {approx = true} : vector<2x8x1xf32> -> vector<2x8x1xf32>
    %421 = vector.broadcast %420 : vector<2x8x1xf32> to vector<2x8x8xf32>
    %422 = arith.mulf %417, %421 : vector<2x8x8xf32>
    "tpu.trace_start"() <{level = 10 : i32, message = "bqk,bkd->bqd"}> : () -> ()
    %cst_125 = arith.constant dense<0.000000e+00> : vector<2x8x8xf32>
    %423 = tpu.matmul %422, %411, %cst_125 {dimension_numbers = #tpu.dot_dimension_numbers<[2], [1], [1], [2], [0, 0, 0, 1, 1, 2], [0], [0]>} : vector<2x8x8xf32>, vector<2x8x8xf32>, vector<2x8x8xf32> -> vector<2x8x8xf32>
    "tpu.trace_stop"() : () -> ()
    %424 = vector.shape_cast %423 : vector<2x8x8xf32> to vector<16x8xf32>
    %425 = vector.extract_strided_slice %8 {offsets = [24, 0], sizes = [8, 32], strides = [1, 1]} : vector<32x32xf32> to vector<8x32xf32>
    %cst_126 = arith.constant dense<0.000000e+00> : vector<16x32xf32>
    %426 = tpu.matmul %424, %425, %cst_126 {dimension_numbers = #tpu.dot_dimension_numbers<[1], [0], [0], [1], [0, 0, 1, 1], [], []>} : vector<16x8xf32>, vector<8x32xf32>, vector<16x32xf32> -> vector<16x32xf32>
    %427 = arith.addf %405, %426 : vector<16x32xf32>
    %428 = vector.broadcast %9 : vector<1x32xf32> to vector<16x32xf32>
    %429 = arith.addf %427, %428 : vector<16x32xf32>
    %430 = arith.addf %335, %429 : vector<16x32xf32>
    %cst_127 = arith.constant dense<0.000000e+00> : vector<16xf32>
    %431 = vector.multi_reduction <add>, %430, %cst_127 [1] : vector<16x32xf32> to vector<16xf32>
    %432 = vector.shape_cast %431 : vector<16xf32> to vector<16x1xf32>
    %cst_128 = arith.constant 3.200000e+01 : f32
    %433 = vector.broadcast %cst_128 : f32 to vector<16x1xf32>
    %434 = arith.divf %432, %433 : vector<16x1xf32>
    %435 = vector.broadcast %434 : vector<16x1xf32> to vector<16x32xf32>
    %436 = arith.subf %430, %435 : vector<16x32xf32>
    %437 = arith.mulf %436, %436 : vector<16x32xf32>
    %cst_129 = arith.constant dense<0.000000e+00> : vector<16xf32>
    %438 = vector.multi_reduction <add>, %437, %cst_129 [1] : vector<16x32xf32> to vector<16xf32>
    %439 = vector.shape_cast %438 : vector<16xf32> to vector<16x1xf32>
    %cst_130 = arith.constant 3.200000e+01 : f32
    %440 = vector.broadcast %cst_130 : f32 to vector<16x1xf32>
    %441 = arith.divf %439, %440 : vector<16x1xf32>
    %442 = vector.broadcast %434 : vector<16x1xf32> to vector<16x32xf32>
    %443 = arith.subf %430, %442 : vector<16x32xf32>
    %cst_131 = arith.constant 9.99999996E-13 : f32
    %444 = vector.broadcast %cst_131 : f32 to vector<16x1xf32>
    %445 = arith.addf %441, %444 : vector<16x1xf32>
    %446 = math.rsqrt %445 : vector<16x1xf32>
    %447 = vector.broadcast %446 : vector<16x1xf32> to vector<16x32xf32>
    %448 = arith.mulf %443, %447 : vector<16x32xf32>
    %449 = vector.broadcast %10 : vector<1x32xf32> to vector<16x32xf32>
    %450 = arith.mulf %448, %449 : vector<16x32xf32>
    %451 = vector.broadcast %11 : vector<1x32xf32> to vector<16x32xf32>
    %452 = arith.addf %450, %451 : vector<16x32xf32>
    %cst_132 = arith.constant dense<0.000000e+00> : vector<16x64xf32>
    %453 = tpu.matmul %452, %12, %cst_132 {dimension_numbers = #tpu.dot_dimension_numbers<[1], [0], [0], [1], [0, 0, 1, 1], [], []>} : vector<16x32xf32>, vector<32x64xf32>, vector<16x64xf32> -> vector<16x64xf32>
    %454 = vector.broadcast %13 : vector<1x64xf32> to vector<16x64xf32>
    %455 = arith.addf %453, %454 : vector<16x64xf32>
    %cst_133 = arith.constant 5.000000e-01 : f32
    %456 = vector.broadcast %cst_133 : f32 to vector<16x64xf32>
    %457 = arith.mulf %456, %455 : vector<16x64xf32>
    %cst_134 = arith.constant 4.471500e-02 : f32
    %458 = vector.broadcast %cst_134 : f32 to vector<16x64xf32>
    %459 = arith.mulf %458, %455 : vector<16x64xf32>
    %460 = arith.mulf %459, %455 : vector<16x64xf32>
    %461 = arith.mulf %460, %455 : vector<16x64xf32>
    %462 = arith.addf %455, %461 : vector<16x64xf32>
    %cst_135 = arith.constant 0.797884583 : f32
    %463 = vector.broadcast %cst_135 : f32 to vector<16x64xf32>
    %464 = arith.mulf %463, %462 : vector<16x64xf32>
    %465 = math.tanh %464 : vector<16x64xf32>
    %cst_136 = arith.constant 1.000000e+00 : f32
    %466 = vector.broadcast %cst_136 : f32 to vector<16x64xf32>
    %467 = arith.addf %466, %465 : vector<16x64xf32>
    %468 = arith.mulf %457, %467 : vector<16x64xf32>
    %cst_137 = arith.constant dense<0.000000e+00> : vector<16x32xf32>
    %469 = tpu.matmul %468, %14, %cst_137 {dimension_numbers = #tpu.dot_dimension_numbers<[1], [0], [0], [1], [0, 0, 1, 1], [], []>} : vector<16x64xf32>, vector<64x32xf32>, vector<16x32xf32> -> vector<16x32xf32>
    %470 = vector.broadcast %15 : vector<1x32xf32> to vector<16x32xf32>
    %471 = arith.addf %469, %470 : vector<16x32xf32>
    %472 = arith.addf %471, %452 : vector<16x32xf32>
    %cst_138 = arith.constant dense<0.000000e+00> : vector<16xf32>
    %473 = vector.multi_reduction <add>, %472, %cst_138 [1] : vector<16x32xf32> to vector<16xf32>
    %474 = vector.shape_cast %473 : vector<16xf32> to vector<16x1xf32>
    %cst_139 = arith.constant 3.200000e+01 : f32
    %475 = vector.broadcast %cst_139 : f32 to vector<16x1xf32>
    %476 = arith.divf %474, %475 : vector<16x1xf32>
    %477 = vector.broadcast %476 : vector<16x1xf32> to vector<16x32xf32>
    %478 = arith.subf %472, %477 : vector<16x32xf32>
    %479 = arith.mulf %478, %478 : vector<16x32xf32>
    %cst_140 = arith.constant dense<0.000000e+00> : vector<16xf32>
    %480 = vector.multi_reduction <add>, %479, %cst_140 [1] : vector<16x32xf32> to vector<16xf32>
    %481 = vector.shape_cast %480 : vector<16xf32> to vector<16x1xf32>
    %cst_141 = arith.constant 3.200000e+01 : f32
    %482 = vector.broadcast %cst_141 : f32 to vector<16x1xf32>
    %483 = arith.divf %481, %482 : vector<16x1xf32>
    %484 = vector.broadcast %476 : vector<16x1xf32> to vector<16x32xf32>
    %485 = arith.subf %472, %484 : vector<16x32xf32>
    %cst_142 = arith.constant 9.99999996E-13 : f32
    %486 = vector.broadcast %cst_142 : f32 to vector<16x1xf32>
    %487 = arith.addf %483, %486 : vector<16x1xf32>
    %488 = math.rsqrt %487 : vector<16x1xf32>
    %489 = vector.broadcast %488 : vector<16x1xf32> to vector<16x32xf32>
    %490 = arith.mulf %485, %489 : vector<16x32xf32>
    %491 = vector.broadcast %16 : vector<1x32xf32> to vector<16x32xf32>
    %492 = arith.mulf %490, %491 : vector<16x32xf32>
    %493 = vector.broadcast %17 : vector<1x32xf32> to vector<16x32xf32>
    %494 = arith.addf %492, %493 : vector<16x32xf32>
    %495 = vector.shape_cast %494 : vector<16x32xf32> to vector<2x8x32xf32>
    %496 = vector.extract_strided_slice %495 {offsets = [0, 0, 0], sizes = [2, 1, 32], strides = [1, 1, 1]} : vector<2x8x32xf32> to vector<2x1x32xf32>
    %497 = vector.shape_cast %496 : vector<2x1x32xf32> to vector<2x32xf32>
    %c0_143 = arith.constant 0 : index
    %c0_144 = arith.constant 0 : index
    %498 = vector.load %arg15[%c0_143, %c0_144] : memref<32x16xf32, #tpu.memory_space<vmem>>, vector<32x16xf32>
    %cst_145 = arith.constant dense<0.000000e+00> : vector<2x16xf32>
    %499 = tpu.matmul %497, %498, %cst_145 {dimension_numbers = #tpu.dot_dimension_numbers<[1], [0], [0], [1], [0, 0, 1, 1], [], []>} : vector<2x32xf32>, vector<32x16xf32>, vector<2x16xf32> -> vector<2x16xf32>
    %c0_146 = arith.constant 0 : index
    %c0_147 = arith.constant 0 : index
    %500 = vector.load %arg16[%c0_146, %c0_147] : memref<1x16xf32, #tpu.memory_space<vmem>>, vector<1x16xf32>
    %501 = vector.broadcast %500 : vector<1x16xf32> to vector<2x16xf32>
    %502 = arith.addf %499, %501 : vector<2x16xf32>
    %503 = math.tanh %502 : vector<2x16xf32>
    %c0_148 = arith.constant 0 : index
    %c0_149 = arith.constant 0 : index
    %504 = vector.load %arg17[%c0_148, %c0_149] : memref<16x2xf32, #tpu.memory_space<vmem>>, vector<16x2xf32>
    %cst_150 = arith.constant dense<0.000000e+00> : vector<2x2xf32>
    %505 = tpu.matmul %503, %504, %cst_150 {dimension_numbers = #tpu.dot_dimension_numbers<[1], [0], [0], [1], [0, 0, 1, 1], [], []>} : vector<2x16xf32>, vector<16x2xf32>, vector<2x2xf32> -> vector<2x2xf32>
    %c0_151 = arith.constant 0 : index
    %c0_152 = arith.constant 0 : index
    %506 = vector.load %arg18[%c0_151, %c0_152] : memref<1x2xf32, #tpu.memory_space<vmem>>, vector<1x2xf32>
    %507 = vector.broadcast %506 : vector<1x2xf32> to vector<2x2xf32>
    %508 = arith.addf %505, %507 : vector<2x2xf32>
    %c0_153 = arith.constant 0 : index
    %c0_154 = arith.constant 0 : index
    %509 = vector.load %arg19[%c0_153, %c0_154] : memref<16x32xf32, #tpu.memory_space<vmem>>, vector<16x32xf32>
    tpu.vector_store %arg19[%c0_153, %c0_154], %494 {strides = array<i32>} : memref<16x32xf32, #tpu.memory_space<vmem>>, vector<16x32xf32>,
    %c0_155 = arith.constant 0 : index
    %c0_156 = arith.constant 0 : index
    %510 = vector.load %arg20[%c0_155, %c0_156] : memref<2x2xf32, #tpu.memory_space<vmem>>, vector<2x2xf32>
    tpu.vector_store %arg20[%c0_155, %c0_156], %508 {strides = array<i32>} : memref<2x2xf32, #tpu.memory_space<vmem>>, vector<2x2xf32>,
    return
  }
}

</mosaic_0001>

<bundles_post_ra>
// kernel: tpu_custom_call.1
= control target key start
LH: loop header
LB: loop body
LE: loop exit
PB: predicated region body
PF: predicated region fallthrough
CT: control target
= control target key end

     0   :  { %s8621_s0 = inlined_call_operand.vmem [shape: f32[16,16], index: 0, kind: input, shape index: {}]   ;;  %s8622_s1 = inlined_call_operand.vmem [shape: f32[16,32], index: 1, kind: input, shape index: {}]   ;;  %s8623_s2 = inlined_call_operand.hbm [shape: f32[1,32], index: 2, kind: input, shape index: {}]   ;;  %s8624_s3 = inlined_call_operand.vmem [shape: f32[32,96], index: 3, kind: input, shape index: {}]   ;;  %s8625_s4 = inlined_call_operand.hbm [shape: f32[1,96], index: 4, kind: input, shape index: {}]   ;;  %s8626_s5 = inlined_call_operand.vmem [shape: f32[32,32], index: 5, kind: input, shape index: {}]   ;;  %s8627_s6 = inlined_call_operand.hbm [shape: f32[1,32], index: 6, kind: input, shape index: {}]   ;;  %s8628_s7 = inlined_call_operand.hbm [shape: f32[1,32], index: 7, kind: input, shape index: {}]   ;;  %s8629_s8 = inlined_call_operand.hbm [shape: f32[1,32], index: 8, kind: input, shape index: {}]   ;;  %s8630_s9 = inlined_call_operand.vmem [shape: f32[32,64], index: 9, kind: input, shape index: {}]   ;;  %s8631_s10 = inlined_call_operand.vmem [shape: f32[1,64], index: 10, kind: input, shape index: {}]   ;;  %s8632_s11 = inlined_call_operand.vmem [shape: f32[64,32], index: 11, kind: input, shape index: {}]   ;;  %s8633_s12 = inlined_call_operand.vmem [shape: f32[1,32], index: 12, kind: input, shape index: {}]   ;;  %s8634_s13 = inlined_call_operand.vmem [shape: f32[1,32], index: 13, kind: input, shape index: {}]   ;;  %s8635_s14 = inlined_call_operand.vmem [shape: f32[1,32], index: 14, kind: input, shape index: {}]   ;;  %s8636_s15 = inlined_call_operand.vmem [shape: f32[32,16], index: 15, kind: input, shape index: {}]   ;;  %s8637_s16 = inlined_call_operand.vmem [shape: f32[1,16], index: 16, kind: input, shape index: {}]   ;;  %s8638_s17 = inlined_call_operand.vmem [shape: f32[16,2], index: 17, kind: input, shape index: {}]   ;;  %s8639_s18 = inlined_call_operand.vmem [shape: f32[1,2], index: 18, kind: input, shape index: {}]   ;;  %s8640_s19 = inlined_call_operand.hbm [shape: f32[16,32], index: 19, kind: output, shape index: {0}]   ;;  %s8641_s20 = inlined_call_operand.hbm [shape: f32[2,2], index: 20, kind: output, shape index: {1}]  }
   0x1   :  { %8645 = sst [smem:[#allocation19_spill]] %s8621_s0 }
   0x2   :  { %8646 = sst [smem:[#allocation20_spill]] %s8622_s1 }
   0x3   :  { %8647 = sst [smem:[#allocation21_spill]] %s8623_s2 }
   0x4   :  { %8648 = sst [smem:[#allocation22_spill]] %s8624_s3 }
   0x5   :  { %8649 = sst [smem:[#allocation23_spill]] %s8625_s4 }
   0x6   :  { %26 = vsyncpa [#allocation3], 0 }
   0x7   :  { %27 = vsyncpa [#allocation6], 0 }
   0x8   :  { %28 = vsyncpa [#allocation9], 0 }
   0x9   :  { %29 = vsyncpa [#allocation4], 0 }
   0xa   :  { %30 = vsyncpa [#allocation13], 0  ;;  %s7545_s1 = smov [#allocation5]   ;;  %s7546_s23 = smov [#allocation8]  }
   0xb   :  { %s53_s22 = sshll.u32 %s7545_s1, 4  ;;  %s75_s24 = sshll.u32 %s7546_s23, 4  ;;  %s54_s22 = int_to_ptr.vmem [resolvable:$true] %s53_s22  ;;  %s76_s24 = int_to_ptr.vmem [resolvable:$true] %s75_s24 }
   0xc   :  { %s7403_s2 = scalar_lea.vmem %s54_s22, 16  ;;  %s7407_s25 = scalar_lea.vmem %s54_s22, 32 }
   0xd   :  { %p7404_p0 = scmp.ne.s32.totalorder %s54_s22, %s7403_s2  ;;  %p7408_p1 = scmp.lt.s32.totalorder %s54_s22, %s54_s22 }
   0xe   :  { %p7409_p2 = scmp.lt.s32.totalorder %s7407_s25, %s7403_s2 }
  0x10   :  { %p7410_p3 = por %p7409_p2, %p7408_p1 }
  0x12   :  { %p7411_p4 = pnand %p7410_p3, %p7404_p0 }
  0x14   :  { %7414 = shalt.err (!%p7411_p4)
}
  0x15   :  { %s8650_s27 = sld [smem:[#allocation23_spill]]  ;;  %s7423_s28 = scalar_lea.vmem %s76_s24, 16 }
  0x16   :  { %p7424_p5 = scmp.ne.s32.totalorder %s76_s24, %s7423_s28  ;;  %s7427_s4 = scalar_lea.vmem %s76_s24, 32 }
  0x17   :  { %p7428_p6 = scmp.lt.s32.totalorder %s76_s24, %s76_s24  ;;  %p7429_p7 = scmp.lt.s32.totalorder %s7427_s4, %s7423_s28 }
  0x19   :  { %p7430_p8 = por %p7429_p7, %p7428_p6 }
  0x1b   :  { %56 = dma.hbm_to_vmem [thread:$0]  %s8650_s27, 16, %s54_s22, [#allocation6]  }
  0x1c   :  { %p7431_p9 = pnand %p7430_p8, %p7424_p5 }
  0x1e   :  { %7434 = shalt.err (!%p7431_p9)
}
  0x1f   :  { %78 = dma.hbm_to_vmem [thread:$0]  %s8628_s7, 16, %s76_s24, [#allocation9]  }
  0x20   :  { %s7547_s0 = smov [#allocation2]   ;;  %s7548_s1 = smov [#allocation7]  }
  0x21   :  { %s41_s21 = sshll.u32 %s7547_s0, 4  ;;  %s65_s23 = sshll.u32 %s7548_s1, 4  ;;  %s42_s21 = int_to_ptr.vmem [resolvable:$true] %s41_s21  ;;  %s66_s23 = int_to_ptr.vmem [resolvable:$true] %s65_s23 }
  0x22   :  { %s7443_s2 = scalar_lea.vmem %s42_s21, 16  ;;  %s7447_s22 = scalar_lea.vmem %s42_s21, 32 }
  0x23   :  { %p7444_p10 = scmp.ne.s32.totalorder %s42_s21, %s7443_s2  ;;  %p7448_p11 = scmp.lt.s32.totalorder %s42_s21, %s42_s21 }
  0x24   :  { %p7449_p12 = scmp.lt.s32.totalorder %s7447_s22, %s7443_s2 }
  0x26   :  { %p7450_p13 = por %p7449_p12, %p7448_p11 }
  0x28   :  { %p7451_p0 = pnand %p7450_p13, %p7444_p10 }
  0x2a   :  { %7454 = shalt.err (!%p7451_p0)
}
  0x2b   :  { %s8651_s26 = sld [smem:[#allocation21_spill]]  ;;  %s7463_s27 = scalar_lea.vmem %s66_s23, 16 }
  0x2c   :  { %p7464_p1 = scmp.ne.s32.totalorder %s66_s23, %s7463_s27  ;;  %s7467_s7 = scalar_lea.vmem %s66_s23, 32 }
  0x2d   :  { %p7468_p2 = scmp.lt.s32.totalorder %s66_s23, %s66_s23  ;;  %p7469_p3 = scmp.lt.s32.totalorder %s7467_s7, %s7463_s27 }
  0x2f   :  { %p7470_p4 = por %p7469_p3, %p7468_p2 }
  0x31   :  { %44 = dma.hbm_to_vmem [thread:$0]  %s8651_s26, 16, %s42_s21, [#allocation3]  }
  0x32   :  { %p7471_p5 = pnand %p7470_p4, %p7464_p1 }
  0x34   :  { %7474 = shalt.err (!%p7471_p5)
}
  0x35   :  { %68 = dma.hbm_to_vmem [thread:$0]  %s8627_s6, 16, %s66_s23, [#allocation6]  }
  0x36   :  { %s7549_s4 = smov [#allocation10]  }
  0x37   :  { %s85_s29 = sshll.u32 %s7549_s4, 4  ;;  %s86_s29 = int_to_ptr.vmem [resolvable:$true] %s85_s29 }
  0x38   :  { %s7483_s30 = scalar_lea.vmem %s86_s29, 16  ;;  %s7487_s0 = scalar_lea.vmem %s86_s29, 32 }
  0x39   :  { %p7484_p6 = scmp.ne.s32.totalorder %s86_s29, %s7483_s30  ;;  %p7488_p7 = scmp.lt.s32.totalorder %s86_s29, %s86_s29 }
  0x3a   :  { %p7489_p8 = scmp.lt.s32.totalorder %s7487_s0, %s7483_s30 }
  0x3c   :  { %p7490_p9 = por %p7489_p8, %p7488_p7 }
  0x3e   :  { %p7491_p10 = pnand %p7490_p9, %p7484_p6 }
  0x40   :  { %7494 = shalt.err (!%p7491_p10)
}
  0x41   :  { %88 = dma.hbm_to_vmem [thread:$0]  %s8629_s8, 16, %s86_s29, [#allocation9]  }
  0x42   :  { %7535 = dma.done.wait [#allocation3], 16  }
  0x43   :  { %7536 = vsyncadd [#allocation3], 4294967280 }
  0x44   :  { %7537 = dma.done.wait [#allocation6], 32  }
  0x45   :  { %7538 = vsyncadd [#allocation6], 4294967264 }
  0x46   :  { %7539 = dma.done.wait [#allocation9], 32  }
  0x47   :  { %7540 = vsyncadd [#allocation9], 4294967264  ;;  %vm135_vm0 = vcmask 130048   ;;  %s8652_s2 = sld [smem:[#allocation20_spill]]  ;;  %v6424_v9 = vld [vmem:[#allocation2] ss:$0 sm:$0xff] }
  0x48   :  { %s8653_s27 = sld [smem:[#allocation19_spill]]  ;;  %vm251_vm1 = vcmask 261120   ;;  %v7550_v13 = vmov 0.0   ;;  %vm7551_vm2 = vmmov 0   ;;  %v7743_v15 = vld [vmem:[#allocation5] ss:$0 sm:$0xff] }
  0x49   :  { %s8654_s24 = sld [smem:[#allocation22_spill]]  ;;  %s7552_s23 = smov 96   ;;  %vm336_vm3 = vcmask 64512   ;;  %vm2144_vm4 = vcmask 523264   ;;  %vm6230_vm5 = vcmask 1041409  }
  0x4a   :  { %s7554_s22 = smov 88   ;;  %s7555_s25 = smov 120  }
  0x4b   :  { %s7556_s3 = smov 56   ;;  %s7557_s26 = smov 112  }
  0x4c   :  { %s7559_s29 = smov 48   ;;  %s7560_s30 = smov 72  }
  0x4d   :  { %v127_v0 = vld [vmem:[%s8652_s2 + $0x8] sm:$0xff]  ;;  %v126_v1 = vld [vmem:[%s8652_s2] sm:$0xff]  ;;  %s7553_s2 = smov 64   ;;  %s7561_s0 = smov 104  }
  0x4e   :  { %v124_v2 = vld [vmem:[%s8653_s27] sm:$0xff]  ;;  %6763 = vmatprep.subr.mxu0 %v127_v0  ;;  %v125_v4 = vld [vmem:[%s8653_s27 + $0x8] sm:$0xff]  ;;  %s7558_s27 = smov 80   ;;  %s7562_s6 = smov 40  }
  0x4f   :  { %6767 = vmatprep.mubr.msk.f32.mxu0 %vm135_vm0, %v124_v2  ;;  %v7700_v3 = vld [vmem:[%s8654_s24 + $0x18] sm:$0xff]  ;;  %6764 = vmatpush3.msra.mxu0 %v127_v0  ;;  %v7711_v5 = vld [vmem:[%s8654_s24 + $0x10] sm:$0xff]  ;;  %v7718_v6 = vld [vmem:[%s8654_s24 + $0x8] sm:$0xff] }
  0x50   :  { %6770 = vmatprep.subr.mxu1 %v7700_v3  ;;  %6765 = vmatprep.subr.mxu0 %v126_v1  ;;  %v7725_v7 = vld [vmem:[%s8654_s24] sm:$0xff] }
  0x51   :  { %6771 = vmatpush3.msra.mxu1 %v7700_v3  ;;  %6766 = vmatpush3.msra.mxu0 %v126_v1 }
  0x52   :  { %6768 = vmatmul.mubr.msk.f32.vlgmr.msra.gmra.mxu0 %vm135_vm0, %v125_v4  ;;  %6772 = vmatprep.subr.mxu1 %v7711_v5 }
  0x53   :  { %6773 = vmatpush3.msra.mxu1 %v7711_v5  ;;  %6781 = vmatprep.subr.mxu0 %v7550_v13 }
  0x54   :  { %6774 = vmatprep.subr.mxu1 %v7718_v6  ;;  %6783 = vmatprep.mubr.msk.f32.mxu0 %vm7551_vm2, %v7550_v13 }
  0x55   :  { %6775 = vmatpush3.msra.mxu1 %v7718_v6 }
  0x56   :  { %6776 = vmatprep.subr.mxu1 %v7725_v7 }
  0x57   :  { %6777 = vmatpush3.msra.mxu1 %v7725_v7 }
  0x58   :  { %6791 = vmatprep.subr.mxu1 %v7550_v13 }
 0x112   :  { %v6769_v8 = vpop.f32.mrf.mxu0 }
 0x113   :  { %v7731_v12 = vadd.f32 %v6769_v8, %v6424_v9 }
 0x114   :  { %v208_v10 = vpop.f32.mrf.mxu0 }
 0x115   :  { %v7729_v11 = vadd.f32 %v6424_v9, %v208_v10  ;;  %v7818_v10 = vld [vmem:[%s8626_s5] sm:$0xff] }
 0x117   :  { %6778 = vmatprep.mubr.msk.f32.mxu1 %vm251_vm1, %v7729_v11 }
 0x118   :  { %6779 = vmatmul.mubr.msk.f32.vlgmr.msra.gmra.mxu1 %vm251_vm1, %v7731_v12 }
 0x119   :  { %6793 = vmatprep.mubr.msk.f32.mxu1 %vm7551_vm2, %v7550_v13 }
 0x1d8   :  { %v6780_v14 = vpop.f32.mrf.mxu1 }
 0x1d9   :  { %v7751_v18 = vadd.f32 %v6780_v14, %v7743_v15 }
 0x1da   :  { %v324_v16 = vpop.f32.mrf.mxu1 }
 0x1db   :  { %v7746_v17 = vadd.f32 %v7743_v15, %v324_v16 }
 0x1dd   :  { %334 = vrot.lane.b32.xlu0 %v7746_v17, %s7552_s23 }
 0x1e1   :  { %412 = vrot.lane.b32.xlu0 %v7751_v18, %s7552_s23 }
 0x24f   :  { %v335_v19 = vpop.permute.xlu0 %334 }
 0x250   :  { %6782 = vmatpush3.xpose.msk.msra.mxu0 %vm336_vm3, %v335_v19 }
 0x251   :  { %6786 = vmatprep.subr.mxu0 %v7550_v13 }
 0x253   :  { %6784 = vmatmul.mubr.msk.f32.vlgmr.msra.gmra.mxu0 %vm336_vm3, %v7746_v17  ;;  %v413_v20 = vpop.permute.xlu0 %412 }
 0x254   :  { %6787 = vmatpush3.xpose.msk.msra.mxu0 %vm336_vm3, %v413_v20  ;;  %6788 = vmatprep.mubr.msk.f32.mxu0 %vm7551_vm2, %v7550_v13 }
 0x255   :  { %6796 = vmatprep.subr.mxu0 %v7550_v13 }
 0x257   :  { %6789 = vmatmul.mubr.msk.f32.vlgmr.msra.gmra.mxu0 %vm336_vm3, %v7751_v18 }
 0x258   :  { %6798 = vmatprep.mubr.msk.f32.mxu0 %vm7551_vm2, %v7550_v13 }
 0x313   :  { %v407_v21 = vpop.f32.mrf.mxu0 }
 0x314   :  { %v488_v22 = vsel %vm336_vm3, %v407_v21, -inf }
 0x315   :  { %489 = vmax.xlane.f32.xlu1 %v488_v22  ;;  %v6785_v23 = vpop.f32.mrf.mxu0 }
 0x317   :  { %v484_v24 = vpop.f32.mrf.mxu0 }
 0x318   :  { %v491_v25 = vsel %vm336_vm3, %v484_v24, -inf }
 0x319   :  { %492 = vmax.xlane.f32.xlu1 %v491_v25  ;;  %v6790_v26 = vpop.f32.mrf.mxu0 }
 0x32a   :  { %510 = vrot.lane.b32.xlu1 %v7746_v17, %s7553_s2 }
 0x32e   :  { %586 = vrot.lane.b32.xlu1 %v7751_v18, %s7553_s2 }
 0x332   :  { %664 = vrot.lane.b32.xlu1 %v7746_v17, %s7554_s22 }
 0x336   :  { %742 = vrot.lane.b32.xlu1 %v7751_v18, %s7554_s22 }
 0x39e   :  { %v490_v27 = vpop.xlane.xlu1 %489 }
 0x39f   :  { %v494_v28 = vsub.f32 %v407_v21, %v490_v27  ;;  %v7839_v27 = vld [vmem:[%s8626_s5 + $0x8] sm:$0xff] }
 0x3a1   :  { %v496_v29 = vmul.f32 1.442695, %v494_v28 }
 0x3a2   :  { %v493_v30 = vpop.xlane.xlu1 %492 }
 0x3a3   :  { %7233 = vpow2.f32 %v496_v29  ;;  %v495_v31 = vsub.f32 %v484_v24, %v493_v30 }
 0x3a5   :  { %v498_v32 = vmul.f32 1.442695, %v495_v31 }
 0x3a6   :  { %v511_v33 = vpop.permute.xlu1 %510 }
 0x3a7   :  { %7235 = vpow2.f32 %v498_v32  ;;  %6792 = vmatpush3.msra.mxu1 %v511_v33 }
 0x3a8   :  { %6801 = vmatprep.subr.mxu1 %v7550_v13 }
 0x3aa   :  { %v587_v34 = vpop.permute.xlu1 %586 }
 0x3ab   :  { %6797 = vmatpush3.msra.mxu0 %v587_v34 }
 0x3ac   :  { %6806 = vmatprep.subr.mxu0 %v7550_v13 }
 0x3ae   :  { %v665_v39 = vpop.permute.xlu1 %664 }
 0x3b0   :  { %v7234_v35 = vpop.eup %7233 }
 0x3b1   :  { %v500_v36 = vsel %vm336_vm3, %v7234_v35, 0.0 }
 0x3b2   :  { %501 = vadd.xlane.f32.xlu0 %v500_v36  ;;  %v743_v40 = vpop.permute.xlu1 %742 }
 0x3b4   :  { %v7236_v37 = vpop.eup %7235 }
 0x3b5   :  { %v503_v38 = vsel %vm336_vm3, %v7236_v37, 0.0 }
 0x3b6   :  { %504 = vadd.xlane.f32.xlu1 %v503_v38 }
 0x3c7   :  { %740 = vrot.lane.b32.xlu1 %v7751_v18, %s7555_s25 }
 0x3c8   :  { %662 = vrot.lane.b32.xlu0 %v7746_v17, %s7555_s25 }
 0x43b   :  { %v502_v41 = vpop.xlane.xlu0 %501 }
 0x43c   :  { %7237 = vrcp.f32 %v502_v41 }
 0x43f   :  { %v505_v42 = vpop.xlane.xlu1 %504  ;;  %v663_v47 = vpop.permute.xlu0 %662 }
 0x440   :  { %7239 = vrcp.f32 %v505_v42 }
 0x443   :  { %v741_v48 = vpop.permute.xlu1 %740 }
 0x449   :  { %v7238_v43 = vpop.eup %7237 }
 0x44a   :  { %v508_v44 = vmul.f32 %v7238_v43, %v7234_v35 }
 0x44c   :  { %6794 = vmatmul.mubr.msk.f32.vlgmr.msra.gmra.mxu1 %vm336_vm3, %v508_v44 }
 0x44d   :  { %v7240_v45 = vpop.eup %7239  ;;  %6802 = vmatpush3.xpose.msk.msra.mxu1 %vm336_vm3, %v665_v39  ;;  %6803 = vmatprep.mubr.msk.f32.mxu1 %vm7551_vm2, %v7550_v13 }
 0x44e   :  { %v509_v46 = vmul.f32 %v7240_v45, %v7236_v37  ;;  %6811 = vmatprep.subr.mxu1 %v7550_v13 }
 0x450   :  { %6799 = vmatmul.mubr.msk.f32.vlgmr.msra.gmra.mxu0 %vm336_vm3, %v509_v46  ;;  %6804 = vmatmul.mubr.msk.f32.vlgmr.msra.gmra.mxu1 %vm336_vm3, %v663_v47 }
 0x451   :  { %6807 = vmatpush3.xpose.msk.msra.mxu0 %vm336_vm3, %v743_v40  ;;  %6808 = vmatprep.mubr.msk.f32.mxu0 %vm7551_vm2, %v7550_v13 }
 0x452   :  { %6816 = vmatprep.subr.mxu0 %v7550_v13  ;;  %6813 = vmatprep.mubr.msk.f32.mxu1 %vm7551_vm2, %v7550_v13 }
 0x454   :  { %6809 = vmatmul.mubr.msk.f32.vlgmr.msra.gmra.mxu0 %vm336_vm3, %v741_v48 }
 0x455   :  { %6818 = vmatprep.mubr.msk.f32.mxu0 %vm7551_vm2, %v7550_v13 }
 0x50c   :  { %v582_v49 = vpop.f32.mrf.mxu1 }
 0x50e   :  { %v6795_v50 = vpop.f32.mrf.mxu1 }
 0x510   :  { %v658_v51 = vpop.f32.mrf.mxu0  ;;  %v736_v52 = vpop.f32.mrf.mxu1 }
 0x511   :  { %v818_v53 = vsel %vm336_vm3, %v736_v52, -inf }
 0x512   :  { %v6800_v54 = vpop.f32.mrf.mxu0  ;;  %819 = vmax.xlane.f32.xlu1 %v818_v53  ;;  %v6805_v55 = vpop.f32.mrf.mxu1 }
 0x514   :  { %v814_v56 = vpop.f32.mrf.mxu0 }
 0x515   :  { %v821_v57 = vsel %vm336_vm3, %v814_v56, -inf }
 0x516   :  { %822 = vmax.xlane.f32.xlu0 %v821_v57  ;;  %v6810_v58 = vpop.f32.mrf.mxu0 }
 0x52c   :  { %916 = vrot.lane.b32.xlu0 %v7751_v18, %s7556_s3 }
 0x530   :  { %1154 = vrot.lane.b32.xlu0 %v7746_v17, %s7557_s26 }
 0x59b   :  { %v820_v59 = vpop.xlane.xlu1 %819 }
 0x59c   :  { %v824_v60 = vsub.f32 %v736_v52, %v820_v59 }
 0x59e   :  { %v826_v61 = vmul.f32 1.442695, %v824_v60 }
 0x59f   :  { %v823_v62 = vpop.xlane.xlu0 %822 }
 0x5a0   :  { %7241 = vpow2.f32 %v826_v61  ;;  %v825_v63 = vsub.f32 %v814_v56, %v823_v62 }
 0x5a2   :  { %v828_v0 = vmul.f32 1.442695, %v825_v63  ;;  %v7890_v63 = vld [vmem:[%s8626_s5 + $0x10] sm:$0xff] }
 0x5a3   :  { %v917_v1 = vpop.permute.xlu0 %916 }
 0x5a4   :  { %7243 = vpow2.f32 %v828_v0  ;;  %6817 = vmatpush3.msra.mxu0 %v917_v1 }
 0x5a5   :  { %6826 = vmatprep.subr.mxu0 %v7818_v10 }
 0x5a7   :  { %v1155_v32 = vpop.permute.xlu0 %1154 }
 0x5ad   :  { %v7242_v2 = vpop.eup %7241 }
 0x5ae   :  { %v830_v4 = vsel %vm336_vm3, %v7242_v2, 0.0 }
 0x5af   :  { %831 = vadd.xlane.f32.xlu1 %v830_v4 }
 0x5b1   :  { %v7244_v8 = vpop.eup %7243 }
 0x5b2   :  { %v833_v9 = vsel %vm336_vm3, %v7244_v8, 0.0 }
 0x5b3   :  { %834 = vadd.xlane.f32.xlu1 %v833_v9 }
 0x5c4   :  { %840 = vrot.lane.b32.xlu1 %v7746_v17, %s7556_s3 }
 0x5c8   :  { %1156 = vrot.lane.b32.xlu1 %v7746_v17, %s7558_s27 }
 0x5cc   :  { %1234 = vrot.lane.b32.xlu1 %v7751_v18, %s7558_s27 }
 0x5d0   :  { %1232 = vrot.lane.b32.xlu1 %v7751_v18, %s7557_s26 }
 0x638   :  { %v832_v14 = vpop.xlane.xlu1 %831 }
 0x639   :  { %7245 = vrcp.f32 %v832_v14 }
 0x63c   :  { %v835_v16 = vpop.xlane.xlu1 %834 }
 0x63d   :  { %7247 = vrcp.f32 %v835_v16 }
 0x640   :  { %v841_v19 = vpop.permute.xlu1 %840 }
 0x641   :  { %6812 = vmatpush3.msra.mxu1 %v841_v19 }
 0x642   :  { %6821 = vmatprep.subr.mxu1 %v7839_v27 }
 0x644   :  { %v1157_v22 = vpop.permute.xlu1 %1156 }
 0x646   :  { %v7246_v20 = vpop.eup %7245 }
 0x647   :  { %v838_v21 = vmul.f32 %v7246_v20, %v7242_v2 }
 0x648   :  { %v1235_v25 = vpop.permute.xlu1 %1234 }
 0x649   :  { %6814 = vmatmul.mubr.msk.f32.vlgmr.msra.gmra.mxu1 %vm336_vm3, %v838_v21 }
 0x64a   :  { %v7248_v23 = vpop.eup %7247  ;;  %6822 = vmatpush3.msra.mxu1 %v7839_v27 }
 0x64b   :  { %v839_v24 = vmul.f32 %v7248_v23, %v7244_v8  ;;  %6831 = vmatprep.subr.mxu1 %v7550_v13 }
 0x64c   :  { %v1233_v26 = vpop.permute.xlu1 %1232 }
 0x64d   :  { %6819 = vmatmul.mubr.msk.f32.vlgmr.msra.gmra.mxu0 %vm336_vm3, %v839_v24 }
 0x64e   :  { %6828 = vmatprep.mubr.msk.f32.mxu0 %vm336_vm3, %v582_v49  ;;  %6827 = vmatpush3.msra.mxu0 %v7818_v10 }
 0x64f   :  { %6836 = vmatprep.subr.mxu0 %v7550_v13 }
 0x651   :  { %6829 = vmatmul.mubr.msk.f32.vlgmr.msra.gmra.mxu0 %vm336_vm3, %v658_v51 }
 0x652   :  { %6837 = vmatpush3.xpose.msk.msra.mxu0 %vm336_vm3, %v1235_v25  ;;  %6838 = vmatprep.mubr.msk.f32.mxu0 %vm7551_vm2, %v7550_v13 }
 0x653   :  { %6846 = vmatprep.subr.mxu0 %v7550_v13 }
 0x655   :  { %6839 = vmatmul.mubr.msk.f32.vlgmr.msra.gmra.mxu0 %vm336_vm3, %v1233_v26 }
 0x656   :  { %6848 = vmatprep.mubr.msk.f32.mxu0 %vm7551_vm2, %v7550_v13 }
 0x709   :  { %v912_v28 = vpop.f32.mrf.mxu1 }
 0x70a   :  { %6823 = vmatprep.mubr.msk.f32.mxu1 %vm336_vm3, %v912_v28 }
 0x70b   :  { %v6815_v29 = vpop.f32.mrf.mxu1 }
 0x70d   :  { %v988_v30 = vpop.f32.mrf.mxu0 }
 0x70e   :  { %6824 = vmatmul.mubr.msk.f32.vlgmr.msra.gmra.mxu1 %vm336_vm3, %v988_v30 }
 0x70f   :  { %6832 = vmatpush3.xpose.msk.msra.mxu1 %vm336_vm3, %v1157_v22  ;;  %v6820_v31 = vpop.f32.mrf.mxu0  ;;  %6833 = vmatprep.mubr.msk.f32.mxu1 %vm7551_vm2, %v7550_v13 }
 0x710   :  { %6841 = vmatprep.subr.mxu1 %v7550_v13 }
 0x711   :  { %v7850_v33 = vpop.f32.mrf.mxu0 }
 0x712   :  { %6834 = vmatmul.mubr.msk.f32.vlgmr.msra.gmra.mxu1 %vm336_vm3, %v1155_v32 }
 0x713   :  { %v7853_v34 = vpop.f32.mrf.mxu0  ;;  %6843 = vmatprep.mubr.msk.f32.mxu1 %vm7551_vm2, %v7550_v13 }
 0x715   :  { %v1306_v35 = vpop.f32.mrf.mxu0 }
 0x716   :  { %v1313_v36 = vsel %vm336_vm3, %v1306_v35, -inf }
 0x717   :  { %1314 = vmax.xlane.f32.xlu1 %v1313_v36  ;;  %v6840_v37 = vpop.f32.mrf.mxu0 }
 0x728   :  { %1332 = vrot.lane.b32.xlu1 %v7746_v17, %s7559_s29 }
 0x72c   :  { %1569 = vrot.lane.b32.xlu1 %v7746_v17, %s7560_s30 }
 0x730   :  { %1647 = vrot.lane.b32.xlu1 %v7751_v18, %s7560_s30 }
 0x734   :  { %1645 = vrot.lane.b32.xlu1 %v7751_v18, %s7561_s0 }
 0x7a0   :  { %v1315_v38 = vpop.xlane.xlu1 %1314 }
 0x7a1   :  { %v1317_v40 = vsub.f32 %v1306_v35, %v1315_v38 }
 0x7a3   :  { %v1320_v41 = vmul.f32 1.442695, %v1317_v40 }
 0x7a4   :  { %v1333_v39 = vpop.permute.xlu1 %1332 }
 0x7a5   :  { %6842 = vmatpush3.msra.mxu1 %v1333_v39  ;;  %7249 = vpow2.f32 %v1320_v41 }
 0x7a6   :  { %6851 = vmatprep.subr.mxu1 %v7890_v63 }
 0x7a8   :  { %v1570_v59 = vpop.permute.xlu1 %1569 }
 0x7ac   :  { %v1648_v9 = vpop.permute.xlu1 %1647 }
 0x7b0   :  { %v1646_v19 = vpop.permute.xlu1 %1645 }
 0x7b2   :  { %v7250_v46 = vpop.eup %7249 }
 0x7b3   :  { %v1325_v48 = vsel %vm336_vm3, %v7250_v46, 0.0 }
 0x7ce   :  { %v7866_v42 = vpop.f32.mrf.mxu1 }
 0x7cf   :  { %v1151_v25 = vadd.f32 %v7850_v33, %v7866_v42 }
 0x7d0   :  { %v7868_v43 = vpop.f32.mrf.mxu1 }
 0x7d1   :  { %v1146_v28 = vadd.f32 %v7853_v34, %v7868_v43 }
 0x7d2   :  { %v1228_v44 = vpop.f32.mrf.mxu1 }
 0x7d3   :  { %v1310_v45 = vsel %vm336_vm3, %v1228_v44, -inf }
 0x7d4   :  { %1311 = vmax.xlane.f32.xlu0 %v1310_v45  ;;  %v6835_v47 = vpop.f32.mrf.mxu1 }
 0x7d8   :  { %1326 = vadd.xlane.f32.xlu0 %v1325_v48 }
 0x85d   :  { %v1312_v49 = vpop.xlane.xlu0 %1311 }
 0x85e   :  { %v1316_v50 = vsub.f32 %v1228_v44, %v1312_v49 }
 0x860   :  { %v1318_v51 = vmul.f32 1.442695, %v1316_v50 }
 0x861   :  { %v1327_v54 = vpop.xlane.xlu0 %1326 }
 0x862   :  { %7251 = vpow2.f32 %v1318_v51  ;;  %v7927_v51 = vld [vmem:[#allocation7] ss:$0 sm:$0xff] }
 0x863   :  { %7253 = vrcp.f32 %v1327_v54 }
 0x86f   :  { %v7252_v52 = vpop.eup %7251 }
 0x870   :  { %v1322_v53 = vsel %vm336_vm3, %v7252_v52, 0.0  ;;  %v7254_v56 = vpop.eup %7253 }
 0x871   :  { %1323 = vadd.xlane.f32.xlu0 %v1322_v53  ;;  %v1331_v58 = vmul.f32 %v7254_v56, %v7250_v46 }
 0x887   :  { %1408 = vrot.lane.b32.xlu0 %v7751_v18, %s7559_s29 }
 0x88b   :  { %1567 = vrot.lane.b32.xlu0 %v7746_v17, %s7561_s0 }
 0x8fa   :  { %v1324_v55 = vpop.xlane.xlu0 %1323 }
 0x8fb   :  { %7255 = vrcp.f32 %v1324_v55 }
 0x8fe   :  { %v1409_v57 = vpop.permute.xlu0 %1408 }
 0x8ff   :  { %6847 = vmatpush3.msra.mxu0 %v1409_v57 }
 0x900   :  { %6849 = vmatmul.mubr.msk.f32.vlgmr.msra.gmra.mxu0 %vm336_vm3, %v1331_v58  ;;  %6856 = vmatprep.subr.mxu0 %v7550_v13 }
 0x901   :  { %6857 = vmatpush3.xpose.msk.msra.mxu0 %vm336_vm3, %v1570_v59  ;;  %6858 = vmatprep.mubr.msk.f32.mxu0 %vm7551_vm2, %v7550_v13 }
 0x902   :  { %v1568_v60 = vpop.permute.xlu0 %1567  ;;  %6866 = vmatprep.subr.mxu0 %v7550_v13 }
 0x904   :  { %6859 = vmatmul.mubr.msk.f32.vlgmr.msra.gmra.mxu0 %vm336_vm3, %v1568_v60 }
 0x905   :  { %6868 = vmatprep.mubr.msk.f32.mxu0 %vm7551_vm2, %v7550_v13 }
 0x908   :  { %v7256_v61 = vpop.eup %7255 }
 0x909   :  { %v1330_v62 = vmul.f32 %v7256_v61, %v7252_v52 }
 0x90b   :  { %6844 = vmatmul.mubr.msk.f32.vlgmr.msra.gmra.mxu1 %vm336_vm3, %v1330_v62 }
 0x90c   :  { %6852 = vmatpush3.msra.mxu1 %v7890_v63 }
 0x90d   :  { %6861 = vmatprep.subr.mxu1 %v7550_v13 }
 0x9c0   :  { %v1480_v0 = vpop.f32.mrf.mxu0 }
 0x9c2   :  { %v6850_v1 = vpop.f32.mrf.mxu0 }
 0x9c4   :  { %v1641_v2 = vpop.f32.mrf.mxu0 }
 0x9c5   :  { %v1723_v4 = vsel %vm336_vm3, %v1641_v2, -inf }
 0x9c6   :  { %1724 = vmax.xlane.f32.xlu0 %v1723_v4  ;;  %v6860_v8 = vpop.f32.mrf.mxu0 }
 0x9cb   :  { %v1404_v14 = vpop.f32.mrf.mxu1 }
 0x9cc   :  { %6853 = vmatprep.mubr.msk.f32.mxu1 %vm336_vm3, %v1404_v14 }
 0x9cd   :  { %v6845_v16 = vpop.f32.mrf.mxu1  ;;  %6854 = vmatmul.mubr.msk.f32.vlgmr.msra.gmra.mxu1 %vm336_vm3, %v1480_v0 }
 0x9ce   :  { %6862 = vmatpush3.xpose.msk.msra.mxu1 %vm336_vm3, %v1648_v9  ;;  %6863 = vmatprep.mubr.msk.f32.mxu1 %vm7551_vm2, %v7550_v13 }
 0x9cf   :  { %6871 = vmatprep.subr.mxu1 %v7550_v13 }
 0x9d1   :  { %6864 = vmatmul.mubr.msk.f32.vlgmr.msra.gmra.mxu1 %vm336_vm3, %v1646_v19  ;;  %v7945_v19 = vld [vmem:[%s8630_s9 + $0x10] sm:$0xff] }
 0x9d2   :  { %6873 = vmatprep.mubr.msk.f32.mxu1 %vm7551_vm2, %v7550_v13 }
 0xa4f   :  { %v1725_v20 = vpop.xlane.xlu0 %1724 }
 0xa50   :  { %v1729_v21 = vsub.f32 %v1641_v2, %v1725_v20  ;;  %v7952_v20 = vld [vmem:[%s8630_s9 + $0x8] sm:$0xff] }
 0xa52   :  { %v1731_v22 = vmul.f32 1.442695, %v1729_v21  ;;  %v7959_v21 = vld [vmem:[%s8630_s9] sm:$0xff] }
 0xa54   :  { %7257 = vpow2.f32 %v1731_v22 }
 0xa61   :  { %v7258_v23 = vpop.eup %7257 }
 0xa62   :  { %v1735_v24 = vsel %vm336_vm3, %v7258_v23, 0.0 }
 0xa63   :  { %1736 = vadd.xlane.f32.xlu0 %v1735_v24 }
 0xa8d   :  { %v6855_v26 = vpop.f32.mrf.mxu1 }
 0xa8e   :  { %v1566_v29 = vadd.f32 %v6855_v26, %v1151_v25 }
 0xa8f   :  { %v1556_v30 = vpop.f32.mrf.mxu1 }
 0xa90   :  { %v1565_v31 = vadd.f32 %v1556_v30, %v1146_v28 }
 0xa91   :  { %v1719_v32 = vpop.f32.mrf.mxu1 }
 0xa92   :  { %v1726_v35 = vsel %vm336_vm3, %v1719_v32, -inf }
 0xa93   :  { %1727 = vmax.xlane.f32.xlu1 %v1726_v35  ;;  %v6865_v36 = vpop.f32.mrf.mxu1 }
 0xaa4   :  { %1745 = vrot.lane.b32.xlu1 %v7746_v17, %s7562_s6  ;;  %v7920_v17 = vld [vmem:[%s8626_s5 + $0x18] sm:$0xff] }
 0xaec   :  { %v1737_v37 = vpop.xlane.xlu0 %1736 }
 0xaed   :  { %7259 = vrcp.f32 %v1737_v37  ;;  %v7969_v37 = vld [vmem:[#allocation10] ss:$0 sm:$0xff] }
 0xafa   :  { %v7260_v33 = vpop.eup %7259 }
 0xafb   :  { %v1743_v34 = vmul.f32 %v7260_v33, %v7258_v23 }
 0xb1c   :  { %v1728_v38 = vpop.xlane.xlu1 %1727 }
 0xb1d   :  { %v1730_v39 = vsub.f32 %v1719_v32, %v1728_v38 }
 0xb1f   :  { %v1733_v40 = vmul.f32 1.442695, %v1730_v39 }
 0xb20   :  { %v1746_v41 = vpop.permute.xlu1 %1745 }
 0xb21   :  { %7261 = vpow2.f32 %v1733_v40  ;;  %6867 = vmatpush3.msra.mxu0 %v1746_v41  ;;  %v7993_v40 = vld [vmem:[%s8632_s11 + $0x38] sm:$0xff]  ;;  %v8026_v41 = vld [vmem:[%s8632_s11 + $0x10] sm:$0xff] }
 0xb22   :  { %6869 = vmatmul.mubr.msk.f32.vlgmr.msra.gmra.mxu0 %vm336_vm3, %v1743_v34  ;;  %6876 = vmatprep.subr.mxu0 %v7920_v17  ;;  %v8033_v34 = vld [vmem:[%s8632_s11 + $0x8] sm:$0xff] }
 0xb23   :  { %6877 = vmatpush3.msra.mxu0 %v7920_v17 }
 0xb24   :  { %6892 = vmatprep.subr.mxu0 %v7993_v40 }
 0xb2e   :  { %v7262_v42 = vpop.eup %7261 }
 0xb2f   :  { %v1738_v43 = vsel %vm336_vm3, %v7262_v42, 0.0 }
 0xb30   :  { %1739 = vadd.xlane.f32.xlu0 %v1738_v43  ;;  %v8050_v43 = vld [vmem:[%s8631_s10] ss:$0 sm:$0xff] }
 0xb46   :  { %1821 = vrot.lane.b32.xlu0 %v7751_v18, %s7562_s6 }
 0xbb9   :  { %v1740_v44 = vpop.xlane.xlu0 %1739 }
 0xbba   :  { %7263 = vrcp.f32 %v1740_v44 }
 0xbbd   :  { %v1822_v45 = vpop.permute.xlu0 %1821 }
 0xbbe   :  { %6872 = vmatpush3.msra.mxu1 %v1822_v45 }
 0xbc7   :  { %v7264_v46 = vpop.eup %7263 }
 0xbc8   :  { %v1744_v47 = vmul.f32 %v7264_v46, %v7262_v42  ;;  %v8040_v42 = vld [vmem:[%s8632_s11] sm:$0xff] }
 0xbca   :  { %6874 = vmatmul.mubr.msk.f32.vlgmr.msra.gmra.mxu1 %vm336_vm3, %v1744_v47 }
 0xbe2   :  { %v1817_v48 = vpop.f32.mrf.mxu0 }
 0xbe3   :  { %6878 = vmatprep.mubr.msk.f32.mxu0 %vm336_vm3, %v1817_v48 }
 0xbe4   :  { %v6870_v18 = vpop.f32.mrf.mxu0 }
 0xc8a   :  { %v1893_v49 = vpop.f32.mrf.mxu1 }
 0xc8b   :  { %6879 = vmatmul.mubr.msk.f32.vlgmr.msra.gmra.mxu0 %vm336_vm3, %v1893_v49 }
 0xc8c   :  { %v6875_v50 = vpop.f32.mrf.mxu1  ;;  %6893 = vmatpush3.msra.mxu0 %v7993_v40 }
 0xd4b   :  { %v6880_v52 = vpop.f32.mrf.mxu0 }
 0xd4c   :  { %v1979_v53 = vadd.f32 %v6880_v52, %v1566_v29 }
 0xd4d   :  { %v1969_v54 = vpop.f32.mrf.mxu0 }
 0xd4e   :  { %v1987_v55 = vadd.f32 %v7927_v51, %v1979_v53  ;;  %v1978_v56 = vadd.f32 %v1969_v54, %v1565_v31  ;;  %v7966_v31 = vld [vmem:[#allocation8] ss:$0 sm:$0xff] }
 0xd50   :  { %v1986_v57 = vadd.f32 %v7927_v51, %v1978_v56  ;;  %v1989_v58 = vadd.f32 %v1987_v55, %v7731_v12 }
 0xd52   :  { %v1993_v59 = vsel %vm251_vm1, %v1989_v58, 0.0  ;;  %v1988_v60 = vadd.f32 %v1986_v57, %v7729_v11  ;;  %v7940_v11 = vld [vmem:[%s8630_s9 + $0x18] sm:$0xff] }
 0xd53   :  { %1994 = vadd.xlane.f32.xlu0 %v1993_v59  ;;  %6881 = vmatprep.subr.mxu1 %v7940_v11 }
 0xd54   :  { %v1990_v61 = vsel %vm251_vm1, %v1988_v60, 0.0  ;;  %6882 = vmatpush3.msra.mxu1 %v7940_v11 }
 0xd55   :  { %1991 = vadd.xlane.f32.xlu1 %v1990_v61  ;;  %6883 = vmatprep.subr.mxu1 %v7945_v19 }
 0xd56   :  { %6884 = vmatpush3.msra.mxu1 %v7945_v19 }
 0xd57   :  { %6885 = vmatprep.subr.mxu1 %v7952_v20 }
 0xd58   :  { %6886 = vmatpush3.msra.mxu1 %v7952_v20 }
 0xd59   :  { %6887 = vmatprep.subr.mxu1 %v7959_v21 }
 0xd5a   :  { %6888 = vmatpush3.msra.mxu1 %v7959_v21 }
 0xd5b   :  { %6911 = vmatprep.subr.mxu1 %v7700_v3 }
 0xddc   :  { %v1995_v62 = vpop.xlane.xlu0 %1994 }
 0xddd   :  { %v1998_v0 = vmul.f32 0.03125, %v1995_v62 }
 0xdde   :  { %v1992_v1 = vpop.xlane.xlu1 %1991 }
 0xddf   :  { %v2000_v2 = vsub.f32 %v1989_v58, %v1998_v0  ;;  %v1997_v4 = vmul.f32 0.03125, %v1992_v1 }
 0xde1   :  { %v1999_v8 = vsub.f32 %v1988_v60, %v1997_v4  ;;  %v2002_v9 = vmul.f32 %v2000_v2, %v2000_v2  ;;  %v8061_v4 = vld [vmem:[%s8633_s12] ss:$0 sm:$0xff] }
 0xde3   :  { %v2006_v14 = vsel %vm251_vm1, %v2002_v9, 0.0  ;;  %v2001_v16 = vmul.f32 %v1999_v8, %v1999_v8 }
 0xde4   :  { %2007 = vadd.xlane.f32.xlu0 %v2006_v14 }
 0xde5   :  { %v2003_v12 = vsel %vm251_vm1, %v2001_v16, 0.0 }
 0xde6   :  { %2004 = vadd.xlane.f32.xlu1 %v2003_v12 }
 0xe6d   :  { %v2008_v22 = vpop.xlane.xlu0 %2007 }
 0xe6e   :  { %v2010_v23 = vmul.f32 0.03125, %v2008_v22 }
 0xe6f   :  { %v2005_v24 = vpop.xlane.xlu1 %2004 }
 0xe70   :  { %v2012_v25 = vadd.f32 1e-12, %v2010_v23  ;;  %v2009_v26 = vmul.f32 0.03125, %v2005_v24 }
 0xe72   :  { %7265 = vrsqrt.f32 %v2012_v25  ;;  %v2011_v28 = vadd.f32 1e-12, %v2009_v26 }
 0xe74   :  { %7267 = vrsqrt.f32 %v2011_v28 }
 0xe7f   :  { %v7266_v29 = vpop.eup %7265 }
 0xe80   :  { %v2016_v30 = vmul.f32 %v7266_v29, %v2000_v2 }
 0xe81   :  { %v7268_v32 = vpop.eup %7267 }
 0xe82   :  { %v2015_v35 = vmul.f32 %v7268_v32, %v1999_v8  ;;  %v2024_v36 = vmul.f32 %v7966_v31, %v2016_v30 }
 0xe84   :  { %v2023_v38 = vmul.f32 %v7966_v31, %v2015_v35  ;;  %v7976_v39 = vadd.f32 %v7969_v37, %v2024_v36 }
 0xe86   :  { %v7973_v33 = vadd.f32 %v7969_v37, %v2023_v38 }
 0xe88   :  { %6889 = vmatprep.mubr.msk.f32.mxu1 %vm251_vm1, %v7973_v33 }
 0xe89   :  { %6890 = vmatmul.mubr.msk.f32.vlgmr.msra.gmra.mxu1 %vm251_vm1, %v7976_v39 }
 0xe8a   :  { %6912 = vmatpush3.msra.mxu1 %v7700_v3  ;;  %v7998_v3 = vld [vmem:[%s8632_s11 + $0x30] sm:$0xff] }
 0xe8b   :  { %6913 = vmatprep.subr.mxu1 %v7711_v5  ;;  %6894 = vmatprep.subr.mxu0 %v7998_v3 }
 0xe8c   :  { %6914 = vmatpush3.msra.mxu1 %v7711_v5  ;;  %v8005_v5 = vld [vmem:[%s8632_s11 + $0x28] sm:$0xff]  ;;  %6895 = vmatpush3.msra.mxu0 %v7998_v3 }
 0xe8d   :  { %6915 = vmatprep.subr.mxu1 %v7718_v6  ;;  %6896 = vmatprep.subr.mxu0 %v8005_v5 }
 0xe8e   :  { %6916 = vmatpush3.msra.mxu1 %v7718_v6  ;;  %v8012_v6 = vld [vmem:[%s8632_s11 + $0x20] sm:$0xff]  ;;  %6897 = vmatpush3.msra.mxu0 %v8005_v5 }
 0xe8f   :  { %6917 = vmatprep.subr.mxu1 %v7725_v7  ;;  %6898 = vmatprep.subr.mxu0 %v8012_v6 }
 0xe90   :  { %6918 = vmatpush3.msra.mxu1 %v7725_v7  ;;  %v8019_v7 = vld [vmem:[%s8632_s11 + $0x18] sm:$0xff]  ;;  %6899 = vmatpush3.msra.mxu0 %v8012_v6 }
 0xe91   :  { %6922 = vmatprep.subr.mxu1 %v7550_v13  ;;  %6900 = vmatprep.subr.mxu0 %v8019_v7 }
 0xe92   :  { %6901 = vmatpush3.msra.mxu0 %v8019_v7 }
 0xe93   :  { %6902 = vmatprep.subr.mxu0 %v8026_v41 }
 0xe94   :  { %6903 = vmatpush3.msra.mxu0 %v8026_v41 }
 0xe95   :  { %6904 = vmatprep.subr.mxu0 %v8033_v34 }
 0xe96   :  { %6905 = vmatpush3.msra.mxu0 %v8033_v34 }
 0xe97   :  { %6906 = vmatprep.subr.mxu0 %v8040_v42 }
 0xe98   :  { %6907 = vmatpush3.msra.mxu0 %v8040_v42 }
 0xe99   :  { %6927 = vmatprep.subr.mxu0 %v7550_v13 }
 0xf49   :  { %v6891_v44 = vpop.f32.mrf.mxu1 }
 0xf4a   :  { %v2117_v45 = vadd.f32 %v6891_v44, %v8050_v43 }
 0xf4b   :  { %v2111_v46 = vpop.f32.mrf.mxu1 }
 0xf4c   :  { %v2123_v47 = vmul.f32 0.044715, %v2117_v45  ;;  %v2112_v48 = vadd.f32 %v8050_v43, %v2111_v46  ;;  %v2121_v0 = vmul.f32 0.5, %v2117_v45 }
 0xf4e   :  { %v2125_v18 = vmul.f32 %v2123_v47, %v2117_v45  ;;  %v2122_v49 = vmul.f32 0.044715, %v2112_v48  ;;  %v2120_v61 = vmul.f32 0.5, %v2112_v48 }
 0xf50   :  { %v2127_v50 = vmul.f32 %v2125_v18, %v2117_v45  ;;  %v2124_v52 = vmul.f32 %v2122_v49, %v2112_v48 }
 0xf52   :  { %v2129_v53 = vadd.f32 %v2127_v50, %v2117_v45  ;;  %v2126_v54 = vmul.f32 %v2124_v52, %v2112_v48  ;;  %v8074_v50 = vld [vmem:[%s8634_s13] ss:$0 sm:$0xff] }
 0xf54   :  { %v2131_v55 = vmul.f32 0.7978846, %v2129_v53  ;;  %v2128_v56 = vadd.f32 %v2126_v54, %v2112_v48 }
 0xf56   :  { %7269 = vtanh.f32 %v2131_v55  ;;  %v2130_v57 = vmul.f32 0.7978846, %v2128_v56  ;;  %v8080_v55 = vld [vmem:[%s8635_s14] ss:$0 sm:$0xff] }
 0xf58   :  { %7271 = vtanh.f32 %v2130_v57 }
 0xf63   :  { %v7270_v58 = vpop.eup %7269 }
 0xf64   :  { %v2135_v60 = vadd.f32 1.0, %v7270_v58 }
 0xf65   :  { %v7272_v59 = vpop.eup %7271 }
 0xf66   :  { %v2134_v62 = vadd.f32 1.0, %v7272_v59  ;;  %v2137_v2 = vmul.f32 %v2135_v60, %v2121_v0 }
 0xf68   :  { %v2136_v1 = vmul.f32 %v2134_v62, %v2120_v61 }
 0xf6a   :  { %6908 = vmatprep.mubr.msk.f32.mxu0 %vm2144_vm4, %v2136_v1 }
 0xf6b   :  { %6909 = vmatmul.mubr.msk.f32.vlgmr.msra.gmra.mxu0 %vm2144_vm4, %v2137_v2 }
 0xf6c   :  { %6929 = vmatprep.mubr.msk.f32.mxu0 %vm7551_vm2, %v7550_v13 }
0x102b   :  { %v6910_v8 = vpop.f32.mrf.mxu0 }
0x102c   :  { %v2223_v9 = vadd.f32 %v6910_v8, %v8061_v4 }
0x102d   :  { %v2217_v14 = vpop.f32.mrf.mxu0 }
0x102e   :  { %v2218_v16 = vadd.f32 %v8061_v4, %v2217_v14  ;;  %v2227_v12 = vadd.f32 %v2223_v9, %v7976_v39 }
0x1030   :  { %v2231_v22 = vsel %vm251_vm1, %v2227_v12, 0.0  ;;  %v2226_v23 = vadd.f32 %v2218_v16, %v7973_v33 }
0x1031   :  { %2232 = vadd.xlane.f32.xlu0 %v2231_v22 }
0x1032   :  { %v2228_v24 = vsel %vm251_vm1, %v2226_v23, 0.0 }
0x1033   :  { %2229 = vadd.xlane.f32.xlu1 %v2228_v24 }
0x10ba   :  { %v2233_v25 = vpop.xlane.xlu0 %2232 }
0x10bb   :  { %v2235_v26 = vmul.f32 0.03125, %v2233_v25 }
0x10bc   :  { %v2230_v28 = vpop.xlane.xlu1 %2229 }
0x10bd   :  { %v2237_v29 = vsub.f32 %v2227_v12, %v2235_v26  ;;  %v2234_v30 = vmul.f32 0.03125, %v2230_v28 }
0x10bf   :  { %v2236_v32 = vsub.f32 %v2226_v23, %v2234_v30  ;;  %v2239_v35 = vmul.f32 %v2237_v29, %v2237_v29 }
0x10c1   :  { %v2243_v36 = vsel %vm251_vm1, %v2239_v35, 0.0  ;;  %v2238_v38 = vmul.f32 %v2236_v32, %v2236_v32 }
0x10c2   :  { %2244 = vadd.xlane.f32.xlu0 %v2243_v36 }
0x10c3   :  { %v2240_v39 = vsel %vm251_vm1, %v2238_v38, 0.0 }
0x10c4   :  { %2241 = vadd.xlane.f32.xlu1 %v2240_v39 }
0x114b   :  { %v2245_v44 = vpop.xlane.xlu0 %2244 }
0x114c   :  { %v2247_v33 = vmul.f32 0.03125, %v2245_v44 }
0x114d   :  { %v2242_v45 = vpop.xlane.xlu1 %2241 }
0x114e   :  { %v2249_v46 = vadd.f32 1e-12, %v2247_v33  ;;  %v2246_v47 = vmul.f32 0.03125, %v2242_v45 }
0x1150   :  { %7273 = vrsqrt.f32 %v2249_v46  ;;  %v2248_v48 = vadd.f32 1e-12, %v2246_v47 }
0x1152   :  { %7275 = vrsqrt.f32 %v2248_v48 }
0x115d   :  { %v7274_v18 = vpop.eup %7273 }
0x115e   :  { %v2253_v49 = vmul.f32 %v7274_v18, %v2237_v29 }
0x115f   :  { %v7276_v52 = vpop.eup %7275 }
0x1160   :  { %v2252_v53 = vmul.f32 %v7276_v52, %v2236_v32  ;;  %v2261_v54 = vmul.f32 %v8074_v50, %v2253_v49 }
0x1162   :  { %v2260_v56 = vmul.f32 %v8074_v50, %v2252_v53  ;;  %v8087_v58 = vadd.f32 %v8080_v55, %v2261_v54 }
0x1164   :  { %v8084_v57 = vadd.f32 %v8080_v55, %v2260_v56 }
0x1166   :  { %6919 = vmatprep.mubr.msk.f32.mxu1 %vm251_vm1, %v8084_v57 }
0x1167   :  { %6920 = vmatmul.mubr.msk.f32.vlgmr.msra.gmra.mxu1 %vm251_vm1, %v8087_v58 }
0x1168   :  { %6924 = vmatprep.mubr.msk.f32.mxu1 %vm7551_vm2, %v7550_v13 }
0x1227   :  { %v6921_v59 = vpop.f32.mrf.mxu1 }
0x1228   :  { %v8096_v60 = vadd.f32 %v6921_v59, %v7743_v15 }
0x1229   :  { %v2342_v61 = vpop.f32.mrf.mxu1 }
0x122a   :  { %v8099_v62 = vadd.f32 %v7743_v15, %v2342_v61  ;;  %2429 = vrot.lane.b32.xlu0 %v8096_v60, %s7552_s23 }
0x122c   :  { %2352 = vrot.lane.b32.xlu1 %v8099_v62, %s7552_s23 }
0x129c   :  { %v2430_v0 = vpop.permute.xlu0 %2429 }
0x129d   :  { %6928 = vmatpush3.xpose.msk.msra.mxu0 %vm336_vm3, %v2430_v0 }
0x129e   :  { %v2353_v1 = vpop.permute.xlu1 %2352  ;;  %6937 = vmatprep.subr.mxu0 %v7550_v13 }
0x129f   :  { %6923 = vmatpush3.xpose.msk.msra.mxu1 %vm336_vm3, %v2353_v1 }
0x12a0   :  { %6930 = vmatmul.mubr.msk.f32.vlgmr.msra.gmra.mxu0 %vm336_vm3, %v8096_v60  ;;  %6932 = vmatprep.subr.mxu1 %v7550_v13 }
0x12a1   :  { %6939 = vmatprep.mubr.msk.f32.mxu0 %vm7551_vm2, %v7550_v13 }
0x12a2   :  { %6925 = vmatmul.mubr.msk.f32.vlgmr.msra.gmra.mxu1 %vm336_vm3, %v8099_v62 }
0x12a3   :  { %6934 = vmatprep.mubr.msk.f32.mxu1 %vm7551_vm2, %v7550_v13 }
0x1360   :  { %v2501_v15 = vpop.f32.mrf.mxu0 }
0x1361   :  { %v2508_v2 = vsel %vm336_vm3, %v2501_v15, -inf }
0x1362   :  { %2509 = vmax.xlane.f32.xlu0 %v2508_v2  ;;  %v2424_v8 = vpop.f32.mrf.mxu1  ;;  %v6931_v9 = vpop.f32.mrf.mxu0 }
0x1363   :  { %v2505_v14 = vsel %vm336_vm3, %v2424_v8, -inf }
0x1364   :  { %2506 = vmax.xlane.f32.xlu1 %v2505_v14  ;;  %v6926_v16 = vpop.f32.mrf.mxu1 }
0x1375   :  { %2527 = vrot.lane.b32.xlu1 %v8099_v62, %s7553_s2 }
0x1378   :  { %2603 = vrot.lane.b32.xlu0 %v8096_v60, %s7553_s2 }
0x1379   :  { %2681 = vrot.lane.b32.xlu1 %v8099_v62, %s7554_s22 }
0x137d   :  { %2759 = vrot.lane.b32.xlu1 %v8096_v60, %s7554_s22 }
0x13eb   :  { %v2510_v12 = vpop.xlane.xlu0 %2509 }
0x13ec   :  { %v2512_v22 = vsub.f32 %v2501_v15, %v2510_v12 }
0x13ed   :  { %v2507_v23 = vpop.xlane.xlu1 %2506 }
0x13ee   :  { %v2515_v24 = vmul.f32 1.442695, %v2512_v22  ;;  %v2511_v25 = vsub.f32 %v2424_v8, %v2507_v23 }
0x13ef   :  { %v2604_v26 = vpop.permute.xlu0 %2603 }
0x13f0   :  { %7277 = vpow2.f32 %v2515_v24  ;;  %v2513_v28 = vmul.f32 1.442695, %v2511_v25  ;;  %6938 = vmatpush3.msra.mxu0 %v2604_v26 }
0x13f1   :  { %v2528_v29 = vpop.permute.xlu1 %2527  ;;  %6947 = vmatprep.subr.mxu0 %v7550_v13 }
0x13f2   :  { %7279 = vpow2.f32 %v2513_v28  ;;  %6933 = vmatpush3.msra.mxu1 %v2528_v29 }
0x13f3   :  { %6942 = vmatprep.subr.mxu1 %v7550_v13 }
0x13f5   :  { %v2682_v38 = vpop.permute.xlu1 %2681 }
0x13f9   :  { %v2760_v39 = vpop.permute.xlu1 %2759 }
0x13fd   :  { %v7278_v30 = vpop.eup %7277 }
0x13fe   :  { %v2520_v32 = vsel %vm336_vm3, %v7278_v30, 0.0 }
0x13ff   :  { %v7280_v35 = vpop.eup %7279  ;;  %2521 = vadd.xlane.f32.xlu0 %v2520_v32 }
0x1400   :  { %v2517_v36 = vsel %vm336_vm3, %v7280_v35, 0.0 }
0x1401   :  { %2518 = vadd.xlane.f32.xlu1 %v2517_v36 }
0x1412   :  { %2757 = vrot.lane.b32.xlu1 %v8096_v60, %s7555_s25 }
0x1415   :  { %2679 = vrot.lane.b32.xlu0 %v8099_v62, %s7555_s25 }
0x1488   :  { %v2522_v44 = vpop.xlane.xlu0 %2521 }
0x1489   :  { %7281 = vrcp.f32 %v2522_v44 }
0x148a   :  { %v2519_v33 = vpop.xlane.xlu1 %2518 }
0x148b   :  { %7283 = vrcp.f32 %v2519_v33 }
0x148c   :  { %v2680_v49 = vpop.permute.xlu0 %2679 }
0x148e   :  { %v2758_v18 = vpop.permute.xlu1 %2757 }
0x1496   :  { %v7282_v45 = vpop.eup %7281 }
0x1497   :  { %v2526_v46 = vmul.f32 %v7282_v45, %v7278_v30 }
0x1498   :  { %v7284_v47 = vpop.eup %7283 }
0x1499   :  { %6940 = vmatmul.mubr.msk.f32.vlgmr.msra.gmra.mxu0 %vm336_vm3, %v2526_v46  ;;  %v2525_v48 = vmul.f32 %v7284_v47, %v7280_v35 }
0x149a   :  { %6948 = vmatpush3.xpose.msk.msra.mxu0 %vm336_vm3, %v2760_v39  ;;  %6949 = vmatprep.mubr.msk.f32.mxu0 %vm7551_vm2, %v7550_v13 }
0x149b   :  { %6935 = vmatmul.mubr.msk.f32.vlgmr.msra.gmra.mxu1 %vm336_vm3, %v2525_v48  ;;  %6957 = vmatprep.subr.mxu0 %v7550_v13 }
0x149c   :  { %6943 = vmatpush3.xpose.msk.msra.mxu1 %vm336_vm3, %v2682_v38  ;;  %6944 = vmatprep.mubr.msk.f32.mxu1 %vm7551_vm2, %v7550_v13 }
0x149d   :  { %6950 = vmatmul.mubr.msk.f32.vlgmr.msra.gmra.mxu0 %vm336_vm3, %v2758_v18  ;;  %6952 = vmatprep.subr.mxu1 %v7550_v13 }
0x149e   :  { %6959 = vmatprep.mubr.msk.f32.mxu0 %vm7551_vm2, %v7550_v13 }
0x149f   :  { %6945 = vmatmul.mubr.msk.f32.vlgmr.msra.gmra.mxu1 %vm336_vm3, %v2680_v49 }
0x14a0   :  { %6954 = vmatprep.mubr.msk.f32.mxu1 %vm7551_vm2, %v7550_v13 }
0x1559   :  { %v2675_v52 = vpop.f32.mrf.mxu0 }
0x155b   :  { %v2599_v53 = vpop.f32.mrf.mxu1  ;;  %v6941_v54 = vpop.f32.mrf.mxu0 }
0x155d   :  { %v6936_v56 = vpop.f32.mrf.mxu1  ;;  %v2831_v59 = vpop.f32.mrf.mxu0 }
0x155e   :  { %v2838_v61 = vsel %vm336_vm3, %v2831_v59, -inf }
0x155f   :  { %2839 = vmax.xlane.f32.xlu1 %v2838_v61  ;;  %v2753_v0 = vpop.f32.mrf.mxu1  ;;  %v6951_v1 = vpop.f32.mrf.mxu0 }
0x1560   :  { %v2835_v15 = vsel %vm336_vm3, %v2753_v0, -inf }
0x1561   :  { %2836 = vmax.xlane.f32.xlu0 %v2835_v15  ;;  %v6946_v2 = vpop.f32.mrf.mxu1 }
0x1570   :  { %2857 = vrot.lane.b32.xlu1 %v8099_v62, %s7556_s3 }
0x1574   :  { %3173 = vrot.lane.b32.xlu1 %v8099_v62, %s7558_s27 }
0x1578   :  { %3251 = vrot.lane.b32.xlu1 %v8096_v60, %s7558_s27 }
0x157c   :  { %3249 = vrot.lane.b32.xlu1 %v8096_v60, %s7557_s26 }
0x15e8   :  { %v2840_v8 = vpop.xlane.xlu1 %2839 }
0x15e9   :  { %v2842_v9 = vsub.f32 %v2831_v59, %v2840_v8 }
0x15ea   :  { %v2837_v14 = vpop.xlane.xlu0 %2836 }
0x15eb   :  { %v2845_v16 = vmul.f32 1.442695, %v2842_v9  ;;  %v2841_v12 = vsub.f32 %v2753_v0, %v2837_v14 }
0x15ec   :  { %v2858_v22 = vpop.permute.xlu1 %2857 }
0x15ed   :  { %7285 = vpow2.f32 %v2845_v16  ;;  %v2843_v23 = vmul.f32 1.442695, %v2841_v12  ;;  %6953 = vmatpush3.msra.mxu1 %v2858_v22 }
0x15ee   :  { %6962 = vmatprep.subr.mxu1 %v7839_v27 }
0x15ef   :  { %7287 = vpow2.f32 %v2843_v23 }
0x15f0   :  { %v3174_v35 = vpop.permute.xlu1 %3173 }
0x15f4   :  { %v3252_v44 = vpop.permute.xlu1 %3251 }
0x15f8   :  { %v3250_v45 = vpop.permute.xlu1 %3249 }
0x15fa   :  { %v7286_v24 = vpop.eup %7285 }
0x15fb   :  { %v2850_v25 = vsel %vm336_vm3, %v7286_v24, 0.0 }
0x15fc   :  { %v7288_v26 = vpop.eup %7287  ;;  %2851 = vadd.xlane.f32.xlu0 %v2850_v25 }
0x15fd   :  { %v2847_v28 = vsel %vm336_vm3, %v7288_v26, 0.0 }
0x1600   :  { %2848 = vadd.xlane.f32.xlu0 %v2847_v28 }
0x1616   :  { %2933 = vrot.lane.b32.xlu0 %v8096_v60, %s7556_s3 }
0x161a   :  { %3171 = vrot.lane.b32.xlu0 %v8099_v62, %s7557_s26 }
0x1685   :  { %v2852_v29 = vpop.xlane.xlu0 %2851 }
0x1686   :  { %7289 = vrcp.f32 %v2852_v29 }
0x1689   :  { %v2849_v30 = vpop.xlane.xlu0 %2848 }
0x168a   :  { %7291 = vrcp.f32 %v2849_v30 }
0x168d   :  { %v2934_v32 = vpop.permute.xlu0 %2933 }
0x168e   :  { %6958 = vmatpush3.msra.mxu0 %v2934_v32 }
0x168f   :  { %6967 = vmatprep.subr.mxu0 %v7818_v10 }
0x1693   :  { %v7290_v36 = vpop.eup %7289 }
0x1694   :  { %v2856_v38 = vmul.f32 %v7290_v36, %v7286_v24 }
0x1696   :  { %6960 = vmatmul.mubr.msk.f32.vlgmr.msra.gmra.mxu0 %vm336_vm3, %v2856_v38 }
0x1697   :  { %v7292_v39 = vpop.eup %7291  ;;  %6969 = vmatprep.mubr.msk.f32.mxu0 %vm336_vm3, %v2599_v53  ;;  %6968 = vmatpush3.msra.mxu0 %v7818_v10 }
0x1698   :  { %6977 = vmatprep.subr.mxu0 %v7550_v13  ;;  %v2855_v33 = vmul.f32 %v7292_v39, %v7288_v26 }
0x169a   :  { %6955 = vmatmul.mubr.msk.f32.vlgmr.msra.gmra.mxu1 %vm336_vm3, %v2855_v33  ;;  %6970 = vmatmul.mubr.msk.f32.vlgmr.msra.gmra.mxu0 %vm336_vm3, %v2675_v52  ;;  %v3172_v52 = vpop.permute.xlu0 %3171 }
0x169b   :  { %6978 = vmatpush3.xpose.msk.msra.mxu0 %vm336_vm3, %v3252_v44  ;;  %6979 = vmatprep.mubr.msk.f32.mxu0 %vm7551_vm2, %v7550_v13 }
0x169c   :  { %6963 = vmatpush3.msra.mxu1 %v7839_v27  ;;  %6987 = vmatprep.subr.mxu0 %v7550_v13 }
0x169d   :  { %6972 = vmatprep.subr.mxu1 %v7550_v13 }
0x169e   :  { %6980 = vmatmul.mubr.msk.f32.vlgmr.msra.gmra.mxu0 %vm336_vm3, %v3250_v45 }
0x169f   :  { %6989 = vmatprep.mubr.msk.f32.mxu0 %vm7551_vm2, %v7550_v13 }
0x1756   :  { %v3005_v10 = vpop.f32.mrf.mxu0 }
0x1758   :  { %v6961_v46 = vpop.f32.mrf.mxu0 }
0x175a   :  { %v2929_v47 = vpop.f32.mrf.mxu1  ;;  %v8184_v48 = vpop.f32.mrf.mxu0 }
0x175b   :  { %6964 = vmatprep.mubr.msk.f32.mxu1 %vm336_vm3, %v2929_v47 }
0x175c   :  { %v6956_v18 = vpop.f32.mrf.mxu1  ;;  %6965 = vmatmul.mubr.msk.f32.vlgmr.msra.gmra.mxu1 %vm336_vm3, %v3005_v10  ;;  %v8188_v27 = vpop.f32.mrf.mxu0 }
0x175d   :  { %6973 = vmatpush3.xpose.msk.msra.mxu1 %vm336_vm3, %v3174_v35  ;;  %6974 = vmatprep.mubr.msk.f32.mxu1 %vm7551_vm2, %v7550_v13 }
0x175e   :  { %v3323_v49 = vpop.f32.mrf.mxu0  ;;  %6982 = vmatprep.subr.mxu1 %v7550_v13 }
0x175f   :  { %v3330_v53 = vsel %vm336_vm3, %v3323_v49, -inf }
0x1760   :  { %3331 = vmax.xlane.f32.xlu1 %v3330_v53  ;;  %6975 = vmatmul.mubr.msk.f32.vlgmr.msra.gmra.mxu1 %vm336_vm3, %v3172_v52  ;;  %v6981_v54 = vpop.f32.mrf.mxu0 }
0x1761   :  { %6984 = vmatprep.mubr.msk.f32.mxu1 %vm7551_vm2, %v7550_v13 }
0x1771   :  { %3349 = vrot.lane.b32.xlu1 %v8099_v62, %s7559_s29 }
0x1775   :  { %3586 = vrot.lane.b32.xlu1 %v8099_v62, %s7560_s30 }
0x1779   :  { %3664 = vrot.lane.b32.xlu1 %v8096_v60, %s7560_s30 }
0x177d   :  { %3662 = vrot.lane.b32.xlu1 %v8096_v60, %s7561_s0 }
0x17e9   :  { %v3332_v56 = vpop.xlane.xlu1 %3331 }
0x17ea   :  { %v3334_v61 = vsub.f32 %v3323_v49, %v3332_v56 }
0x17ec   :  { %v3337_v0 = vmul.f32 1.442695, %v3334_v61 }
0x17ed   :  { %v3350_v59 = vpop.permute.xlu1 %3349 }
0x17ee   :  { %6983 = vmatpush3.msra.mxu1 %v3350_v59  ;;  %7293 = vpow2.f32 %v3337_v0 }
0x17ef   :  { %6992 = vmatprep.subr.mxu1 %v7890_v63 }
0x17f1   :  { %v3587_v35 = vpop.permute.xlu1 %3586 }
0x17f5   :  { %v3665_v47 = vpop.permute.xlu1 %3664 }
0x17fb   :  { %v7294_v9 = vpop.eup %7293 }
0x17fc   :  { %v3342_v16 = vsel %vm336_vm3, %v7294_v9, 0.0 }
0x181c   :  { %v8207_v1 = vpop.f32.mrf.mxu1 }
0x181d   :  { %v3168_v61 = vadd.f32 %v8184_v48, %v8207_v1 }
0x181e   :  { %v8209_v15 = vpop.f32.mrf.mxu1 }
0x1820   :  { %v3245_v2 = vpop.f32.mrf.mxu1 }
0x1821   :  { %v3327_v8 = vsel %vm336_vm3, %v3245_v2, -inf }
0x1822   :  { %3328 = vmax.xlane.f32.xlu0 %v3327_v8  ;;  %v6976_v14 = vpop.f32.mrf.mxu1 }
0x1826   :  { %3343 = vadd.xlane.f32.xlu0 %v3342_v16 }
0x18ab   :  { %v3329_v12 = vpop.xlane.xlu0 %3328 }
0x18ac   :  { %v3333_v22 = vsub.f32 %v3245_v2, %v3329_v12  ;;  %v3163_v2 = vadd.f32 %v8188_v27, %v8209_v15 }
0x18ae   :  { %v3335_v23 = vmul.f32 1.442695, %v3333_v22 }
0x18af   :  { %v3344_v26 = vpop.xlane.xlu0 %3343 }
0x18b0   :  { %7295 = vpow2.f32 %v3335_v23 }
0x18b1   :  { %7297 = vrcp.f32 %v3344_v26 }
0x18bd   :  { %v7296_v24 = vpop.eup %7295 }
0x18be   :  { %v3339_v25 = vsel %vm336_vm3, %v7296_v24, 0.0  ;;  %v7298_v29 = vpop.eup %7297 }
0x18bf   :  { %3340 = vadd.xlane.f32.xlu0 %v3339_v25  ;;  %v3348_v32 = vmul.f32 %v7298_v29, %v7294_v9 }
0x18d5   :  { %3425 = vrot.lane.b32.xlu0 %v8096_v60, %s7559_s29 }
0x18d9   :  { %3584 = vrot.lane.b32.xlu0 %v8099_v62, %s7561_s0 }
0x1948   :  { %v3341_v28 = vpop.xlane.xlu0 %3340 }
0x1949   :  { %7299 = vrcp.f32 %v3341_v28 }
0x194c   :  { %v3426_v30 = vpop.permute.xlu0 %3425 }
0x194d   :  { %6988 = vmatpush3.msra.mxu0 %v3426_v30 }
0x194e   :  { %6990 = vmatmul.mubr.msk.f32.vlgmr.msra.gmra.mxu0 %vm336_vm3, %v3348_v32  ;;  %6997 = vmatprep.subr.mxu0 %v7550_v13 }
0x194f   :  { %6998 = vmatpush3.xpose.msk.msra.mxu0 %vm336_vm3, %v3587_v35  ;;  %6999 = vmatprep.mubr.msk.f32.mxu0 %vm7551_vm2, %v7550_v13 }
0x1950   :  { %v3585_v36 = vpop.permute.xlu0 %3584  ;;  %7007 = vmatprep.subr.mxu0 %v7550_v13 }
0x1952   :  { %7000 = vmatmul.mubr.msk.f32.vlgmr.msra.gmra.mxu0 %vm336_vm3, %v3585_v36 }
0x1953   :  { %7009 = vmatprep.mubr.msk.f32.mxu0 %vm7551_vm2, %v7550_v13 }
0x1956   :  { %v7300_v38 = vpop.eup %7299 }
0x1957   :  { %v3347_v39 = vmul.f32 %v7300_v38, %v7296_v24 }
0x1959   :  { %6985 = vmatmul.mubr.msk.f32.vlgmr.msra.gmra.mxu1 %vm336_vm3, %v3347_v39 }
0x195a   :  { %6993 = vmatpush3.msra.mxu1 %v7890_v63  ;;  %v3663_v63 = vpop.permute.xlu1 %3662 }
0x195b   :  { %7002 = vmatprep.subr.mxu1 %v7550_v13 }
0x1a0e   :  { %v3497_v44 = vpop.f32.mrf.mxu0 }
0x1a10   :  { %v6991_v33 = vpop.f32.mrf.mxu0 }
0x1a12   :  { %v3658_v45 = vpop.f32.mrf.mxu0 }
0x1a13   :  { %v3740_v10 = vsel %vm336_vm3, %v3658_v45, -inf }
0x1a14   :  { %3741 = vmax.xlane.f32.xlu0 %v3740_v10  ;;  %v7001_v46 = vpop.f32.mrf.mxu0 }
0x1a19   :  { %v3421_v18 = vpop.f32.mrf.mxu1 }
0x1a1a   :  { %6994 = vmatprep.mubr.msk.f32.mxu1 %vm336_vm3, %v3421_v18 }
0x1a1b   :  { %v6986_v49 = vpop.f32.mrf.mxu1  ;;  %6995 = vmatmul.mubr.msk.f32.vlgmr.msra.gmra.mxu1 %vm336_vm3, %v3497_v44 }
0x1a1c   :  { %7003 = vmatpush3.xpose.msk.msra.mxu1 %vm336_vm3, %v3665_v47  ;;  %7004 = vmatprep.mubr.msk.f32.mxu1 %vm7551_vm2, %v7550_v13 }
0x1a1d   :  { %7012 = vmatprep.subr.mxu1 %v7550_v13 }
0x1a1f   :  { %7005 = vmatmul.mubr.msk.f32.vlgmr.msra.gmra.mxu1 %vm336_vm3, %v3663_v63 }
0x1a20   :  { %7014 = vmatprep.mubr.msk.f32.mxu1 %vm7551_vm2, %v7550_v13 }
0x1a9d   :  { %v3742_v52 = vpop.xlane.xlu0 %3741 }
0x1a9e   :  { %v3746_v53 = vsub.f32 %v3658_v45, %v3742_v52 }
0x1aa0   :  { %v3748_v54 = vmul.f32 1.442695, %v3746_v53 }
0x1aa2   :  { %7301 = vpow2.f32 %v3748_v54 }
0x1aaf   :  { %v7302_v56 = vpop.eup %7301 }
0x1ab0   :  { %v3752_v59 = vsel %vm336_vm3, %v7302_v56, 0.0 }
0x1ab1   :  { %3753 = vadd.xlane.f32.xlu0 %v3752_v59 }
0x1adb   :  { %v6996_v0 = vpop.f32.mrf.mxu1 }
0x1adc   :  { %v8245_v8 = vadd.f32 %v6996_v0, %v3168_v61 }
0x1add   :  { %v3573_v9 = vpop.f32.mrf.mxu1 }
0x1ade   :  { %v8247_v14 = vadd.f32 %v3573_v9, %v3163_v2  ;;  %v7368_v9 = vld [vmem:[%s8654_s24 + $0x10] sm:$0xff] }
0x1adf   :  { %v3736_v16 = vpop.f32.mrf.mxu1 }
0x1ae0   :  { %v3743_v12 = vsel %vm336_vm3, %v3736_v16, -inf }
0x1ae1   :  { %3744 = vmax.xlane.f32.xlu1 %v3743_v12  ;;  %v7006_v22 = vpop.f32.mrf.mxu1 }
0x1af2   :  { %3762 = vrot.lane.b32.xlu1 %v8099_v62, %s7562_s6 }
0x1b3a   :  { %v3754_v23 = vpop.xlane.xlu0 %3753 }
0x1b3b   :  { %7303 = vrcp.f32 %v3754_v23 }
0x1b48   :  { %v7304_v1 = vpop.eup %7303 }
0x1b49   :  { %v3760_v15 = vmul.f32 %v7304_v1, %v7302_v56 }
0x1b6a   :  { %v3745_v48 = vpop.xlane.xlu1 %3744 }
0x1b6b   :  { %v3747_v24 = vsub.f32 %v3736_v16, %v3745_v48 }
0x1b6d   :  { %v3750_v25 = vmul.f32 1.442695, %v3747_v24 }
0x1b6e   :  { %v3763_v27 = vpop.permute.xlu1 %3762 }
0x1b6f   :  { %7305 = vpow2.f32 %v3750_v25  ;;  %7008 = vmatpush3.msra.mxu0 %v3763_v27 }
0x1b70   :  { %7010 = vmatmul.mubr.msk.f32.vlgmr.msra.gmra.mxu0 %vm336_vm3, %v3760_v15  ;;  %7017 = vmatprep.subr.mxu0 %v7920_v17 }
0x1b71   :  { %7018 = vmatpush3.msra.mxu0 %v7920_v17  ;;  %v8271_v17 = vld [vmem:[%s8654_s24 + $0x18] sm:$0xff] }
0x1b72   :  { %7033 = vmatprep.subr.mxu0 %v7993_v40 }
0x1b7c   :  { %v7306_v26 = vpop.eup %7305 }
0x1b7d   :  { %v3755_v62 = vsel %vm336_vm3, %v7306_v26, 0.0 }
0x1b7e   :  { %3756 = vadd.xlane.f32.xlu0 %v3755_v62 }
0x1b94   :  { %3838 = vrot.lane.b32.xlu0 %v8096_v60, %s7562_s6 }
0x1c07   :  { %v3757_v28 = vpop.xlane.xlu0 %3756 }
0x1c08   :  { %7307 = vrcp.f32 %v3757_v28 }
0x1c0b   :  { %v3839_v29 = vpop.permute.xlu0 %3838 }
0x1c0c   :  { %7013 = vmatpush3.msra.mxu1 %v3839_v29 }
0x1c0d   :  { %7022 = vmatprep.subr.mxu1 %v7940_v11 }
0x1c15   :  { %v7308_v30 = vpop.eup %7307 }
0x1c16   :  { %v3761_v32 = vmul.f32 %v7308_v30, %v7306_v26 }
0x1c18   :  { %7015 = vmatmul.mubr.msk.f32.vlgmr.msra.gmra.mxu1 %vm336_vm3, %v3761_v32 }
0x1c19   :  { %7023 = vmatpush3.msra.mxu1 %v7940_v11 }
0x1c1a   :  { %7024 = vmatprep.subr.mxu1 %v7945_v19 }
0x1c1b   :  { %7025 = vmatpush3.msra.mxu1 %v7945_v19 }
0x1c1c   :  { %7026 = vmatprep.subr.mxu1 %v7952_v20 }
0x1c1d   :  { %7027 = vmatpush3.msra.mxu1 %v7952_v20 }
0x1c1e   :  { %7028 = vmatprep.subr.mxu1 %v7959_v21 }
0x1c1f   :  { %7029 = vmatpush3.msra.mxu1 %v7959_v21 }
0x1c20   :  { %7052 = vmatprep.subr.mxu1 %v8271_v17 }
0x1c30   :  { %v3834_v11 = vpop.f32.mrf.mxu0 }
0x1c31   :  { %7019 = vmatprep.mubr.msk.f32.mxu0 %vm336_vm3, %v3834_v11 }
0x1c32   :  { %v7011_v60 = vpop.f32.mrf.mxu0 }
0x1cd8   :  { %v3910_v19 = vpop.f32.mrf.mxu1 }
0x1cd9   :  { %7020 = vmatmul.mubr.msk.f32.vlgmr.msra.gmra.mxu0 %vm336_vm3, %v3910_v19 }
0x1cda   :  { %v7016_v35 = vpop.f32.mrf.mxu1  ;;  %7034 = vmatpush3.msra.mxu0 %v7993_v40 }
0x1cdb   :  { %7035 = vmatprep.subr.mxu0 %v7998_v3 }
0x1cdc   :  { %7036 = vmatpush3.msra.mxu0 %v7998_v3 }
0x1cdd   :  { %7037 = vmatprep.subr.mxu0 %v8005_v5 }
0x1cde   :  { %7038 = vmatpush3.msra.mxu0 %v8005_v5 }
0x1cdf   :  { %7039 = vmatprep.subr.mxu0 %v8012_v6 }
0x1ce0   :  { %7040 = vmatpush3.msra.mxu0 %v8012_v6 }
0x1ce1   :  { %7041 = vmatprep.subr.mxu0 %v8019_v7 }
0x1ce2   :  { %7042 = vmatpush3.msra.mxu0 %v8019_v7 }
0x1ce3   :  { %7043 = vmatprep.subr.mxu0 %v8026_v41 }
0x1ce4   :  { %7044 = vmatpush3.msra.mxu0 %v8026_v41 }
0x1ce5   :  { %7045 = vmatprep.subr.mxu0 %v8033_v34 }
0x1ce6   :  { %7046 = vmatpush3.msra.mxu0 %v8033_v34 }
0x1ce7   :  { %7047 = vmatprep.subr.mxu0 %v8040_v42 }
0x1ce8   :  { %7048 = vmatpush3.msra.mxu0 %v8040_v42 }
0x1ce9   :  { %7068 = vmatprep.subr.mxu0 %v7550_v13 }
0x1d99   :  { %v7021_v20 = vpop.f32.mrf.mxu0 }
0x1d9a   :  { %v3996_v21 = vadd.f32 %v7021_v20, %v8245_v8 }
0x1d9b   :  { %v3986_v40 = vpop.f32.mrf.mxu0 }
0x1d9c   :  { %v3998_v3 = vadd.f32 %v7927_v51, %v3996_v21  ;;  %v3995_v5 = vadd.f32 %v3986_v40, %v8247_v14 }
0x1d9e   :  { %v3997_v6 = vadd.f32 %v7927_v51, %v3995_v5  ;;  %v4000_v7 = vadd.f32 %v3998_v3, %v8087_v58 }
0x1da0   :  { %v4004_v41 = vsel %vm251_vm1, %v4000_v7, 0.0  ;;  %v3999_v34 = vadd.f32 %v3997_v6, %v8084_v57 }
0x1da1   :  { %4005 = vadd.xlane.f32.xlu0 %v4004_v41 }
0x1da2   :  { %v4001_v42 = vsel %vm251_vm1, %v3999_v34, 0.0 }
0x1da3   :  { %4002 = vadd.xlane.f32.xlu1 %v4001_v42 }
0x1e2a   :  { %v4006_v36 = vpop.xlane.xlu0 %4005 }
0x1e2b   :  { %v4008_v38 = vmul.f32 0.03125, %v4006_v36 }
0x1e2c   :  { %v4003_v39 = vpop.xlane.xlu1 %4002 }
0x1e2d   :  { %v4010_v44 = vsub.f32 %v4000_v7, %v4008_v38  ;;  %v4007_v33 = vmul.f32 0.03125, %v4003_v39 }
0x1e2f   :  { %v4009_v45 = vsub.f32 %v3999_v34, %v4007_v33  ;;  %v4012_v10 = vmul.f32 %v4010_v44, %v4010_v44 }
0x1e31   :  { %v4016_v46 = vsel %vm251_vm1, %v4012_v10, 0.0  ;;  %v4011_v51 = vmul.f32 %v4009_v45, %v4009_v45 }
0x1e32   :  { %4017 = vadd.xlane.f32.xlu0 %v4016_v46 }
0x1e33   :  { %v4013_v58 = vsel %vm251_vm1, %v4011_v51, 0.0 }
0x1e34   :  { %4014 = vadd.xlane.f32.xlu1 %v4013_v58 }
0x1ebb   :  { %v4018_v47 = vpop.xlane.xlu0 %4017 }
0x1ebc   :  { %v4020_v57 = vmul.f32 0.03125, %v4018_v47 }
0x1ebd   :  { %v4015_v18 = vpop.xlane.xlu1 %4014 }
0x1ebe   :  { %v4022_v49 = vadd.f32 1e-12, %v4020_v57  ;;  %v4019_v63 = vmul.f32 0.03125, %v4015_v18 }
0x1ec0   :  { %7309 = vrsqrt.f32 %v4022_v49  ;;  %v4021_v52 = vadd.f32 1e-12, %v4019_v63 }
0x1ec2   :  { %7311 = vrsqrt.f32 %v4021_v52 }
0x1ecd   :  { %v7310_v53 = vpop.eup %7309 }
0x1ece   :  { %v4026_v54 = vmul.f32 %v7310_v53, %v4010_v44 }
0x1ecf   :  { %v7312_v56 = vpop.eup %7311 }
0x1ed0   :  { %v4025_v59 = vmul.f32 %v7312_v56, %v4009_v45  ;;  %v4028_v61 = vmul.f32 %v7966_v31, %v4026_v54 }
0x1ed2   :  { %v4027_v0 = vmul.f32 %v7966_v31, %v4025_v59  ;;  %v4030_v8 = vadd.f32 %v7969_v37, %v4028_v61  ;;  %v7369_v31 = vld [vmem:[%s8654_s24 + $0x8] sm:$0xff] }
0x1ed4   :  { %v4029_v2 = vadd.f32 %v7969_v37, %v4027_v0  ;;  %v7370_v37 = vld [vmem:[%s8654_s24] sm:$0xff] }
0x1ed5   :  { %v7371_v0 = vld [vmem:[#allocation5] ss:$0 sm:$0xff] }
0x1ed6   :  { %7030 = vmatprep.mubr.msk.f32.mxu1 %vm251_vm1, %v4029_v2 }
0x1ed7   :  { %7031 = vmatmul.mubr.msk.f32.vlgmr.msra.gmra.mxu1 %vm251_vm1, %v4030_v8 }
0x1ed8   :  { %7053 = vmatpush3.msra.mxu1 %v8271_v17 }
0x1ed9   :  { %7054 = vmatprep.subr.mxu1 %v7368_v9 }
0x1eda   :  { %7055 = vmatpush3.msra.mxu1 %v7368_v9 }
0x1edb   :  { %7056 = vmatprep.subr.mxu1 %v7369_v31 }
0x1edc   :  { %7057 = vmatpush3.msra.mxu1 %v7369_v31 }
0x1edd   :  { %7058 = vmatprep.subr.mxu1 %v7370_v37 }
0x1ede   :  { %7059 = vmatpush3.msra.mxu1 %v7370_v37 }
0x1edf   :  { %7063 = vmatprep.subr.mxu1 %v7550_v13 }
0x1f97   :  { %v7032_v14 = vpop.f32.mrf.mxu1 }
0x1f98   :  { %v4109_v16 = vadd.f32 %v7032_v14, %v8050_v43 }
0x1f99   :  { %v4103_v12 = vpop.f32.mrf.mxu1 }
0x1f9a   :  { %v4115_v22 = vmul.f32 0.044715, %v4109_v16  ;;  %v4104_v23 = vadd.f32 %v8050_v43, %v4103_v12  ;;  %v4113_v60 = vmul.f32 0.5, %v4109_v16 }
0x1f9c   :  { %v4117_v48 = vmul.f32 %v4115_v22, %v4109_v16  ;;  %v4114_v1 = vmul.f32 0.044715, %v4104_v23  ;;  %v4112_v17 = vmul.f32 0.5, %v4104_v23 }
0x1f9e   :  { %v4119_v24 = vmul.f32 %v4117_v48, %v4109_v16  ;;  %v4116_v25 = vmul.f32 %v4114_v1, %v4104_v23 }
0x1fa0   :  { %v4121_v27 = vadd.f32 %v4119_v24, %v4109_v16  ;;  %v4118_v15 = vmul.f32 %v4116_v25, %v4104_v23 }
0x1fa2   :  { %v4123_v26 = vmul.f32 0.7978846, %v4121_v27  ;;  %v4120_v62 = vadd.f32 %v4118_v15, %v4104_v23 }
0x1fa4   :  { %7313 = vtanh.f32 %v4123_v26  ;;  %v4122_v28 = vmul.f32 0.7978846, %v4120_v62 }
0x1fa6   :  { %7315 = vtanh.f32 %v4122_v28 }
0x1fb1   :  { %v7314_v29 = vpop.eup %7313 }
0x1fb2   :  { %v4127_v32 = vadd.f32 1.0, %v7314_v29 }
0x1fb3   :  { %v7316_v30 = vpop.eup %7315 }
0x1fb4   :  { %v4126_v11 = vadd.f32 1.0, %v7316_v30  ;;  %v4129_v35 = vmul.f32 %v4127_v32, %v4113_v60 }
0x1fb6   :  { %v4128_v19 = vmul.f32 %v4126_v11, %v4112_v17 }
0x1fb8   :  { %7049 = vmatprep.mubr.msk.f32.mxu0 %vm2144_vm4, %v4128_v19 }
0x1fb9   :  { %7050 = vmatmul.mubr.msk.f32.vlgmr.msra.gmra.mxu0 %vm2144_vm4, %v4129_v35 }
0x1fba   :  { %7070 = vmatprep.mubr.msk.f32.mxu0 %vm7551_vm2, %v7550_v13 }
0x2079   :  { %v7051_v43 = vpop.f32.mrf.mxu0 }
0x207a   :  { %v4208_v20 = vadd.f32 %v7051_v43, %v8061_v4 }
0x207b   :  { %v4202_v21 = vpop.f32.mrf.mxu0 }
0x207c   :  { %v4203_v40 = vadd.f32 %v8061_v4, %v4202_v21  ;;  %v4212_v3 = vadd.f32 %v4208_v20, %v4030_v8 }
0x207e   :  { %v4216_v5 = vsel %vm251_vm1, %v4212_v3, 0.0  ;;  %v4211_v6 = vadd.f32 %v4203_v40, %v4029_v2 }
0x207f   :  { %4217 = vadd.xlane.f32.xlu0 %v4216_v5 }
0x2080   :  { %v4213_v7 = vsel %vm251_vm1, %v4211_v6, 0.0 }
0x2081   :  { %4214 = vadd.xlane.f32.xlu1 %v4213_v7 }
0x2108   :  { %v4218_v41 = vpop.xlane.xlu0 %4217 }
0x2109   :  { %v4220_v34 = vmul.f32 0.03125, %v4218_v41 }
0x210a   :  { %v4215_v42 = vpop.xlane.xlu1 %4214 }
0x210b   :  { %v4222_v36 = vsub.f32 %v4212_v3, %v4220_v34  ;;  %v4219_v38 = vmul.f32 0.03125, %v4215_v42 }
0x210d   :  { %v4221_v39 = vsub.f32 %v4211_v6, %v4219_v38  ;;  %v4224_v44 = vmul.f32 %v4222_v36, %v4222_v36 }
0x210f   :  { %v4228_v33 = vsel %vm251_vm1, %v4224_v44, 0.0  ;;  %v4223_v45 = vmul.f32 %v4221_v39, %v4221_v39 }
0x2110   :  { %4229 = vadd.xlane.f32.xlu0 %v4228_v33 }
0x2111   :  { %v4225_v4 = vsel %vm251_vm1, %v4223_v45, 0.0 }
0x2112   :  { %4226 = vadd.xlane.f32.xlu1 %v4225_v4 }
0x2199   :  { %v4230_v10 = vpop.xlane.xlu0 %4229 }
0x219a   :  { %v4232_v46 = vmul.f32 0.03125, %v4230_v10 }
0x219b   :  { %v4227_v51 = vpop.xlane.xlu1 %4226 }
0x219c   :  { %v4234_v58 = vadd.f32 1e-12, %v4232_v46  ;;  %v4231_v47 = vmul.f32 0.03125, %v4227_v51 }
0x219e   :  { %7317 = vrsqrt.f32 %v4234_v58  ;;  %v4233_v57 = vadd.f32 1e-12, %v4231_v47  ;;  %v7372_v58 = vld [vmem:[%s8626_s5 + $0x8] sm:$0xff] }
0x21a0   :  { %7319 = vrsqrt.f32 %v4233_v57 }
0x21ab   :  { %v7318_v18 = vpop.eup %7317 }
0x21ac   :  { %v4238_v49 = vmul.f32 %v7318_v18, %v4222_v36 }
0x21ad   :  { %v7320_v63 = vpop.eup %7319 }
0x21ae   :  { %v4237_v52 = vmul.f32 %v7320_v63, %v4221_v39  ;;  %v4240_v53 = vmul.f32 %v8074_v50, %v4238_v49 }
0x21b0   :  { %v4239_v54 = vmul.f32 %v8074_v50, %v4237_v52  ;;  %v8337_v59 = vadd.f32 %v8080_v55, %v4240_v53 }
0x21b2   :  { %v8334_v56 = vadd.f32 %v8080_v55, %v4239_v54  ;;  %v7373_v54 = vld [vmem:[%s8626_s5] sm:$0xff] }
0x21b4   :  { %7060 = vmatprep.mubr.msk.f32.mxu1 %vm251_vm1, %v8334_v56 }
0x21b5   :  { %7061 = vmatmul.mubr.msk.f32.vlgmr.msra.gmra.mxu1 %vm251_vm1, %v8337_v59 }
0x21b6   :  { %7065 = vmatprep.mubr.msk.f32.mxu1 %vm7551_vm2, %v7550_v13 }
0x2275   :  { %v7062_v61 = vpop.f32.mrf.mxu1 }
0x2276   :  { %v8345_v2 = vadd.f32 %v7371_v0, %v7062_v61 }
0x2277   :  { %v4315_v50 = vpop.f32.mrf.mxu1 }
0x2278   :  { %v8347_v8 = vadd.f32 %v7371_v0, %v4315_v50  ;;  %4402 = vrot.lane.b32.xlu0 %v8345_v2, %s7552_s23 }
0x227a   :  { %4325 = vrot.lane.b32.xlu1 %v8347_v8, %s7552_s23 }
0x22ea   :  { %v4403_v55 = vpop.permute.xlu0 %4402 }
0x22eb   :  { %7069 = vmatpush3.xpose.msk.msra.mxu0 %vm336_vm3, %v4403_v55 }
0x22ec   :  { %v4326_v9 = vpop.permute.xlu1 %4325  ;;  %7078 = vmatprep.subr.mxu0 %v7550_v13 }
0x22ed   :  { %7064 = vmatpush3.xpose.msk.msra.mxu1 %vm336_vm3, %v4326_v9 }
0x22ee   :  { %7071 = vmatmul.mubr.msk.f32.vlgmr.msra.gmra.mxu0 %vm336_vm3, %v8345_v2  ;;  %7073 = vmatprep.subr.mxu1 %v7550_v13 }
0x22ef   :  { %7080 = vmatprep.mubr.msk.f32.mxu0 %vm7551_vm2, %v7550_v13 }
0x22f0   :  { %7066 = vmatmul.mubr.msk.f32.vlgmr.msra.gmra.mxu1 %vm336_vm3, %v8347_v8 }
0x22f1   :  { %7075 = vmatprep.mubr.msk.f32.mxu1 %vm7551_vm2, %v7550_v13 }
0x23ae   :  { %v4474_v31 = vpop.f32.mrf.mxu0 }
0x23af   :  { %v4481_v37 = vsel %vm336_vm3, %v4474_v31, -inf }
0x23b0   :  { %4482 = vmax.xlane.f32.xlu0 %v4481_v37  ;;  %v4397_v14 = vpop.f32.mrf.mxu1  ;;  %v7072_v16 = vpop.f32.mrf.mxu0 }
0x23b1   :  { %v4478_v12 = vsel %vm336_vm3, %v4397_v14, -inf }
0x23b2   :  { %4479 = vmax.xlane.f32.xlu1 %v4478_v12  ;;  %v7067_v22 = vpop.f32.mrf.mxu1 }
0x23c3   :  { %4500 = vrot.lane.b32.xlu1 %v8347_v8, %s7553_s2 }
0x23c6   :  { %4576 = vrot.lane.b32.xlu0 %v8345_v2, %s7553_s2 }
0x23c7   :  { %4654 = vrot.lane.b32.xlu1 %v8347_v8, %s7554_s22 }
0x23cb   :  { %4732 = vrot.lane.b32.xlu1 %v8345_v2, %s7554_s22 }
0x2439   :  { %v4483_v23 = vpop.xlane.xlu0 %4482 }
0x243a   :  { %v4485_v48 = vsub.f32 %v4474_v31, %v4483_v23 }
0x243b   :  { %v4480_v1 = vpop.xlane.xlu1 %4479 }
0x243c   :  { %v4488_v24 = vmul.f32 1.442695, %v4485_v48  ;;  %v4484_v25 = vsub.f32 %v4397_v14, %v4480_v1 }
0x243d   :  { %v4577_v27 = vpop.permute.xlu0 %4576 }
0x243e   :  { %7321 = vpow2.f32 %v4488_v24  ;;  %v4486_v15 = vmul.f32 1.442695, %v4484_v25  ;;  %7079 = vmatpush3.msra.mxu0 %v4577_v27 }
0x243f   :  { %v4501_v26 = vpop.permute.xlu1 %4500  ;;  %7088 = vmatprep.subr.mxu0 %v7550_v13 }
0x2440   :  { %7323 = vpow2.f32 %v4486_v15  ;;  %7074 = vmatpush3.msra.mxu1 %v4501_v26 }
0x2441   :  { %7083 = vmatprep.subr.mxu1 %v7550_v13 }
0x2443   :  { %v4655_v32 = vpop.permute.xlu1 %4654 }
0x2447   :  { %v4733_v17 = vpop.permute.xlu1 %4732 }
0x244b   :  { %v7322_v62 = vpop.eup %7321 }
0x244c   :  { %v4493_v28 = vsel %vm336_vm3, %v7322_v62, 0.0 }
0x244d   :  { %v7324_v29 = vpop.eup %7323  ;;  %4494 = vadd.xlane.f32.xlu0 %v4493_v28 }
0x244e   :  { %v4490_v30 = vsel %vm336_vm3, %v7324_v29, 0.0 }
0x244f   :  { %4491 = vadd.xlane.f32.xlu1 %v4490_v30 }
0x2460   :  { %4730 = vrot.lane.b32.xlu1 %v8345_v2, %s7555_s25 }
0x2463   :  { %4652 = vrot.lane.b32.xlu0 %v8347_v8, %s7555_s25 }
0x24d6   :  { %v4495_v11 = vpop.xlane.xlu0 %4494 }
0x24d7   :  { %7325 = vrcp.f32 %v4495_v11 }
0x24d8   :  { %v4492_v60 = vpop.xlane.xlu1 %4491 }
0x24d9   :  { %7327 = vrcp.f32 %v4492_v60 }
0x24da   :  { %v4653_v40 = vpop.permute.xlu0 %4652 }
0x24dc   :  { %v4731_v21 = vpop.permute.xlu1 %4730 }
0x24e4   :  { %v7326_v19 = vpop.eup %7325 }
0x24e5   :  { %v4499_v35 = vmul.f32 %v7326_v19, %v7322_v62  ;;  %v7374_v62 = vld [vmem:[%s8626_s5 + $0x10] sm:$0xff] }
0x24e6   :  { %v7328_v43 = vpop.eup %7327 }
0x24e7   :  { %7081 = vmatmul.mubr.msk.f32.vlgmr.msra.gmra.mxu0 %vm336_vm3, %v4499_v35  ;;  %v4498_v20 = vmul.f32 %v7328_v43, %v7324_v29 }
0x24e8   :  { %7089 = vmatpush3.xpose.msk.msra.mxu0 %vm336_vm3, %v4733_v17  ;;  %7090 = vmatprep.mubr.msk.f32.mxu0 %vm7551_vm2, %v7550_v13 }
0x24e9   :  { %7076 = vmatmul.mubr.msk.f32.vlgmr.msra.gmra.mxu1 %vm336_vm3, %v4498_v20  ;;  %7098 = vmatprep.subr.mxu0 %v7550_v13 }
0x24ea   :  { %7084 = vmatpush3.xpose.msk.msra.mxu1 %vm336_vm3, %v4655_v32  ;;  %7085 = vmatprep.mubr.msk.f32.mxu1 %vm7551_vm2, %v7550_v13 }
0x24eb   :  { %7091 = vmatmul.mubr.msk.f32.vlgmr.msra.gmra.mxu0 %vm336_vm3, %v4731_v21  ;;  %7093 = vmatprep.subr.mxu1 %v7550_v13 }
0x24ec   :  { %7100 = vmatprep.mubr.msk.f32.mxu0 %vm7551_vm2, %v7550_v13 }
0x24ed   :  { %7086 = vmatmul.mubr.msk.f32.vlgmr.msra.gmra.mxu1 %vm336_vm3, %v4653_v40 }
0x24ee   :  { %7095 = vmatprep.mubr.msk.f32.mxu1 %vm7551_vm2, %v7550_v13 }
0x25a7   :  { %v4648_v3 = vpop.f32.mrf.mxu0 }
0x25a9   :  { %v4572_v5 = vpop.f32.mrf.mxu1  ;;  %v7082_v6 = vpop.f32.mrf.mxu0 }
0x25ab   :  { %v7077_v7 = vpop.f32.mrf.mxu1  ;;  %v4804_v41 = vpop.f32.mrf.mxu0 }
0x25ac   :  { %v4811_v34 = vsel %vm336_vm3, %v4804_v41, -inf }
0x25ad   :  { %4812 = vmax.xlane.f32.xlu1 %v4811_v34  ;;  %v4726_v42 = vpop.f32.mrf.mxu1  ;;  %v7092_v36 = vpop.f32.mrf.mxu0 }
0x25ae   :  { %v4808_v38 = vsel %vm336_vm3, %v4726_v42, -inf }
0x25af   :  { %4809 = vmax.xlane.f32.xlu0 %v4808_v38  ;;  %v7087_v39 = vpop.f32.mrf.mxu1 }
0x25be   :  { %4830 = vrot.lane.b32.xlu1 %v8347_v8, %s7556_s3 }
0x25c2   :  { %5146 = vrot.lane.b32.xlu1 %v8347_v8, %s7558_s27 }
0x25c6   :  { %5224 = vrot.lane.b32.xlu1 %v8345_v2, %s7558_s27 }
0x25ca   :  { %5222 = vrot.lane.b32.xlu1 %v8345_v2, %s7557_s26 }
0x2636   :  { %v4813_v44 = vpop.xlane.xlu1 %4812 }
0x2637   :  { %v4815_v33 = vsub.f32 %v4804_v41, %v4813_v44 }
0x2638   :  { %v4810_v45 = vpop.xlane.xlu0 %4809 }
0x2639   :  { %v4818_v4 = vmul.f32 1.442695, %v4815_v33  ;;  %v4814_v10 = vsub.f32 %v4726_v42, %v4810_v45 }
0x263a   :  { %v4831_v46 = vpop.permute.xlu1 %4830 }
0x263b   :  { %7329 = vpow2.f32 %v4818_v4  ;;  %v4816_v51 = vmul.f32 1.442695, %v4814_v10  ;;  %7094 = vmatpush3.msra.mxu1 %v4831_v46 }
0x263c   :  { %7103 = vmatprep.subr.mxu1 %v7372_v58 }
0x263d   :  { %7331 = vpow2.f32 %v4816_v51 }
0x263e   :  { %v5147_v61 = vpop.permute.xlu1 %5146 }
0x2642   :  { %v5225_v9 = vpop.permute.xlu1 %5224 }
0x2646   :  { %v5223_v37 = vpop.permute.xlu1 %5222 }
0x2648   :  { %v7330_v47 = vpop.eup %7329 }
0x2649   :  { %v4823_v57 = vsel %vm336_vm3, %v7330_v47, 0.0 }
0x264a   :  { %v7332_v18 = vpop.eup %7331  ;;  %4824 = vadd.xlane.f32.xlu0 %v4823_v57 }
0x264b   :  { %v4820_v49 = vsel %vm336_vm3, %v7332_v18, 0.0 }
0x264e   :  { %4821 = vadd.xlane.f32.xlu0 %v4820_v49 }
0x2664   :  { %4906 = vrot.lane.b32.xlu0 %v8345_v2, %s7556_s3 }
0x2668   :  { %5144 = vrot.lane.b32.xlu0 %v8347_v8, %s7557_s26 }
0x26d3   :  { %v4825_v63 = vpop.xlane.xlu0 %4824 }
0x26d4   :  { %7333 = vrcp.f32 %v4825_v63 }
0x26d7   :  { %v4822_v52 = vpop.xlane.xlu0 %4821 }
0x26d8   :  { %7335 = vrcp.f32 %v4822_v52 }
0x26db   :  { %v4907_v53 = vpop.permute.xlu0 %4906 }
0x26dc   :  { %7099 = vmatpush3.msra.mxu0 %v4907_v53 }
0x26dd   :  { %7108 = vmatprep.subr.mxu0 %v7373_v54 }
0x26df   :  { %v5145_v24 = vpop.permute.xlu0 %5144 }
0x26e1   :  { %v7334_v0 = vpop.eup %7333 }
0x26e2   :  { %v4829_v50 = vmul.f32 %v7334_v0, %v7330_v47 }
0x26e4   :  { %7101 = vmatmul.mubr.msk.f32.vlgmr.msra.gmra.mxu0 %vm336_vm3, %v4829_v50 }
0x26e5   :  { %v7336_v55 = vpop.eup %7335  ;;  %7110 = vmatprep.mubr.msk.f32.mxu0 %vm336_vm3, %v4572_v5  ;;  %7109 = vmatpush3.msra.mxu0 %v7373_v54 }
0x26e6   :  { %7118 = vmatprep.subr.mxu0 %v7550_v13  ;;  %v4828_v31 = vmul.f32 %v7336_v55, %v7332_v18 }
0x26e8   :  { %7096 = vmatmul.mubr.msk.f32.vlgmr.msra.gmra.mxu1 %vm336_vm3, %v4828_v31  ;;  %7111 = vmatmul.mubr.msk.f32.vlgmr.msra.gmra.mxu0 %vm336_vm3, %v4648_v3 }
0x26e9   :  { %7119 = vmatpush3.xpose.msk.msra.mxu0 %vm336_vm3, %v5225_v9  ;;  %7120 = vmatprep.mubr.msk.f32.mxu0 %vm7551_vm2, %v7550_v13 }
0x26ea   :  { %7104 = vmatpush3.msra.mxu1 %v7372_v58  ;;  %7128 = vmatprep.subr.mxu0 %v7550_v13 }
0x26eb   :  { %7113 = vmatprep.subr.mxu1 %v7550_v13 }
0x26ec   :  { %7121 = vmatmul.mubr.msk.f32.vlgmr.msra.gmra.mxu0 %vm336_vm3, %v5223_v37 }
0x26ed   :  { %7130 = vmatprep.mubr.msk.f32.mxu0 %vm7551_vm2, %v7550_v13 }
0x27a4   :  { %v4978_v14 = vpop.f32.mrf.mxu0 }
0x27a6   :  { %v7102_v16 = vpop.f32.mrf.mxu0 }
0x27a8   :  { %v4902_v12 = vpop.f32.mrf.mxu1  ;;  %v8434_v22 = vpop.f32.mrf.mxu0 }
0x27a9   :  { %7105 = vmatprep.mubr.msk.f32.mxu1 %vm336_vm3, %v4902_v12 }
0x27aa   :  { %v7097_v23 = vpop.f32.mrf.mxu1  ;;  %7106 = vmatmul.mubr.msk.f32.vlgmr.msra.gmra.mxu1 %vm336_vm3, %v4978_v14  ;;  %v8438_v48 = vpop.f32.mrf.mxu0 }
0x27ab   :  { %7114 = vmatpush3.xpose.msk.msra.mxu1 %vm336_vm3, %v5147_v61  ;;  %7115 = vmatprep.mubr.msk.f32.mxu1 %vm7551_vm2, %v7550_v13 }
0x27ac   :  { %v5296_v1 = vpop.f32.mrf.mxu0  ;;  %7123 = vmatprep.subr.mxu1 %v7550_v13 }
0x27ad   :  { %v5303_v25 = vsel %vm336_vm3, %v5296_v1, -inf }
0x27ae   :  { %5304 = vmax.xlane.f32.xlu1 %v5303_v25  ;;  %7116 = vmatmul.mubr.msk.f32.vlgmr.msra.gmra.mxu1 %vm336_vm3, %v5145_v24  ;;  %v7122_v27 = vpop.f32.mrf.mxu0  ;;  %v7375_v24 = vld [vmem:[%s8626_s5 + $0x18] sm:$0xff] }
0x27af   :  { %7125 = vmatprep.mubr.msk.f32.mxu1 %vm7551_vm2, %v7550_v13 }
0x27bf   :  { %5322 = vrot.lane.b32.xlu1 %v8347_v8, %s7559_s29 }
0x27c3   :  { %5559 = vrot.lane.b32.xlu1 %v8347_v8, %s7560_s30 }
0x27c7   :  { %5637 = vrot.lane.b32.xlu1 %v8345_v2, %s7560_s30 }
0x27cb   :  { %5635 = vrot.lane.b32.xlu1 %v8345_v2, %s7561_s0 }
0x2837   :  { %v5305_v15 = vpop.xlane.xlu1 %5304 }
0x2838   :  { %v5307_v28 = vsub.f32 %v5296_v1, %v5305_v15 }
0x283a   :  { %v5310_v29 = vmul.f32 1.442695, %v5307_v28 }
0x283b   :  { %v5323_v26 = vpop.permute.xlu1 %5322 }
0x283c   :  { %7124 = vmatpush3.msra.mxu1 %v5323_v26  ;;  %7337 = vpow2.f32 %v5310_v29 }
0x283d   :  { %7133 = vmatprep.subr.mxu1 %v7374_v62 }
0x283f   :  { %v5560_v42 = vpop.permute.xlu1 %5559 }
0x2843   :  { %v5638_v46 = vpop.permute.xlu1 %5637 }
0x2847   :  { %v5636_v47 = vpop.permute.xlu1 %5635 }
0x2849   :  { %v7338_v60 = vpop.eup %7337 }
0x284a   :  { %v5315_v35 = vsel %vm336_vm3, %v7338_v60, 0.0 }
0x286a   :  { %v8459_v30 = vpop.f32.mrf.mxu1 }
0x286b   :  { %v5141_v53 = vadd.f32 %v8434_v22, %v8459_v30  ;;  %v7378_v30 = vld [vmem:[%s8630_s9 + $0x10] sm:$0xff] }
0x286c   :  { %v8461_v32 = vpop.f32.mrf.mxu1 }
0x286d   :  { %v5136_v61 = vadd.f32 %v8438_v48, %v8461_v32  ;;  %v7380_v32 = vld [vmem:[%s8630_s9] sm:$0xff] }
0x286e   :  { %v5218_v17 = vpop.f32.mrf.mxu1 }
0x286f   :  { %v5300_v11 = vsel %vm336_vm3, %v5218_v17, -inf }
0x2870   :  { %5301 = vmax.xlane.f32.xlu0 %v5300_v11  ;;  %v7117_v19 = vpop.f32.mrf.mxu1 }
0x2874   :  { %5316 = vadd.xlane.f32.xlu0 %v5315_v35  ;;  %v7381_v35 = vld [vmem:[%s8632_s11 + $0x30] sm:$0xff] }
0x28f9   :  { %v5302_v43 = vpop.xlane.xlu0 %5301 }
0x28fa   :  { %v5306_v20 = vsub.f32 %v5218_v17, %v5302_v43  ;;  %v7382_v43 = vld [vmem:[%s8632_s11 + $0x28] sm:$0xff] }
0x28fc   :  { %v5308_v21 = vmul.f32 1.442695, %v5306_v20  ;;  %v7383_v20 = vld [vmem:[%s8632_s11 + $0x20] sm:$0xff] }
0x28fd   :  { %v5317_v5 = vpop.xlane.xlu0 %5316 }
0x28fe   :  { %7339 = vpow2.f32 %v5308_v21  ;;  %v7384_v21 = vld [vmem:[%s8632_s11 + $0x18] sm:$0xff] }
0x28ff   :  { %7341 = vrcp.f32 %v5317_v5  ;;  %v7387_v5 = vld [vmem:[%s8632_s11] sm:$0xff] }
0x290b   :  { %v7340_v40 = vpop.eup %7339 }
0x290c   :  { %v5312_v3 = vsel %vm336_vm3, %v7340_v40, 0.0  ;;  %v7342_v7 = vpop.eup %7341 }
0x290d   :  { %5313 = vadd.xlane.f32.xlu0 %v5312_v3  ;;  %v5321_v34 = vmul.f32 %v7342_v7, %v7338_v60  ;;  %v7386_v3 = vld [vmem:[%s8632_s11 + $0x8] sm:$0xff] }
0x2923   :  { %5398 = vrot.lane.b32.xlu0 %v8345_v2, %s7559_s29  ;;  %s7563_s29 = smov [#allocation11]  }
0x2924   :  { %s6396_s30 = sshll.u32 %s7563_s29, 4  ;;  %s6397_s30 = int_to_ptr.vmem [resolvable:$true] %s6396_s30 }
0x2925   :  { %p7500_p12 = scmp.lt.s32.totalorder %s6397_s30, %s6397_s30 }
0x2927   :  { %5557 = vrot.lane.b32.xlu0 %v8347_v8, %s7561_s0  ;;  %s7495_s0 = scalar_lea.vmem %s6397_s30, 256 }
0x2928   :  { %p7496_p11 = scmp.ne.s32.totalorder %s6397_s30, %s7495_s0  ;;  %p7501_p13 = scmp.lt.s32.totalorder %s7495_s0, %s7495_s0 }
0x292a   :  { %p7502_p0 = por %p7501_p13, %p7500_p12 }
0x292c   :  { %p7503_p1 = pnand %p7502_p0, %p7496_p11 }
0x2996   :  { %v5314_v6 = vpop.xlane.xlu0 %5313 }
0x2997   :  { %7343 = vrcp.f32 %v5314_v6 }
0x299a   :  { %v5399_v41 = vpop.permute.xlu0 %5398 }
0x299b   :  { %7129 = vmatpush3.msra.mxu0 %v5399_v41 }
0x299c   :  { %7131 = vmatmul.mubr.msk.f32.vlgmr.msra.gmra.mxu0 %vm336_vm3, %v5321_v34  ;;  %7138 = vmatprep.subr.mxu0 %v7550_v13  ;;  %v7388_v34 = vld [vmem:[#allocation7] ss:$0 sm:$0xff] }
0x299d   :  { %7139 = vmatpush3.xpose.msk.msra.mxu0 %vm336_vm3, %v5560_v42  ;;  %7140 = vmatprep.mubr.msk.f32.mxu0 %vm7551_vm2, %v7550_v13 }
0x299e   :  { %v5558_v36 = vpop.permute.xlu0 %5557  ;;  %7148 = vmatprep.subr.mxu0 %v7550_v13 }
0x29a0   :  { %7141 = vmatmul.mubr.msk.f32.vlgmr.msra.gmra.mxu0 %vm336_vm3, %v5558_v36 }
0x29a1   :  { %7150 = vmatprep.mubr.msk.f32.mxu0 %vm7551_vm2, %v7550_v13 }
0x29a4   :  { %v7344_v38 = vpop.eup %7343 }
0x29a5   :  { %v5320_v39 = vmul.f32 %v7344_v38, %v7340_v40  ;;  %v7385_v40 = vld [vmem:[%s8632_s11 + $0x10] sm:$0xff] }
0x29a7   :  { %7126 = vmatmul.mubr.msk.f32.vlgmr.msra.gmra.mxu1 %vm336_vm3, %v5320_v39 }
0x29a8   :  { %7134 = vmatpush3.msra.mxu1 %v7374_v62  ;;  %v7377_v62 = vld [vmem:[%s8630_s9 + $0x18] sm:$0xff] }
0x29a9   :  { %7143 = vmatprep.subr.mxu1 %v7550_v13 }
0x2a5c   :  { %v5470_v44 = vpop.f32.mrf.mxu0 }
0x2a5e   :  { %v7132_v33 = vpop.f32.mrf.mxu0 }
0x2a60   :  { %v5631_v45 = vpop.f32.mrf.mxu0 }
0x2a61   :  { %v5713_v4 = vsel %vm336_vm3, %v5631_v45, -inf }
0x2a62   :  { %5714 = vmax.xlane.f32.xlu0 %v5713_v4  ;;  %v7142_v10 = vpop.f32.mrf.mxu0 }
0x2a67   :  { %v5394_v51 = vpop.f32.mrf.mxu1 }
0x2a68   :  { %7135 = vmatprep.mubr.msk.f32.mxu1 %vm336_vm3, %v5394_v51 }
0x2a69   :  { %v7127_v58 = vpop.f32.mrf.mxu1  ;;  %7136 = vmatmul.mubr.msk.f32.vlgmr.msra.gmra.mxu1 %vm336_vm3, %v5470_v44 }
0x2a6a   :  { %7144 = vmatpush3.xpose.msk.msra.mxu1 %vm336_vm3, %v5638_v46  ;;  %7145 = vmatprep.mubr.msk.f32.mxu1 %vm7551_vm2, %v7550_v13 }
0x2a6b   :  { %7153 = vmatprep.subr.mxu1 %v7550_v13 }
0x2a6d   :  { %7146 = vmatmul.mubr.msk.f32.vlgmr.msra.gmra.mxu1 %vm336_vm3, %v5636_v47 }
0x2a6e   :  { %7155 = vmatprep.mubr.msk.f32.mxu1 %vm7551_vm2, %v7550_v13 }
0x2aeb   :  { %v5715_v57 = vpop.xlane.xlu0 %5714 }
0x2aec   :  { %v5719_v18 = vsub.f32 %v5631_v45, %v5715_v57 }
0x2aee   :  { %v5721_v49 = vmul.f32 1.442695, %v5719_v18 }
0x2af0   :  { %7345 = vpow2.f32 %v5721_v49 }
0x2afd   :  { %v7346_v63 = vpop.eup %7345 }
0x2afe   :  { %v5725_v52 = vsel %vm336_vm3, %v7346_v63, 0.0 }
0x2aff   :  { %5726 = vadd.xlane.f32.xlu0 %v5725_v52 }
0x2b29   :  { %v7137_v54 = vpop.f32.mrf.mxu1 }
0x2b2a   :  { %v8496_v0 = vadd.f32 %v7137_v54, %v5141_v53 }
0x2b2b   :  { %v5546_v50 = vpop.f32.mrf.mxu1 }
0x2b2c   :  { %v8498_v55 = vadd.f32 %v5546_v50, %v5136_v61 }
0x2b2d   :  { %v5709_v9 = vpop.f32.mrf.mxu1 }
0x2b2e   :  { %v5716_v31 = vsel %vm336_vm3, %v5709_v9, -inf }
0x2b2f   :  { %5717 = vmax.xlane.f32.xlu1 %v5716_v31  ;;  %v7147_v37 = vpop.f32.mrf.mxu1  ;;  %v7389_v31 = vld [vmem:[#allocation8] ss:$0 sm:$0xff] }
0x2b40   :  { %5735 = vrot.lane.b32.xlu1 %v8347_v8, %s7562_s6  ;;  %v7376_v8 = vld [vmem:[%s8632_s11 + $0x38] sm:$0xff] }
0x2b88   :  { %v5727_v14 = vpop.xlane.xlu0 %5726 }
0x2b89   :  { %7347 = vrcp.f32 %v5727_v14 }
0x2b96   :  { %v7348_v12 = vpop.eup %7347 }
0x2b97   :  { %v5733_v1 = vmul.f32 %v7348_v12, %v7346_v63 }
0x2bb8   :  { %v5718_v16 = vpop.xlane.xlu1 %5717 }
0x2bb9   :  { %v5720_v22 = vsub.f32 %v5709_v9, %v5718_v16  ;;  %v7390_v16 = vld [vmem:[#allocation10] ss:$0 sm:$0xff] }
0x2bbb   :  { %v5723_v23 = vmul.f32 1.442695, %v5720_v22 }
0x2bbc   :  { %v5736_v48 = vpop.permute.xlu1 %5735 }
0x2bbd   :  { %7349 = vpow2.f32 %v5723_v23  ;;  %7149 = vmatpush3.msra.mxu0 %v5736_v48  ;;  %v7391_v48 = vld [vmem:[%s8631_s10] ss:$0 sm:$0xff] }
0x2bbe   :  { %7151 = vmatmul.mubr.msk.f32.vlgmr.msra.gmra.mxu0 %vm336_vm3, %v5733_v1  ;;  %7158 = vmatprep.subr.mxu0 %v7375_v24 }
0x2bbf   :  { %7159 = vmatpush3.msra.mxu0 %v7375_v24 }
0x2bc0   :  { %7174 = vmatprep.subr.mxu0 %v7376_v8 }
0x2bca   :  { %v7350_v25 = vpop.eup %7349 }
0x2bcb   :  { %v5728_v27 = vsel %vm336_vm3, %v7350_v25, 0.0 }
0x2bcc   :  { %5729 = vadd.xlane.f32.xlu0 %v5728_v27 }
0x2be2   :  { %5811 = vrot.lane.b32.xlu0 %v8345_v2, %s7562_s6  ;;  %v7379_v2 = vld [vmem:[%s8630_s9 + $0x8] sm:$0xff] }
0x2c55   :  { %v5730_v15 = vpop.xlane.xlu0 %5729 }
0x2c56   :  { %7351 = vrcp.f32 %v5730_v15 }
0x2c59   :  { %v5812_v26 = vpop.permute.xlu0 %5811 }
0x2c5a   :  { %7154 = vmatpush3.msra.mxu1 %v5812_v26 }
0x2c5b   :  { %7163 = vmatprep.subr.mxu1 %v7377_v62 }
0x2c63   :  { %v7352_v28 = vpop.eup %7351 }
0x2c64   :  { %v5734_v29 = vmul.f32 %v7352_v28, %v7350_v25 }
0x2c66   :  { %7156 = vmatmul.mubr.msk.f32.vlgmr.msra.gmra.mxu1 %vm336_vm3, %v5734_v29 }
0x2c67   :  { %7164 = vmatpush3.msra.mxu1 %v7377_v62 }
0x2c68   :  { %7165 = vmatprep.subr.mxu1 %v7378_v30 }
0x2c69   :  { %7166 = vmatpush3.msra.mxu1 %v7378_v30 }
0x2c6a   :  { %7167 = vmatprep.subr.mxu1 %v7379_v2 }
0x2c6b   :  { %7168 = vmatpush3.msra.mxu1 %v7379_v2 }
0x2c6c   :  { %7169 = vmatprep.subr.mxu1 %v7380_v32 }
0x2c6d   :  { %7170 = vmatpush3.msra.mxu1 %v7380_v32 }
0x2c6e   :  { %7193 = vmatprep.subr.mxu1 %v7550_v13 }
0x2c7e   :  { %v5807_v17 = vpop.f32.mrf.mxu0 }
0x2c7f   :  { %7160 = vmatprep.mubr.msk.f32.mxu0 %vm336_vm3, %v5807_v17 }
0x2c80   :  { %v7152_v11 = vpop.f32.mrf.mxu0 }
0x2d26   :  { %v5883_v60 = vpop.f32.mrf.mxu1 }
0x2d27   :  { %7161 = vmatmul.mubr.msk.f32.vlgmr.msra.gmra.mxu0 %vm336_vm3, %v5883_v60 }
0x2d28   :  { %v7157_v19 = vpop.f32.mrf.mxu1  ;;  %7175 = vmatpush3.msra.mxu0 %v7376_v8 }
0x2d29   :  { %7176 = vmatprep.subr.mxu0 %v7381_v35 }
0x2d2a   :  { %7177 = vmatpush3.msra.mxu0 %v7381_v35 }
0x2d2b   :  { %7178 = vmatprep.subr.mxu0 %v7382_v43 }
0x2d2c   :  { %7179 = vmatpush3.msra.mxu0 %v7382_v43 }
0x2d2d   :  { %7180 = vmatprep.subr.mxu0 %v7383_v20 }
0x2d2e   :  { %7181 = vmatpush3.msra.mxu0 %v7383_v20 }
0x2d2f   :  { %7182 = vmatprep.subr.mxu0 %v7384_v21 }
0x2d30   :  { %7183 = vmatpush3.msra.mxu0 %v7384_v21 }
0x2d31   :  { %7184 = vmatprep.subr.mxu0 %v7385_v40 }
0x2d32   :  { %7185 = vmatpush3.msra.mxu0 %v7385_v40 }
0x2d33   :  { %7186 = vmatprep.subr.mxu0 %v7386_v3 }
0x2d34   :  { %7187 = vmatpush3.msra.mxu0 %v7386_v3  ;;  %v7392_v3 = vld [vmem:[%s8633_s12] ss:$0 sm:$0xff] }
0x2d35   :  { %7188 = vmatprep.subr.mxu0 %v7387_v5 }
0x2d36   :  { %7189 = vmatpush3.msra.mxu0 %v7387_v5 }
0x2de7   :  { %v7162_v6 = vpop.f32.mrf.mxu0 }
0x2de8   :  { %v5969_v7 = vadd.f32 %v7162_v6, %v8496_v0 }
0x2de9   :  { %v5959_v41 = vpop.f32.mrf.mxu0 }
0x2dea   :  { %v5971_v42 = vadd.f32 %v7388_v34, %v5969_v7  ;;  %v5968_v36 = vadd.f32 %v5959_v41, %v8498_v55 }
0x2dec   :  { %v5970_v38 = vadd.f32 %v7388_v34, %v5968_v36  ;;  %v5973_v39 = vadd.f32 %v5971_v42, %v8337_v59 }
0x2dee   :  { %v5977_v44 = vsel %vm251_vm1, %v5973_v39, 0.0  ;;  %v5972_v33 = vadd.f32 %v5970_v38, %v8334_v56 }
0x2def   :  { %5978 = vadd.xlane.f32.xlu0 %v5977_v44 }
0x2df0   :  { %v5974_v45 = vsel %vm251_vm1, %v5972_v33, 0.0 }
0x2df1   :  { %5975 = vadd.xlane.f32.xlu1 %v5974_v45 }
0x2e78   :  { %v5979_v4 = vpop.xlane.xlu0 %5978 }
0x2e79   :  { %v5981_v10 = vmul.f32 0.03125, %v5979_v4 }
0x2e7a   :  { %v5976_v46 = vpop.xlane.xlu1 %5975 }
0x2e7b   :  { %v5983_v51 = vsub.f32 %v5973_v39, %v5981_v10  ;;  %v5980_v58 = vmul.f32 0.03125, %v5976_v46 }
0x2e7d   :  { %v5982_v47 = vsub.f32 %v5972_v33, %v5980_v58  ;;  %v5985_v57 = vmul.f32 %v5983_v51, %v5983_v51 }
0x2e7f   :  { %v5989_v18 = vsel %vm251_vm1, %v5985_v57, 0.0  ;;  %v5984_v49 = vmul.f32 %v5982_v47, %v5982_v47  ;;  %v6218_v57 = vld [vmem:[%s8636_s15 + $0x10] sm:$0xff] }
0x2e80   :  { %5990 = vadd.xlane.f32.xlu0 %v5989_v18  ;;  %v6217_v18 = vld [vmem:[%s8636_s15 + $0x8] sm:$0xff] }
0x2e81   :  { %v5986_v59 = vsel %vm251_vm1, %v5984_v49, 0.0  ;;  %v6216_v49 = vld [vmem:[%s8636_s15] sm:$0xff] }
0x2e82   :  { %5987 = vadd.xlane.f32.xlu1 %v5986_v59 }
0x2f09   :  { %v5991_v63 = vpop.xlane.xlu0 %5990 }
0x2f0a   :  { %v5993_v56 = vmul.f32 0.03125, %v5991_v63 }
0x2f0b   :  { %v5988_v52 = vpop.xlane.xlu1 %5987 }
0x2f0c   :  { %v5995_v53 = vadd.f32 1e-12, %v5993_v56  ;;  %v5992_v54 = vmul.f32 0.03125, %v5988_v52 }
0x2f0e   :  { %7353 = vrsqrt.f32 %v5995_v53  ;;  %v5994_v61 = vadd.f32 1e-12, %v5992_v54 }
0x2f10   :  { %7355 = vrsqrt.f32 %v5994_v61 }
0x2f1b   :  { %v7354_v0 = vpop.eup %7353 }
0x2f1c   :  { %v5999_v50 = vmul.f32 %v7354_v0, %v5983_v51 }
0x2f1d   :  { %v7356_v55 = vpop.eup %7355 }
0x2f1e   :  { %v5998_v9 = vmul.f32 %v7356_v55, %v5982_v47  ;;  %v6001_v37 = vmul.f32 %v7389_v31, %v5999_v50  ;;  %v6219_v47 = vld [vmem:[%s8636_s15 + $0x18] sm:$0xff] }
0x2f20   :  { %v6000_v14 = vmul.f32 %v7389_v31, %v5998_v9  ;;  %v6003_v22 = vadd.f32 %v7390_v16, %v6001_v37  ;;  %v7393_v9 = vld [vmem:[%s8634_s13] ss:$0 sm:$0xff] }
0x2f22   :  { %v6002_v12 = vadd.f32 %v7390_v16, %v6000_v14  ;;  %v7394_v14 = vld [vmem:[%s8635_s14] ss:$0 sm:$0xff] }
0x2f24   :  { %7171 = vmatprep.mubr.msk.f32.mxu1 %vm251_vm1, %v6002_v12 }
0x2f25   :  { %7172 = vmatmul.mubr.msk.f32.vlgmr.msra.gmra.mxu1 %vm251_vm1, %v6003_v22 }
0x2f26   :  { %7201 = vmatprep.mubr.msk.f32.mxu1 %vm7551_vm2, %v7550_v13  ;;  %7194 = vmatpush3.msra.mxu1 %v6219_v47 }
0x2f27   :  { %7195 = vmatprep.subr.mxu1 %v7550_v13 }
0x2f28   :  { %7196 = vmatpush3.msra.mxu1 %v6218_v57 }
0x2f29   :  { %7197 = vmatprep.subr.mxu1 %v7550_v13 }
0x2f2a   :  { %7198 = vmatpush3.msra.mxu1 %v6217_v18 }
0x2f2b   :  { %7199 = vmatprep.subr.mxu1 %v7550_v13 }
0x2f2c   :  { %7200 = vmatpush3.msra.mxu1 %v6216_v49 }
0x2f2d   :  { %7204 = vmatprep.subr.mxu1 %v7550_v13 }
0x2fe5   :  { %v7173_v23 = vpop.f32.mrf.mxu1 }
0x2fe6   :  { %v6082_v1 = vadd.f32 %v7391_v48, %v7173_v23 }
0x2fe7   :  { %v6076_v24 = vpop.f32.mrf.mxu1 }
0x2fe8   :  { %v6088_v8 = vmul.f32 0.044715, %v6082_v1  ;;  %v6077_v25 = vadd.f32 %v7391_v48, %v6076_v24  ;;  %v6086_v43 = vmul.f32 0.5, %v6082_v1  ;;  %v6306_v48 = vld [vmem:[%s8638_s17 + $0x8] sm:$0xff]  ;;  %v6549_v24 = vld [vmem:[%s8637_s16] ss:$0 sm:$0xff] }
0x2fea   :  { %v6090_v27 = vmul.f32 %v6088_v8, %v6082_v1  ;;  %v6087_v15 = vmul.f32 0.044715, %v6077_v25  ;;  %v6085_v19 = vmul.f32 0.5, %v6077_v25 }
0x2fec   :  { %v6092_v26 = vmul.f32 %v6090_v27, %v6082_v1  ;;  %v6089_v62 = vmul.f32 %v6087_v15, %v6077_v25 }
0x2fee   :  { %v6094_v28 = vadd.f32 %v6092_v26, %v6082_v1  ;;  %v6091_v29 = vmul.f32 %v6089_v62, %v6077_v25  ;;  %v6305_v1 = vld [vmem:[%s8638_s17] sm:$0xff] }
0x2ff0   :  { %v6096_v30 = vmul.f32 0.7978846, %v6094_v28  ;;  %v6093_v2 = vadd.f32 %v6091_v29, %v6077_v25 }
0x2ff2   :  { %7357 = vtanh.f32 %v6096_v30  ;;  %v6095_v32 = vmul.f32 0.7978846, %v6093_v2 }
0x2ff4   :  { %7359 = vtanh.f32 %v6095_v32 }
0x2fff   :  { %v7358_v17 = vpop.eup %7357 }
0x3000   :  { %v6100_v60 = vadd.f32 1.0, %v7358_v17 }
0x3001   :  { %v7360_v11 = vpop.eup %7359 }
0x3002   :  { %v6099_v35 = vadd.f32 1.0, %v7360_v11  ;;  %v6102_v21 = vmul.f32 %v6100_v60, %v6086_v43 }
0x3004   :  { %v6101_v20 = vmul.f32 %v6099_v35, %v6085_v19 }
0x3006   :  { %7190 = vmatprep.mubr.msk.f32.mxu0 %vm2144_vm4, %v6101_v20 }
0x3007   :  { %7191 = vmatmul.mubr.msk.f32.vlgmr.msra.gmra.mxu0 %vm2144_vm4, %v6102_v21 }
0x30c7   :  { %v7192_v40 = vpop.f32.mrf.mxu0 }
0x30c8   :  { %v6181_v5 = vadd.f32 %v7392_v3, %v7192_v40 }
0x30c9   :  { %v6175_v6 = vpop.f32.mrf.mxu0 }
0x30ca   :  { %v6185_v7 = vadd.f32 %v6181_v5, %v6003_v22  ;;  %v6176_v41 = vadd.f32 %v7392_v3, %v6175_v6 }
0x30cc   :  { %v6184_v34 = vadd.f32 %v6176_v41, %v6002_v12  ;;  %v6189_v42 = vsel %vm251_vm1, %v6185_v7, 0.0 }
0x30cd   :  { %6190 = vadd.xlane.f32.xlu1 %v6189_v42 }
0x30ce   :  { %v6186_v36 = vsel %vm251_vm1, %v6184_v34, 0.0 }
0x30cf   :  { %6187 = vadd.xlane.f32.xlu0 %v6186_v36 }
0x3156   :  { %v6191_v38 = vpop.xlane.xlu1 %6190 }
0x3157   :  { %v6193_v39 = vmul.f32 0.03125, %v6191_v38 }
0x3158   :  { %v6188_v44 = vpop.xlane.xlu0 %6187 }
0x3159   :  { %v6195_v33 = vsub.f32 %v6185_v7, %v6193_v39  ;;  %v6192_v45 = vmul.f32 0.03125, %v6188_v44 }
0x315b   :  { %v6194_v4 = vsub.f32 %v6184_v34, %v6192_v45  ;;  %v6197_v10 = vmul.f32 %v6195_v33, %v6195_v33 }
0x315d   :  { %v6201_v46 = vsel %vm251_vm1, %v6197_v10, 0.0  ;;  %v6196_v51 = vmul.f32 %v6194_v4, %v6194_v4 }
0x315e   :  { %6202 = vadd.xlane.f32.xlu1 %v6201_v46 }
0x315f   :  { %v6198_v58 = vsel %vm251_vm1, %v6196_v51, 0.0 }
0x3160   :  { %6199 = vadd.xlane.f32.xlu0 %v6198_v58 }
0x31e7   :  { %v6203_v59 = vpop.xlane.xlu1 %6202 }
0x31e8   :  { %v6205_v63 = vmul.f32 0.03125, %v6203_v59 }
0x31e9   :  { %v6200_v56 = vpop.xlane.xlu0 %6199 }
0x31ea   :  { %v6207_v52 = vadd.f32 1e-12, %v6205_v63  ;;  %v6204_v53 = vmul.f32 0.03125, %v6200_v56 }
0x31ec   :  { %7361 = vrsqrt.f32 %v6207_v52  ;;  %v6206_v54 = vadd.f32 1e-12, %v6204_v53 }
0x31ee   :  { %7363 = vrsqrt.f32 %v6206_v54 }
0x31f9   :  { %v7362_v61 = vpop.eup %7361 }
0x31fa   :  { %v6211_v0 = vmul.f32 %v7362_v61, %v6195_v33 }
0x31fb   :  { %v7364_v50 = vpop.eup %7363 }
0x31fc   :  { %v6210_v55 = vmul.f32 %v7364_v50, %v6194_v4  ;;  %v6213_v31 = vmul.f32 %v7393_v9, %v6211_v0 }
0x31fe   :  { %v6212_v37 = vmul.f32 %v7393_v9, %v6210_v55  ;;  %v6215_v16 = vadd.f32 %v7394_v14, %v6213_v31 }
0x3200   :  { %v6214_v12 = vadd.f32 %v7394_v14, %v6212_v37  ;;  %v6229_v22 = vrot.slane %v6215_v16, 7  ;;  %6388 = vst.msk [vmem:[#allocation11 + $0x8] sm:$0xff] %vm251_vm1, %v6215_v16 }
0x3202   :  { %v6231_v23 = vsel %vm6230_vm5, %v6229_v22, %v6214_v12  ;;  %6387 = vst.msk [vmem:[#allocation11] sm:$0xff] %vm251_vm1, %v6214_v12 }
0x3203   :  { %7202 = vmatmul.mubr.msk.f32.vlgmr.msra.gmra.mxu1 %vm251_vm1, %v6231_v23 }
0x3204   :  { %7208 = vmatprep.mubr.msk.f32.mxu1 %vm7551_vm2, %v7550_v13  ;;  %7205 = vmatpush3.msra.mxu1 %v6306_v48 }
0x3205   :  { %7206 = vmatprep.subr.mxu1 %v7550_v13 }
0x3206   :  { %7207 = vmatpush3.msra.mxu1 %v6305_v1 }
0x32c3   :  { %v6300_v8 = vpop.f32.mrf.mxu1 }
0x32c4   :  { %v6301_v25 = vadd.f32 %v6549_v24, %v6300_v8 }
0x32c5   :  { %v7203_v27 = vpop.f32.mrf.mxu1 }
0x32c6   :  { %7365 = vtanh.f32 %v6301_v25 }
0x32d3   :  { %v7366_v15 = vpop.eup %7365 }
0x32d4   :  { %7209 = vmatmul.mubr.msk.f32.vlgmr.msra.gmra.mxu1 %vm135_vm0, %v7366_v15 }
0x32d5   :  { %7506 = shalt.err (!%p7503_p1)
}
0x32d6   :  { %s7564_s17 = smov 128   ;;  %s7565_s5 = smov 8   ;;  %v6551_v13 = vld [vmem:[%s8639_s18] ss:$0 sm:$0xff]  ;;  %vm6389_vm6 = vcmask 9216  }
0x32d7   :  { %6402 = dma.vmem_to_hbm [thread:$0]  %s6397_s30, 256, %s8640_s19, [#allocation4], %s7564_s17, %s7564_s17, %s7565_s5  }
0x32d8   :  { %s7566_s7 = smov [#allocation12]  }
0x32d9   :  { %s6409_s12 = sshll.u32 %s7566_s7, 4  ;;  %s6410_s12 = int_to_ptr.vmem [resolvable:$true] %s6409_s12 }
0x32da   :  { %s7515_s6 = scalar_lea.vmem %s6410_s12, 32  ;;  %p7520_p3 = scmp.lt.s32.totalorder %s6410_s12, %s6410_s12 }
0x32db   :  { %p7516_p2 = scmp.ne.s32.totalorder %s6410_s12, %s7515_s6  ;;  %p7521_p4 = scmp.lt.s32.totalorder %s7515_s6, %s7515_s6 }
0x32dd   :  { %p7522_p5 = por %p7521_p4, %p7520_p3 }
0x32df   :  { %p7523_p6 = pnand %p7522_p5, %p7516_p2 }
0x3394   :  { %v6383_v26 = vpop.f32.mrf.mxu1 }
0x3395   :  { %v6384_v62 = vadd.f32 %v6551_v13, %v6383_v26 }
0x3396   :  { %v7210_v28 = vpop.f32.mrf.mxu1 }
0x3397   :  { %6390 = vst.msk [vmem:[#allocation12] sm:$0x3] %vm6389_vm6, %v6384_v62 }
0x3398   :  { %7526 = shalt.err (!%p7523_p6)
}
0x3399   :  { %6412 = dma.vmem_to_hbm [thread:$0]  %s6410_s12, 32, %s8641_s20, [#allocation13]  }
0x339a   :  { %7541 = dma.done.wait [#allocation4], 256  }
0x339b   :  { %7542 = vsyncadd [#allocation4], 4294967040 }
0x339c   :  { %7543 = dma.done.wait [#allocation13], 32  }
0x339d   :  { %7544 = vsyncadd [#allocation13], 4294967264 }
0x339e   :  { %6419 = vsyncpa [#allocation3], 1 }
0x339f   :  { %6420 = vsyncpa [#allocation6], 1 }
0x33a0   :  { %6421 = vsyncpa [#allocation9], 1 }
0x33a1   :  { %6422 = vsyncpa [#allocation4], 1 }
0x33a2   :  { %6423 = vsyncpa [#allocation13], 1 }

</bundles_post_ra>
